<compile_context>
chip_gen: v7x
topology: tpu7x:2x2x1
jax: 0.10.0
libtpu: 0.0.40
codegen_flags: <defaults>
</compile_context>

<pallas_src>
import math
from collections import namedtuple
from functools import partial

import jax
import jax.numpy as jnp
from jax.experimental import pallas as pl
from jax.experimental.pallas import tpu as pltpu

LayerCfg = namedtuple("LayerCfg", ["cin", "cout", "pre_relu", "bn", "stride"])
BlockCfg = namedtuple("BlockCfg", ["layers", "has_skip", "cin", "cout", "stride"])


# ------------------------------- small helpers ------------------------------

def _round_up(x, m):
    return -(-x // m) * m


def _pad128(c):
    return _round_up(c, 128)


def _vmem_limits():
    """Generation-aware scoped-VMEM limit and ND-kernel VMEM budget."""
    try:
        phys = int(pltpu.get_tpu_info().vmem_capacity_bytes)
    except Exception:
        phys = 64 * 1024 * 1024           # conservative (v7x-sized) fallback
    if phys >= 100 * 1024 * 1024:          # v5e / v6e: 128 MiB physical
        return 96 * 1024 * 1024, 40 * 1024 * 1024
    return 48 * 1024 * 1024, 20 * 1024 * 1024   # v7x: 64 MiB physical


_VMEM_LIMIT, _ND_BUDGET = _vmem_limits()


def _choose_tk(k):
    if k <= 512:
        return k
    for t in (512, 384, 256, 128):
        if k % t == 0:
            return t
    return k


def _choose_tn(n_out):
    for t in (512, 384, 256, 128):
        if t <= n_out and n_out % t == 0:
            return t
    return n_out


def _choose_ck(cp, h, w, budget):
    """Largest channel tile whose scratch + double-buffered bf16 in/out fits."""
    for ck in (cp, 512, 384, 256, 128):
        if ck <= cp and cp % ck == 0:
            need = ck * (4 * (h + 2) * (w + 2) + 8 * h * w)
            if need <= budget:
                return ck
    # TODO(synk): at very large resolutions even ck=128 may not fit; needs H-tiling
    # with a 1-row halo instead of this fallback.
    return 128


def _choose_tm_affine(m, cp):
    # memory-bound elementwise kernel: target ~1 MiB bf16 input tile
    tm = max(256, ((1 << 20) // (2 * cp)) // 8 * 8)
    tm = min(tm, 2048)
    return min(tm, _round_up(m, 8))


# ---------------------------------------------------------------------------
# Kernel M: tiled MXU matmul  y = x @ w  (bf16 inputs, f32 accumulation) with
# a fused epilogue: optional residual add + per-tile BN partial statistics.
# Output activations are stored bf16; statistics come from the f32 accumulator.
# ---------------------------------------------------------------------------

def _mm_kernel(*refs, want_stats, has_res):
    x_ref, w_ref = refs[0], refs[1]
    idx = 2
    res_ref = refs[idx] if has_res else None
    idx += 1 if has_res else 0
    y_ref = refs[idx]
    idx += 1
    if want_stats:
        sum_ref, sq_ref = refs[idx], refs[idx + 1]
        idx += 2
    acc_ref = refs[idx]

    k = pl.program_id(2)

    @pl.when(k == 0)
    def _():
        acc_ref[...] = jnp.zeros_like(acc_ref)

    acc_ref[...] += jnp.dot(x_ref[...], w_ref[...],
                            preferred_element_type=jnp.float32)

    @pl.when(k == pl.num_programs(2) - 1)
    def _():
        y = acc_ref[...]
        if has_res:
            y = y + res_ref[...].astype(jnp.float32)
        y_ref[...] = y.astype(y_ref.dtype)
        if want_stats:
            sum_ref[...] = jnp.sum(y, axis=0, keepdims=True)[None]
            sq_ref[...] = jnp.sum(y * y, axis=0, keepdims=True)[None]


def _matmul_fused(x, w, *, want_stats=False, residual=None):
    if x.dtype != jnp.bfloat16:
        x = x.astype(jnp.bfloat16)        # pre-cast once (kernel expects bf16 LHS)
    m, kdim = x.shape
    n_out = w.shape[1]
    tm = min(256, _round_up(m, 8))
    mp = _round_up(m, tm)
    tn = _choose_tn(n_out)
    tk = _choose_tk(kdim)
    if mp != m:
        x = jnp.pad(x, ((0, mp - m), (0, 0)))
        if residual is not None:
            residual = jnp.pad(residual, ((0, mp - m), (0, 0)))
    grid = (mp // tm, n_out // tn, kdim // tk)

    in_specs = [pl.BlockSpec((tm, tk), lambda i, j, l: (i, l)),
                pl.BlockSpec((tk, tn), lambda i, j, l: (l, j))]
    inputs = [x, w]
    if residual is not None:
        in_specs.append(pl.BlockSpec((tm, tn), lambda i, j, l: (i, j)))
        inputs.append(residual)

    out_shape = [jax.ShapeDtypeStruct((mp, n_out), jnp.bfloat16)]
    out_specs = [pl.BlockSpec((tm, tn), lambda i, j, l: (i, j))]
    if want_stats:
        stat_shape = jax.ShapeDtypeStruct((mp // tm, 1, n_out), jnp.float32)
        stat_spec = pl.BlockSpec((1, 1, tn), lambda i, j, l: (i, 0, j))
        out_shape += [stat_shape, stat_shape]
        out_specs += [stat_spec, stat_spec]

    out = pl.pallas_call(
        partial(_mm_kernel, want_stats=want_stats, has_res=residual is not None),
        grid_spec=pltpu.PrefetchScalarGridSpec(
            num_scalar_prefetch=0, grid=grid,
            in_specs=in_specs, out_specs=out_specs,
            scratch_shapes=[pltpu.VMEM((tm, tn), jnp.float32)]),
        out_shape=out_shape,
        compiler_params=pltpu.CompilerParams(
            dimension_semantics=("parallel", "parallel", "arbitrary"),
            vmem_limit_bytes=_VMEM_LIMIT),
    )(*inputs)
    y = out[0][:m]
    if want_stats:
        return y, (jnp.sum(out[1], axis=0)[0], jnp.sum(out[2], axis=0)[0])
    return y, None


# ---------------------------------------------------------------------------
# Kernel ND: fused (deferred BN scale/shift + ReLU) -> depthwise 3x3 'same'.
# Un-padded input block; the 'same' zero border lives only in the VMEM scratch.
# ---------------------------------------------------------------------------

def _nd_kernel(x_ref, sc_ref, sh_ref, dw_ref, o_ref, xn_ref, *, relu, h, w):
    ck = xn_ref.shape[-1]
    # zero the 1-pixel border of the padded scratch ('same' zero padding applies
    # to the *normalized* activation)
    zr = jnp.zeros((1, w + 2, ck), jnp.float32)
    zc = jnp.zeros((h + 2, 1, ck), jnp.float32)
    xn_ref[0:1, :, :] = zr
    xn_ref[h + 1:h + 2, :, :] = zr
    xn_ref[:, 0:1, :] = zc
    xn_ref[:, w + 1:w + 2, :] = zc
    # producer's BN scale/shift (+ optional ReLU) applied ONCE to the interior
    xn = x_ref[0].astype(jnp.float32) * sc_ref[0] + sh_ref[0]
    if relu:
        xn = jnp.maximum(xn, 0.0)
    xn_ref[1:h + 1, 1:w + 1, :] = xn
    # depthwise 3x3 as a 9-tap VPU multiply-accumulate (dilation=1)
    # TODO(synk): if the bundle dump shows VMEM copies from the sublane-unaligned
    # taps (kx=1,2), restructure as 3 row-strips with pltpu.roll for the kx shifts.
    acc = xn_ref[0:h, 0:w, :] * dw_ref[0]
    for t in range(1, 9):
        ky, kx = divmod(t, 3)
        acc = acc + xn_ref[ky:ky + h, kx:kx + w, :] * dw_ref[t]
    o_ref[0] = acc.astype(o_ref.dtype)


def _nd_conv(x, scale, shift, dw_w, *, relu):
    n, h, w, cp = x.shape
    ck = _choose_ck(cp, h, w, _ND_BUDGET)
    return pl.pallas_call(
        partial(_nd_kernel, relu=relu, h=h, w=w),
        grid_spec=pltpu.PrefetchScalarGridSpec(
            num_scalar_prefetch=0, grid=(n, cp // ck),
            in_specs=[pl.BlockSpec((1, h, w, ck), lambda b, c: (b, 0, 0, c)),
                      pl.BlockSpec((1, ck), lambda b, c: (0, c)),
                      pl.BlockSpec((1, ck), lambda b, c: (0, c)),
                      pl.BlockSpec((9, ck), lambda b, c: (0, c))],
            out_specs=pl.BlockSpec((1, h, w, ck), lambda b, c: (b, 0, 0, c)),
            scratch_shapes=[pltpu.VMEM((h + 2, w + 2, ck), jnp.float32)]),
        out_shape=jax.ShapeDtypeStruct((n, h, w, cp), jnp.bfloat16),
        compiler_params=pltpu.CompilerParams(
            dimension_semantics=("parallel", "parallel"),
            vmem_limit_bytes=_VMEM_LIMIT),
    )(x, scale, shift, dw_w)


# ---------------------------------------------------------------------------
# Kernel A: elementwise scale/shift (+ ReLU) (+ residual add).  bf16 output.
# Used for the stem BNs, the conv-skip BN + residual add, and the final bn5.
# ---------------------------------------------------------------------------

def _apply_kernel(*refs, relu, has_res):
    x_ref, sc_ref, sh_ref = refs[0], refs[1], refs[2]
    res_ref = refs[3] if has_res else None
    o_ref = refs[4] if has_res else refs[3]
    y = x_ref[...].astype(jnp.float32) * sc_ref[...] + sh_ref[...]
    if relu:
        y = jnp.maximum(y, 0.0)
    if has_res:
        y = y + res_ref[...].astype(jnp.float32)
    o_ref[...] = y.astype(o_ref.dtype)


def _apply_affine(x2d, scale, shift, *, relu, residual=None):
    m, cp = x2d.shape
    tm = _choose_tm_affine(m, cp)
    mp = _round_up(m, tm)
    if mp != m:
        x2d = jnp.pad(x2d, ((0, mp - m), (0, 0)))
        if residual is not None:
            residual = jnp.pad(residual, ((0, mp - m), (0, 0)))
    in_specs = [pl.BlockSpec((tm, cp), lambda i: (i, 0)),
                pl.BlockSpec((1, cp), lambda i: (0, 0)),
                pl.BlockSpec((1, cp), lambda i: (0, 0))]
    inputs = [x2d, scale, shift]
    if residual is not None:
        in_specs.append(pl.BlockSpec((tm, cp), lambda i: (i, 0)))
        inputs.append(residual)
    out = pl.pallas_call(
        partial(_apply_kernel, relu=relu, has_res=residual is not None),
        grid_spec=pltpu.PrefetchScalarGridSpec(
            num_scalar_prefetch=0, grid=(mp // tm,),
            in_specs=in_specs,
            out_specs=pl.BlockSpec((tm, cp), lambda i: (i, 0))),
        out_shape=jax.ShapeDtypeStruct((mp, cp), jnp.bfloat16),
        compiler_params=pltpu.CompilerParams(
            dimension_semantics=("parallel",),
            vmem_limit_bytes=_VMEM_LIMIT),
    )(*inputs)
    return out[:m]


# ------------------------------ layer plumbing ------------------------------

def _identity_norm(cp):
    return jnp.ones((1, cp), jnp.float32), jnp.zeros((1, cp), jnp.float32)


def _finalize_bn(stats, gamma, beta, count, eps=1e-5):
    # training-mode BatchNorm2d: biased batch statistics over N*H*W
    ssum, ssq = stats
    mean = ssum / count
    var = jnp.maximum(ssq / count - mean * mean, 0.0)
    scale = gamma * jax.lax.rsqrt(var + eps)
    shift = beta - mean * scale
    return scale.reshape(1, -1), shift.reshape(1, -1)


def _sep_layer(x, scale, shift, relu, lp, stride, want_stats, residual=None):
    """(deferred BN+ReLU of producer) -> depthwise 3x3 'same' -> pointwise 1x1."""
    n, h, w, cin_p = x.shape
    dwout = _nd_conv(x, scale, shift, lp["dw"], relu=relu)
    if stride == 2:
        # TODO(synk): fold the stride-2 subsample into the ND kernel output store.
        dwout = dwout[:, ::2, ::2, :]
    nb, ho, wo, _ = dwout.shape
    m = nb * ho * wo
    res2d = residual.reshape(m, residual.shape[-1]) if residual is not None else None
    y2d, stats = _matmul_fused(dwout.reshape(m, cin_p), lp["pw"],
                               want_stats=want_stats, residual=res2d)
    cout_p = lp["pw"].shape[1]
    return y2d.reshape(nb, ho, wo, cout_p), stats, m


def _im2col(x, stride):
    # 'same'-padded 3x3 taps (dilation=1), output spatial = ceil(H/stride).
    n, h, w, c = x.shape
    ho = -(-h // stride)
    wo = -(-w // stride)
    xp = jnp.pad(x, ((0, 0), (1, 1), (1, 1), (0, 0)))
    taps = [xp[:, ky:ky + (ho - 1) * stride + 1:stride,
               kx:kx + (wo - 1) * stride + 1:stride, :]
            for ky in range(3) for kx in range(3)]
    return jnp.concatenate(taps, axis=-1)          # (N, Ho, Wo, 9*C)


def _stem_forward(x, sp):
    patches = _im2col(x, 2)
    nb, ho, wo, k = patches.shape
    y, stats = _matmul_fused(patches.reshape(nb * ho * wo, k), sp["conv1_w"],
                             want_stats=True)
    scale, shift = _finalize_bn(stats, sp["bn1_g"], sp["bn1_b"], nb * ho * wo)
    a = _apply_affine(y, scale, shift, relu=True).reshape(nb, ho, wo, -1)

    patches = _im2col(a, 1)          # bf16 patches: half the im2col HBM traffic
    nb, h2, w2, k2 = patches.shape
    y, stats = _matmul_fused(patches.reshape(nb * h2 * w2, k2), sp["conv2_w"],
                             want_stats=True)
    scale, shift = _finalize_bn(stats, sp["bn2_g"], sp["bn2_b"], nb * h2 * w2)
    a = _apply_affine(y, scale, shift, relu=True).reshape(nb, h2, w2, -1)
    return a


def _block_forward(x, params, cfg):
    cin_p = x.shape[-1]
    scale, shift = _identity_norm(cin_p)
    cur = x
    n_layers = len(cfg.layers)
    for idx, (lp, lc) in enumerate(zip(params["layers"], cfg.layers)):
        is_final = idx == n_layers - 1
        residual = x if (is_final and not cfg.has_skip) else None
        cur, stats, m = _sep_layer(cur, scale, shift, lc.pre_relu, lp, lc.stride,
                                   want_stats=lc.bn, residual=residual)
        if lc.bn:
            scale, shift = _finalize_bn(stats, lp["g"], lp["b"], m)
        else:
            scale, shift = _identity_norm(cur.shape[-1])
    main = cur
    if not cfg.has_skip:
        return main        # identity skip was fused into the final pointwise matmul
    # skip path: 1x1 stride-s conv + BN, residual add fused into the BN apply
    xs = x[:, ::cfg.stride, ::cfg.stride, :]
    nb, hs, ws, _ = xs.shape
    skip2d, sstats = _matmul_fused(xs.reshape(nb * hs * ws, cin_p),
                                   params["skip_w"], want_stats=True)
    s_scale, s_shift = _finalize_bn(sstats, params["skip_g"], params["skip_b"],
                                    nb * hs * ws)
    cout_p = params["skip_w"].shape[1]
    out2d = _apply_affine(skip2d, s_scale, s_shift, relu=False,
                          residual=main.reshape(nb * hs * ws, cout_p))
    return out2d.reshape(nb, hs, ws, cout_p)


def _exit_forward(x, ep):
    cur = x
    scale, shift = _identity_norm(x.shape[-1])
    relu = False                     # block20 output feeds conv3 with no ReLU
    for name in ("conv3", "conv4", "conv5"):
        p = ep[name]
        cur, stats, m = _sep_layer(cur, scale, shift, relu, p, 1, want_stats=True)
        scale, shift = _finalize_bn(stats, p["g"], p["b"], m)
        relu = True                  # bn3/bn4 + relu folded into the next conv
    n, h, w, cp = cur.shape
    out = _apply_affine(cur.reshape(n * h * w, cp), scale, shift, relu=True)
    return out.reshape(n, h, w, cp)


_stem_jit = jax.jit(_stem_forward)
_block_jit = jax.jit(_block_forward, static_argnames=("cfg",))
_exit_jit = jax.jit(_exit_forward)


# --------------------------- parameters / config ----------------------------

class _Init:
    """Deterministic He-normal init matching Xception._init_weight()."""

    def __init__(self, key):
        self._key = key

    def _next(self):
        self._key, k = jax.random.split(self._key)
        return k

    def _normal(self, shape, fan_n):
        return jax.random.normal(self._next(), shape, jnp.float32) * math.sqrt(2.0 / fan_n)

    def dw(self, cin):                                  # depthwise: n = 3*3*out (out=cin)
        w = self._normal((9, cin), 9 * cin)
        return jnp.pad(w, ((0, 0), (0, _pad128(cin) - cin)))

    def pw(self, cin, cout):                            # pointwise / 1x1 skip: n = out
        w = self._normal((cin, cout), cout)
        w = jnp.pad(w, ((0, _pad128(cin) - cin), (0, _pad128(cout) - cout)))
        return w.astype(jnp.bfloat16)

    def dense3x3(self, cin, cin_pad, cout):             # stem convs (im2col): n = 9*out
        w = self._normal((9, cin, cout), 9 * cout)
        w = jnp.pad(w, ((0, 0), (0, cin_pad - cin), (0, _pad128(cout) - cout)))
        return w.reshape(9 * cin_pad, _pad128(cout)).astype(jnp.bfloat16)

    def bn(self, c):
        cp = _pad128(c)
        g = jnp.concatenate([jnp.ones((c,), jnp.float32),
                             jnp.zeros((cp - c,), jnp.float32)])
        return g, jnp.zeros((cp,), jnp.float32)

    def sep(self, cin, cout):
        return {"dw": self.dw(cin), "pw": self.pw(cin, cout)}


def _block_cfg(cin, cout, reps, stride, start_with_relu=True, grow_first=True,
               is_last=True):
    layers = []
    filters = cin
    if grow_first:
        layers.append(LayerCfg(cin, cout, True, True, 1))
        filters = cout
    for _ in range(reps - 1):
        layers.append(LayerCfg(filters, filters, True, True, 1))
    if not grow_first:
        layers.append(LayerCfg(cin, cout, True, True, 1))
    if not start_with_relu:
        layers[0] = layers[0]._replace(pre_relu=False)
    if stride != 1:
        layers.append(LayerCfg(cout, cout, False, False, 2))
    if stride == 1 and is_last:
        layers.append(LayerCfg(cout, cout, False, False, 1))
    has_skip = (cout != cin) or (stride != 1)
    return BlockCfg(tuple(layers), has_skip, cin, cout, stride)


def _block_params(init, cfg):
    p = {"layers": []}
    for lc in cfg.layers:
        lp = init.sep(lc.cin, lc.cout)
        if lc.bn:
            lp["g"], lp["b"] = init.bn(lc.cout)
        p["layers"].append(lp)
    if cfg.has_skip:
        p["skip_w"] = init.pw(cfg.cin, cfg.cout)
        p["skip_g"], p["skip_b"] = init.bn(cfg.cout)
    return p


def build_xception(inplanes=3, os=16, seed=0):
    assert os == 16  # entry_block3_stride=2; depthwise dilation is hard-coded 1 upstream.
    init = _Init(jax.random.PRNGKey(seed))

    cfgs = {"block1": _block_cfg(64, 128, reps=2, stride=2, start_with_relu=False),
            "block2": _block_cfg(128, 256, reps=2, stride=2),
            "block3": _block_cfg(256, 728, reps=2, stride=2)}
    for i in range(4, 20):
        cfgs[f"block{i}"] = _block_cfg(728, 728, reps=3, stride=1)
    cfgs["block20"] = _block_cfg(728, 1024, reps=2, stride=1, grow_first=False)

    params = {"stem": {"conv1_w": init.dense3x3(inplanes, inplanes, 32),
                       "conv2_w": init.dense3x3(32, 128, 64)}}
    params["stem"]["bn1_g"], params["stem"]["bn1_b"] = init.bn(32)
    params["stem"]["bn2_g"], params["stem"]["bn2_b"] = init.bn(64)
    for name, cfg in cfgs.items():
        params[name] = _block_params(init, cfg)
    ex = {}
    for name, (ci, co) in (("conv3", (1024, 1536)),
                           ("conv4", (1536, 1536)),
                           ("conv5", (1536, 2048))):
        p = init.sep(ci, co)
        p["g"], p["b"] = init.bn(co)
        ex[name] = p
    params["exit"] = ex
    return params, cfgs


def xception_forward(x_nchw, params, cfgs):
    # NCHW (PyTorch convention) -> internal NHWC with 128-padded channels
    x = jnp.transpose(x_nchw, (0, 2, 3, 1)).astype(jnp.float32)
    x = _stem_jit(x, params["stem"])
    x = _block_jit(x, params["block1"], cfg=cfgs["block1"])
    low_level_feat = x
    for i in range(2, 21):
        x = _block_jit(x, params[f"block{i}"], cfg=cfgs[f"block{i}"])
    x = _exit_jit(x, params["exit"])
    # back to NCHW, f32 (final channel counts 2048 / 128 are already 128-aligned)
    return (jnp.transpose(x[..., :2048], (0, 3, 1, 2)).astype(jnp.float32),
            jnp.transpose(low_level_feat[..., :128], (0, 3, 1, 2)).astype(jnp.float32))


if __name__ == "__main__":
    params, cfgs = build_xception(inplanes=3, os=16, seed=0)
    x = jax.random.normal(jax.random.PRNGKey(0), (2, 3, 32, 32), jnp.float32)  # NCHW
    out, low = xception_forward(x, params, cfgs)
    out, low = jax.block_until_ready((out, low))
    assert out.shape == (2, 2048, 2, 2), out.shape   # os=16: 32 -> 2
    assert low.shape == (2, 128, 8, 8), low.shape    # block1 output
    assert bool(jnp.all(jnp.isfinite(out))) and bool(jnp.all(jnp.isfinite(low)))
    print("KERNEL_OK")
</pallas_src>

<mosaic_0001>
module attributes {stable_mosaic.version = 11 : i64} {
  func.func @_mm_kernel(%arg0: i32, %arg1: i32, %arg2: i32, %arg3: memref<256x27xbf16, #tpu.memory_space<vmem>>, %arg4: memref<27x128xbf16, #tpu.memory_space<vmem>>, %arg5: memref<256x128xbf16, #tpu.memory_space<vmem>>, %arg6: memref<1x1x128xf32, #tpu.memory_space<vmem>>, %arg7: memref<1x1x128xf32, #tpu.memory_space<vmem>>, %arg8: memref<256x128xf32, #tpu.memory_space<vmem>>) attributes {dimension_semantics = [#tpu.dimension_semantics<parallel>, #tpu.dimension_semantics<parallel>, #tpu.dimension_semantics<arbitrary>], iteration_bounds = array<i64: 2, 1, 1>, scalar_prefetch = 0 : i64, scratch_operands = 1 : i64, tpu.core_type = #tpu.core_type<tc>, window_params = [{transform_indices = @transform_0, window_bounds = array<i64: 256, 27>}, {transform_indices = @transform_1, window_bounds = array<i64: 27, 128>}, {transform_indices = @transform_2, window_bounds = array<i64: 256, 128>}, {transform_indices = @transform_3, window_bounds = array<i64: 1, 1, 128>}, {transform_indices = @transform_4, window_bounds = array<i64: 1, 1, 128>}]} {
    %c0_i32 = arith.constant 0 : i32
    %0 = arith.cmpi eq, %arg2, %c0_i32 : i32
    %1 = arith.extui %0 : i1 to i32
    %c0_i32_0 = arith.constant 0 : i32
    %2 = arith.cmpi ne, %1, %c0_i32_0 : i32
    scf.if %2 {
      %cst_10 = arith.constant 0.000000e+00 : f32
      %12 = vector.broadcast %cst_10 : f32 to vector<256x128xf32>
      %c0_11 = arith.constant 0 : index
      %c0_12 = arith.constant 0 : index
      %13 = vector.load %arg8[%c0_11, %c0_12] : memref<256x128xf32, #tpu.memory_space<vmem>>, vector<256x128xf32>
      tpu.vector_store %arg8[%c0_11, %c0_12], %12 {strides = array<i32>} : memref<256x128xf32, #tpu.memory_space<vmem>>, vector<256x128xf32>,
    } else {
    }
    %c0 = arith.constant 0 : index
    %c0_1 = arith.constant 0 : index
    %3 = vector.load %arg8[%c0, %c0_1] : memref<256x128xf32, #tpu.memory_space<vmem>>, vector<256x128xf32>
    %c0_2 = arith.constant 0 : index
    %c0_3 = arith.constant 0 : index
    %4 = vector.load %arg3[%c0_2, %c0_3] : memref<256x27xbf16, #tpu.memory_space<vmem>>, vector<256x27xbf16>
    %c0_4 = arith.constant 0 : index
    %c0_5 = arith.constant 0 : index
    %5 = vector.load %arg4[%c0_4, %c0_5] : memref<27x128xbf16, #tpu.memory_space<vmem>>, vector<27x128xbf16>
    %cst = arith.constant dense<0.000000e+00> : vector<256x128xf32>
    %6 = tpu.matmul %4, %5, %cst {dimension_numbers = #tpu.dot_dimension_numbers<[1], [0], [0], [1], [0, 0, 1, 1], [], []>} : vector<256x27xbf16>, vector<27x128xbf16>, vector<256x128xf32> -> vector<256x128xf32>
    %7 = arith.addf %3, %6 : vector<256x128xf32>
    %c0_6 = arith.constant 0 : index
    %c0_7 = arith.constant 0 : index
    %8 = vector.load %arg8[%c0_6, %c0_7] : memref<256x128xf32, #tpu.memory_space<vmem>>, vector<256x128xf32>
    tpu.vector_store %arg8[%c0_6, %c0_7], %7 {strides = array<i32>} : memref<256x128xf32, #tpu.memory_space<vmem>>, vector<256x128xf32>,
    %c0_i32_8 = arith.constant 0 : i32
    %9 = arith.cmpi eq, %arg2, %c0_i32_8 : i32
    %10 = arith.extui %9 : i1 to i32
    %c0_i32_9 = arith.constant 0 : i32
    %11 = arith.cmpi ne, %10, %c0_i32_9 : i32
    scf.if %11 {
      %c0_10 = arith.constant 0 : index
      %c0_11 = arith.constant 0 : index
      %12 = vector.load %arg8[%c0_10, %c0_11] : memref<256x128xf32, #tpu.memory_space<vmem>>, vector<256x128xf32>
      %13 = arith.truncf %12 : vector<256x128xf32> to vector<256x128xbf16>
      %c0_12 = arith.constant 0 : index
      %c0_13 = arith.constant 0 : index
      %14 = vector.load %arg5[%c0_12, %c0_13] : memref<256x128xbf16, #tpu.memory_space<vmem>>, vector<256x128xbf16>
      tpu.vector_store %arg5[%c0_12, %c0_13], %13 {strides = array<i32>} : memref<256x128xbf16, #tpu.memory_space<vmem>>, vector<256x128xbf16>,
      %cst_14 = arith.constant dense<0.000000e+00> : vector<128xf32>
      %15 = vector.multi_reduction <add>, %12, %cst_14 [0] : vector<256x128xf32> to vector<128xf32>
      %16 = vector.shape_cast %15 : vector<128xf32> to vector<1x128xf32>
      %17 = vector.shape_cast %16 : vector<1x128xf32> to vector<1x1x128xf32>
      %c0_15 = arith.constant 0 : index
      %c0_16 = arith.constant 0 : index
      %c0_17 = arith.constant 0 : index
      %18 = vector.load %arg6[%c0_15, %c0_16, %c0_17] : memref<1x1x128xf32, #tpu.memory_space<vmem>>, vector<1x1x128xf32>
      tpu.vector_store %arg6[%c0_15, %c0_16, %c0_17], %17 {strides = array<i32>} : memref<1x1x128xf32, #tpu.memory_space<vmem>>, vector<1x1x128xf32>,
      %19 = arith.mulf %12, %12 : vector<256x128xf32>
      %cst_18 = arith.constant dense<0.000000e+00> : vector<128xf32>
      %20 = vector.multi_reduction <add>, %19, %cst_18 [0] : vector<256x128xf32> to vector<128xf32>
      %21 = vector.shape_cast %20 : vector<128xf32> to vector<1x128xf32>
      %22 = vector.shape_cast %21 : vector<1x128xf32> to vector<1x1x128xf32>
      %c0_19 = arith.constant 0 : index
      %c0_20 = arith.constant 0 : index
      %c0_21 = arith.constant 0 : index
      %23 = vector.load %arg7[%c0_19, %c0_20, %c0_21] : memref<1x1x128xf32, #tpu.memory_space<vmem>>, vector<1x1x128xf32>
      tpu.vector_store %arg7[%c0_19, %c0_20, %c0_21], %22 {strides = array<i32>} : memref<1x1x128xf32, #tpu.memory_space<vmem>>, vector<1x1x128xf32>,
    } else {
    }
    return
  }
  func.func @transform_0(%arg0: i32, %arg1: i32, %arg2: i32) -> (i32, i32) {
    %c0_i32 = arith.constant 0 : i32
    return %arg0, %arg2 : i32, i32
  }
  func.func @transform_1(%arg0: i32, %arg1: i32, %arg2: i32) -> (i32, i32) {
    %c0_i32 = arith.constant 0 : i32
    return %arg2, %arg1 : i32, i32
  }
  func.func @transform_2(%arg0: i32, %arg1: i32, %arg2: i32) -> (i32, i32) {
    %c0_i32 = arith.constant 0 : i32
    return %arg0, %arg1 : i32, i32
  }
  func.func @transform_3(%arg0: i32, %arg1: i32, %arg2: i32) -> (i32, i32, i32) {
    %c0_i32 = arith.constant 0 : i32
    %c0_i32_0 = arith.constant 0 : i32
    return %arg0, %c0_i32, %arg1 : i32, i32, i32
  }
  func.func @transform_4(%arg0: i32, %arg1: i32, %arg2: i32) -> (i32, i32, i32) {
    %c0_i32 = arith.constant 0 : i32
    %c0_i32_0 = arith.constant 0 : i32
    return %arg0, %c0_i32, %arg1 : i32, i32, i32
  }
}

module attributes {stable_mosaic.version = 11 : i64} {
  func.func @_apply_kernel(%arg0: i32, %arg1: memref<512x128xbf16, #tpu.memory_space<vmem>>, %arg2: memref<1x128xf32, #tpu.memory_space<vmem>>, %arg3: memref<1x128xf32, #tpu.memory_space<vmem>>, %arg4: memref<512x128xbf16, #tpu.memory_space<vmem>>) attributes {dimension_semantics = [#tpu.dimension_semantics<parallel>], iteration_bounds = array<i64: 1>, scalar_prefetch = 0 : i64, scratch_operands = 0 : i64, tpu.core_type = #tpu.core_type<tc>, window_params = [{transform_indices = @transform_0, window_bounds = array<i64: 512, 128>}, {pipeline_mode = #tpu.pipeline_mode<synchronous>, transform_indices = @transform_1, window_bounds = array<i64: 1, 128>}, {pipeline_mode = #tpu.pipeline_mode<synchronous>, transform_indices = @transform_2, window_bounds = array<i64: 1, 128>}, {transform_indices = @transform_3, window_bounds = array<i64: 512, 128>}]} {
    %c0 = arith.constant 0 : index
    %c0_0 = arith.constant 0 : index
    %0 = vector.load %arg1[%c0, %c0_0] : memref<512x128xbf16, #tpu.memory_space<vmem>>, vector<512x128xbf16>
    %1 = arith.extf %0 : vector<512x128xbf16> to vector<512x128xf32>
    %c0_1 = arith.constant 0 : index
    %c0_2 = arith.constant 0 : index
    %2 = vector.load %arg2[%c0_1, %c0_2] : memref<1x128xf32, #tpu.memory_space<vmem>>, vector<1x128xf32>
    %3 = vector.broadcast %2 : vector<1x128xf32> to vector<512x128xf32>
    %4 = arith.mulf %1, %3 : vector<512x128xf32>
    %c0_3 = arith.constant 0 : index
    %c0_4 = arith.constant 0 : index
    %5 = vector.load %arg3[%c0_3, %c0_4] : memref<1x128xf32, #tpu.memory_space<vmem>>, vector<1x128xf32>
    %6 = vector.broadcast %5 : vector<1x128xf32> to vector<512x128xf32>
    %7 = arith.addf %4, %6 : vector<512x128xf32>
    %cst = arith.constant 0.000000e+00 : f32
    %8 = vector.broadcast %cst : f32 to vector<512x128xf32>
    %9 = arith.maximumf %7, %8 : vector<512x128xf32>
    %10 = arith.truncf %9 : vector<512x128xf32> to vector<512x128xbf16>
    %c0_5 = arith.constant 0 : index
    %c0_6 = arith.constant 0 : index
    %11 = vector.load %arg4[%c0_5, %c0_6] : memref<512x128xbf16, #tpu.memory_space<vmem>>, vector<512x128xbf16>
    tpu.vector_store %arg4[%c0_5, %c0_6], %10 {strides = array<i32>} : memref<512x128xbf16, #tpu.memory_space<vmem>>, vector<512x128xbf16>,
    return
  }
  func.func @transform_0(%arg0: i32) -> (i32, i32) {
    %c0_i32 = arith.constant 0 : i32
    %c0_i32_0 = arith.constant 0 : i32
    return %arg0, %c0_i32 : i32, i32
  }
  func.func @transform_1(%arg0: i32) -> (i32, i32) {
    %c0_i32 = arith.constant 0 : i32
    %c0_i32_0 = arith.constant 0 : i32
    %c0_i32_1 = arith.constant 0 : i32
    return %c0_i32, %c0_i32_0 : i32, i32
  }
  func.func @transform_2(%arg0: i32) -> (i32, i32) {
    %c0_i32 = arith.constant 0 : i32
    %c0_i32_0 = arith.constant 0 : i32
    %c0_i32_1 = arith.constant 0 : i32
    return %c0_i32, %c0_i32_0 : i32, i32
  }
  func.func @transform_3(%arg0: i32) -> (i32, i32) {
    %c0_i32 = arith.constant 0 : i32
    %c0_i32_0 = arith.constant 0 : i32
    return %arg0, %c0_i32 : i32, i32
  }
}

module attributes {stable_mosaic.version = 11 : i64} {
  func.func @_apply_kernel(%arg0: i32, %arg1: memref<512x128xbf16, #tpu.memory_space<vmem>>, %arg2: memref<1x128xf32, #tpu.memory_space<vmem>>, %arg3: memref<1x128xf32, #tpu.memory_space<vmem>>, %arg4: memref<512x128xbf16, #tpu.memory_space<vmem>>) attributes {dimension_semantics = [#tpu.dimension_semantics<parallel>], iteration_bounds = array<i64: 1>, scalar_prefetch = 0 : i64, scratch_operands = 0 : i64, tpu.core_type = #tpu.core_type<tc>, window_params = [{transform_indices = @transform_0, window_bounds = array<i64: 512, 128>}, {pipeline_mode = #tpu.pipeline_mode<synchronous>, transform_indices = @transform_1, window_bounds = array<i64: 1, 128>}, {pipeline_mode = #tpu.pipeline_mode<synchronous>, transform_indices = @transform_2, window_bounds = array<i64: 1, 128>}, {transform_indices = @transform_3, window_bounds = array<i64: 512, 128>}]} {
    %c0 = arith.constant 0 : index
    %c0_0 = arith.constant 0 : index
    %0 = vector.load %arg1[%c0, %c0_0] : memref<512x128xbf16, #tpu.memory_space<vmem>>, vector<512x128xbf16>
    %1 = arith.extf %0 : vector<512x128xbf16> to vector<512x128xf32>
    %c0_1 = arith.constant 0 : index
    %c0_2 = arith.constant 0 : index
    %2 = vector.load %arg2[%c0_1, %c0_2] : memref<1x128xf32, #tpu.memory_space<vmem>>, vector<1x128xf32>
    %3 = vector.broadcast %2 : vector<1x128xf32> to vector<512x128xf32>
    %4 = arith.mulf %1, %3 : vector<512x128xf32>
    %c0_3 = arith.constant 0 : index
    %c0_4 = arith.constant 0 : index
    %5 = vector.load %arg3[%c0_3, %c0_4] : memref<1x128xf32, #tpu.memory_space<vmem>>, vector<1x128xf32>
    %6 = vector.broadcast %5 : vector<1x128xf32> to vector<512x128xf32>
    %7 = arith.addf %4, %6 : vector<512x128xf32>
    %cst = arith.constant 0.000000e+00 : f32
    %8 = vector.broadcast %cst : f32 to vector<512x128xf32>
    %9 = arith.maximumf %7, %8 : vector<512x128xf32>
    %10 = arith.truncf %9 : vector<512x128xf32> to vector<512x128xbf16>
    %c0_5 = arith.constant 0 : index
    %c0_6 = arith.constant 0 : index
    %11 = vector.load %arg4[%c0_5, %c0_6] : memref<512x128xbf16, #tpu.memory_space<vmem>>, vector<512x128xbf16>
    tpu.vector_store %arg4[%c0_5, %c0_6], %10 {strides = array<i32>} : memref<512x128xbf16, #tpu.memory_space<vmem>>, vector<512x128xbf16>,
    return
  }
  func.func @transform_0(%arg0: i32) -> (i32, i32) {
    %c0_i32 = arith.constant 0 : i32
    %c0_i32_0 = arith.constant 0 : i32
    return %arg0, %c0_i32 : i32, i32
  }
  func.func @transform_1(%arg0: i32) -> (i32, i32) {
    %c0_i32 = arith.constant 0 : i32
    %c0_i32_0 = arith.constant 0 : i32
    %c0_i32_1 = arith.constant 0 : i32
    return %c0_i32, %c0_i32_0 : i32, i32
  }
  func.func @transform_2(%arg0: i32) -> (i32, i32) {
    %c0_i32 = arith.constant 0 : i32
    %c0_i32_0 = arith.constant 0 : i32
    %c0_i32_1 = arith.constant 0 : i32
    return %c0_i32, %c0_i32_0 : i32, i32
  }
  func.func @transform_3(%arg0: i32) -> (i32, i32) {
    %c0_i32 = arith.constant 0 : i32
    %c0_i32_0 = arith.constant 0 : i32
    return %arg0, %c0_i32 : i32, i32
  }
}

module attributes {stable_mosaic.version = 11 : i64} {
  func.func @_mm_kernel(%arg0: i32, %arg1: i32, %arg2: i32, %arg3: memref<256x384xbf16, #tpu.memory_space<vmem>>, %arg4: memref<384x128xbf16, #tpu.memory_space<vmem>>, %arg5: memref<256x128xbf16, #tpu.memory_space<vmem>>, %arg6: memref<1x1x128xf32, #tpu.memory_space<vmem>>, %arg7: memref<1x1x128xf32, #tpu.memory_space<vmem>>, %arg8: memref<256x128xf32, #tpu.memory_space<vmem>>) attributes {dimension_semantics = [#tpu.dimension_semantics<parallel>, #tpu.dimension_semantics<parallel>, #tpu.dimension_semantics<arbitrary>], iteration_bounds = array<i64: 2, 1, 3>, scalar_prefetch = 0 : i64, scratch_operands = 1 : i64, tpu.core_type = #tpu.core_type<tc>, window_params = [{transform_indices = @transform_0, window_bounds = array<i64: 256, 384>}, {transform_indices = @transform_1, window_bounds = array<i64: 384, 128>}, {transform_indices = @transform_2, window_bounds = array<i64: 256, 128>}, {transform_indices = @transform_3, window_bounds = array<i64: 1, 1, 128>}, {transform_indices = @transform_4, window_bounds = array<i64: 1, 1, 128>}]} {
    %c0_i32 = arith.constant 0 : i32
    %0 = arith.cmpi eq, %arg2, %c0_i32 : i32
    %1 = arith.extui %0 : i1 to i32
    %c0_i32_0 = arith.constant 0 : i32
    %2 = arith.cmpi ne, %1, %c0_i32_0 : i32
    scf.if %2 {
      %cst_9 = arith.constant 0.000000e+00 : f32
      %12 = vector.broadcast %cst_9 : f32 to vector<256x128xf32>
      %c0_10 = arith.constant 0 : index
      %c0_11 = arith.constant 0 : index
      %13 = vector.load %arg8[%c0_10, %c0_11] : memref<256x128xf32, #tpu.memory_space<vmem>>, vector<256x128xf32>
      tpu.vector_store %arg8[%c0_10, %c0_11], %12 {strides = array<i32>} : memref<256x128xf32, #tpu.memory_space<vmem>>, vector<256x128xf32>,
    } else {
    }
    %c0 = arith.constant 0 : index
    %c0_1 = arith.constant 0 : index
    %3 = vector.load %arg8[%c0, %c0_1] : memref<256x128xf32, #tpu.memory_space<vmem>>, vector<256x128xf32>
    %c0_2 = arith.constant 0 : index
    %c0_3 = arith.constant 0 : index
    %4 = vector.load %arg3[%c0_2, %c0_3] : memref<256x384xbf16, #tpu.memory_space<vmem>>, vector<256x384xbf16>
    %c0_4 = arith.constant 0 : index
    %c0_5 = arith.constant 0 : index
    %5 = vector.load %arg4[%c0_4, %c0_5] : memref<384x128xbf16, #tpu.memory_space<vmem>>, vector<384x128xbf16>
    %cst = arith.constant dense<0.000000e+00> : vector<256x128xf32>
    %6 = tpu.matmul %4, %5, %cst {dimension_numbers = #tpu.dot_dimension_numbers<[1], [0], [0], [1], [0, 0, 1, 1], [], []>} : vector<256x384xbf16>, vector<384x128xbf16>, vector<256x128xf32> -> vector<256x128xf32>
    %7 = arith.addf %3, %6 : vector<256x128xf32>
    %c0_6 = arith.constant 0 : index
    %c0_7 = arith.constant 0 : index
    %8 = vector.load %arg8[%c0_6, %c0_7] : memref<256x128xf32, #tpu.memory_space<vmem>>, vector<256x128xf32>
    tpu.vector_store %arg8[%c0_6, %c0_7], %7 {strides = array<i32>} : memref<256x128xf32, #tpu.memory_space<vmem>>, vector<256x128xf32>,
    %c2_i32 = arith.constant 2 : i32
    %9 = arith.cmpi eq, %arg2, %c2_i32 : i32
    %10 = arith.extui %9 : i1 to i32
    %c0_i32_8 = arith.constant 0 : i32
    %11 = arith.cmpi ne, %10, %c0_i32_8 : i32
    scf.if %11 {
      %c0_9 = arith.constant 0 : index
      %c0_10 = arith.constant 0 : index
      %12 = vector.load %arg8[%c0_9, %c0_10] : memref<256x128xf32, #tpu.memory_space<vmem>>, vector<256x128xf32>
      %13 = arith.truncf %12 : vector<256x128xf32> to vector<256x128xbf16>
      %c0_11 = arith.constant 0 : index
      %c0_12 = arith.constant 0 : index
      %14 = vector.load %arg5[%c0_11, %c0_12] : memref<256x128xbf16, #tpu.memory_space<vmem>>, vector<256x128xbf16>
      tpu.vector_store %arg5[%c0_11, %c0_12], %13 {strides = array<i32>} : memref<256x128xbf16, #tpu.memory_space<vmem>>, vector<256x128xbf16>,
      %cst_13 = arith.constant dense<0.000000e+00> : vector<128xf32>
      %15 = vector.multi_reduction <add>, %12, %cst_13 [0] : vector<256x128xf32> to vector<128xf32>
      %16 = vector.shape_cast %15 : vector<128xf32> to vector<1x128xf32>
      %17 = vector.shape_cast %16 : vector<1x128xf32> to vector<1x1x128xf32>
      %c0_14 = arith.constant 0 : index
      %c0_15 = arith.constant 0 : index
      %c0_16 = arith.constant 0 : index
      %18 = vector.load %arg6[%c0_14, %c0_15, %c0_16] : memref<1x1x128xf32, #tpu.memory_space<vmem>>, vector<1x1x128xf32>
      tpu.vector_store %arg6[%c0_14, %c0_15, %c0_16], %17 {strides = array<i32>} : memref<1x1x128xf32, #tpu.memory_space<vmem>>, vector<1x1x128xf32>,
      %19 = arith.mulf %12, %12 : vector<256x128xf32>
      %cst_17 = arith.constant dense<0.000000e+00> : vector<128xf32>
      %20 = vector.multi_reduction <add>, %19, %cst_17 [0] : vector<256x128xf32> to vector<128xf32>
      %21 = vector.shape_cast %20 : vector<128xf32> to vector<1x128xf32>
      %22 = vector.shape_cast %21 : vector<1x128xf32> to vector<1x1x128xf32>
      %c0_18 = arith.constant 0 : index
      %c0_19 = arith.constant 0 : index
      %c0_20 = arith.constant 0 : index
      %23 = vector.load %arg7[%c0_18, %c0_19, %c0_20] : memref<1x1x128xf32, #tpu.memory_space<vmem>>, vector<1x1x128xf32>
      tpu.vector_store %arg7[%c0_18, %c0_19, %c0_20], %22 {strides = array<i32>} : memref<1x1x128xf32, #tpu.memory_space<vmem>>, vector<1x1x128xf32>,
    } else {
    }
    return
  }
  func.func @transform_0(%arg0: i32, %arg1: i32, %arg2: i32) -> (i32, i32) {
    %c0_i32 = arith.constant 0 : i32
    return %arg0, %arg2 : i32, i32
  }
  func.func @transform_1(%arg0: i32, %arg1: i32, %arg2: i32) -> (i32, i32) {
    %c0_i32 = arith.constant 0 : i32
    return %arg2, %arg1 : i32, i32
  }
  func.func @transform_2(%arg0: i32, %arg1: i32, %arg2: i32) -> (i32, i32) {
    %c0_i32 = arith.constant 0 : i32
    return %arg0, %arg1 : i32, i32
  }
  func.func @transform_3(%arg0: i32, %arg1: i32, %arg2: i32) -> (i32, i32, i32) {
    %c0_i32 = arith.constant 0 : i32
    %c0_i32_0 = arith.constant 0 : i32
    return %arg0, %c0_i32, %arg1 : i32, i32, i32
  }
  func.func @transform_4(%arg0: i32, %arg1: i32, %arg2: i32) -> (i32, i32, i32) {
    %c0_i32 = arith.constant 0 : i32
    %c0_i32_0 = arith.constant 0 : i32
    return %arg0, %c0_i32, %arg1 : i32, i32, i32
  }
}

</mosaic_0001>

<bundles_post_ra>
// kernel: _stem_forward.5
= control target key start
LH: loop header
LB: loop body
LE: loop exit
PB: predicated region body
PF: predicated region fallthrough
CT: control target
= control target key end

     0   :  { %s1502_s0 = inlined_call_operand.vmem [shape: bf16[512,128], index: 0, kind: input, shape index: {}]   ;;  %s1503_s1 = inlined_call_operand.vmem [shape: f32[1,128], index: 1, kind: input, shape index: {}]   ;;  %s1504_s2 = inlined_call_operand.vmem [shape: f32[1,128], index: 2, kind: input, shape index: {}]   ;;  %s1505_s3 = inlined_call_operand.vmem [shape: bf16[512,128], index: 3, kind: output, shape index: {}]  }
   0x1   :  { %v803_v0 = vld [vmem:[%s1502_s0] sm:$0xff]   ;;  %v1090_v4 = vld [vmem:[%s1502_s0 + $0x8] sm:$0xff]   ;;  %v1091_v5 = vld [vmem:[%s1502_s0 + $0x10] sm:$0xff]  }
   0x2   :  { %v1178_v1 = vld [vmem:[%s1503_s1] ss:$0 sm:$0xff]  ;;  %v804_v2 = vunpack.c.l.bf16 %v803_v0  ;;  %v805_v3 = vunpack.c.h.bf16 %v803_v0  ;;  %v1092_v6 = vld [vmem:[%s1502_s0 + $0x18] sm:$0xff]   ;;  %v808_v8 = vunpack.c.l.bf16 %v1090_v4  ;;  %v809_v9 = vunpack.c.h.bf16 %v1090_v4  ;;  %v1094_v33 = vld [vmem:[%s1502_s0 + $0x28] sm:$0xff]  }
   0x3   :  { %v1192_v7 = vld [vmem:[%s1504_s2] ss:$0 sm:$0xff]  ;;  %v812_v10 = vunpack.c.l.bf16 %v1091_v5  ;;  %v813_v11 = vunpack.c.h.bf16 %v1091_v5  ;;  %v816_v14 = vunpack.c.l.bf16 %v1092_v6  ;;  %v817_v15 = vunpack.c.h.bf16 %v1092_v6  ;;  %v1095_v38 = vld [vmem:[%s1502_s0 + $0x30] sm:$0xff]   ;;  %v1096_v43 = vld [vmem:[%s1502_s0 + $0x38] sm:$0xff]  }
   0x4   :  { %v149_v12 = vmul.f32 %v804_v2, %v1178_v1  ;;  %v150_v13 = vmul.f32 %v805_v3, %v1178_v1  ;;  %v151_v16 = vmul.f32 %v808_v8, %v1178_v1  ;;  %v152_v17 = vmul.f32 %v809_v9, %v1178_v1  ;;  %v1093_v28 = vld [vmem:[%s1502_s0 + $0x20] sm:$0xff]  }
   0x5   :  { %v153_v18 = vmul.f32 %v812_v10, %v1178_v1  ;;  %v154_v19 = vmul.f32 %v813_v11, %v1178_v1  ;;  %v155_v22 = vmul.f32 %v816_v14, %v1178_v1  ;;  %v156_v23 = vmul.f32 %v817_v15, %v1178_v1  ;;  %v1097_v0 = vld [vmem:[%s1502_s0 + $0x40] sm:$0xff]   ;;  %v1098_v11 = vld [vmem:[%s1502_s0 + $0x48] sm:$0xff]  }
   0x6   :  { %v220_v20 = vadd.f32 %v1192_v7, %v149_v12  ;;  %v221_v21 = vadd.f32 %v1192_v7, %v150_v13  ;;  %v222_v24 = vadd.f32 %v1192_v7, %v151_v16  ;;  %v223_v25 = vadd.f32 %v1192_v7, %v152_v17  ;;  %v1099_v16 = vld [vmem:[%s1502_s0 + $0x50] sm:$0xff]  }
   0x7   :  { %v224_v26 = vadd.f32 %v1192_v7, %v153_v18  ;;  %v225_v27 = vadd.f32 %v1192_v7, %v154_v19  ;;  %v226_v31 = vadd.f32 %v1192_v7, %v155_v22  ;;  %v227_v32 = vadd.f32 %v1192_v7, %v156_v23 }
   0x8   :  { %v284_v29 = vmax.f32 %v220_v20, 0.0  ;;  %v285_v30 = vmax.f32 %v221_v21, 0.0  ;;  %v286_v34 = vmax.f32 %v222_v24, 0.0  ;;  %v287_v35 = vmax.f32 %v223_v25, 0.0  ;;  %v1100_v25 = vld [vmem:[%s1502_s0 + $0x58] sm:$0xff]  }
   0x9   :  { %v288_v36 = vmax.f32 %v224_v26, 0.0  ;;  %v289_v37 = vmax.f32 %v225_v27, 0.0  ;;  %v290_v40 = vmax.f32 %v226_v31, 0.0  ;;  %v291_v41 = vmax.f32 %v227_v32, 0.0 }
   0xa   :  { %v933_v39 = vpack.c.bf16 %v285_v30, %v284_v29  ;;  %v820_v42 = vunpack.c.l.bf16 %v1093_v28  ;;  %v938_v44 = vpack.c.bf16 %v287_v35, %v286_v34  ;;  %v821_v46 = vunpack.c.h.bf16 %v1093_v28 }
   0xb   :  { %v943_v45 = vpack.c.bf16 %v289_v37, %v288_v36  ;;  %v824_v47 = vunpack.c.l.bf16 %v1094_v33  ;;  %v948_v48 = vpack.c.bf16 %v291_v41, %v290_v40  ;;  %v825_v50 = vunpack.c.h.bf16 %v1094_v33 }
   0xc   :  { %934 = vst [vmem:[%s1505_s3] sm:$0xff] %v933_v39   ;;  %v157_v49 = vmul.f32 %v820_v42, %v1178_v1  ;;  %v828_v51 = vunpack.c.l.bf16 %v1095_v38  ;;  %1121 = vst [vmem:[%s1505_s3 + $0x8] sm:$0xff] %v938_v44   ;;  %v158_v52 = vmul.f32 %v821_v46, %v1178_v1  ;;  %v829_v54 = vunpack.c.h.bf16 %v1095_v38  ;;  %v1101_v38 = vld [vmem:[%s1502_s0 + $0x60] sm:$0xff]  }
   0xd   :  { %1122 = vst [vmem:[%s1505_s3 + $0x10] sm:$0xff] %v943_v45   ;;  %v159_v53 = vmul.f32 %v824_v47, %v1178_v1  ;;  %v832_v55 = vunpack.c.l.bf16 %v1096_v43  ;;  %1123 = vst [vmem:[%s1505_s3 + $0x18] sm:$0xff] %v948_v48   ;;  %v160_v57 = vmul.f32 %v825_v50, %v1178_v1  ;;  %v833_v59 = vunpack.c.h.bf16 %v1096_v43 }
   0xe   :  { %v228_v56 = vadd.f32 %v1192_v7, %v157_v49  ;;  %v161_v58 = vmul.f32 %v828_v51, %v1178_v1  ;;  %v229_v60 = vadd.f32 %v1192_v7, %v158_v52  ;;  %v162_v62 = vmul.f32 %v829_v54, %v1178_v1  ;;  %v1102_v51 = vld [vmem:[%s1502_s0 + $0x68] sm:$0xff]  }
   0xf   :  { %v230_v61 = vadd.f32 %v1192_v7, %v159_v53  ;;  %v163_v63 = vmul.f32 %v832_v55, %v1178_v1  ;;  %v231_v3 = vadd.f32 %v1192_v7, %v160_v57  ;;  %v164_v5 = vmul.f32 %v833_v59, %v1178_v1 }
  0x10   :  { %v292_v2 = vmax.f32 %v228_v56, 0.0  ;;  %v232_v4 = vadd.f32 %v1192_v7, %v161_v58  ;;  %v293_v6 = vmax.f32 %v229_v60, 0.0  ;;  %v233_v9 = vadd.f32 %v1192_v7, %v162_v62  ;;  %v1103_v60 = vld [vmem:[%s1502_s0 + $0x70] sm:$0xff]  }
  0x11   :  { %v294_v8 = vmax.f32 %v230_v61, 0.0  ;;  %v234_v10 = vadd.f32 %v1192_v7, %v163_v63  ;;  %v295_v12 = vmax.f32 %v231_v3, 0.0  ;;  %v235_v14 = vadd.f32 %v1192_v7, %v164_v5 }
  0x12   :  { %v296_v13 = vmax.f32 %v232_v4, 0.0  ;;  %v836_v15 = vunpack.c.l.bf16 %v1097_v0  ;;  %v953_v17 = vpack.c.bf16 %v293_v6, %v292_v2  ;;  %v297_v18 = vmax.f32 %v233_v9, 0.0  ;;  %v1104_v2 = vld [vmem:[%s1502_s0 + $0x78] sm:$0xff]  }
  0x13   :  { %v298_v19 = vmax.f32 %v234_v10, 0.0  ;;  %v837_v20 = vunpack.c.h.bf16 %v1097_v0  ;;  %v958_v21 = vpack.c.bf16 %v295_v12, %v294_v8  ;;  %v299_v22 = vmax.f32 %v235_v14, 0.0  ;;  %v1105_v12 = vld [vmem:[%s1502_s0 + $0x80] sm:$0xff]  }
  0x14   :  { %v165_v23 = vmul.f32 %v836_v15, %v1178_v1  ;;  %v840_v24 = vunpack.c.l.bf16 %v1098_v11  ;;  %1124 = vst [vmem:[%s1505_s3 + $0x20] sm:$0xff] %v953_v17   ;;  %v963_v26 = vpack.c.bf16 %v297_v18, %v296_v13  ;;  %v841_v28 = vunpack.c.h.bf16 %v1098_v11 }
  0x15   :  { %v166_v27 = vmul.f32 %v837_v20, %v1178_v1  ;;  %v844_v29 = vunpack.c.l.bf16 %v1099_v16  ;;  %1125 = vst [vmem:[%s1505_s3 + $0x28] sm:$0xff] %v958_v21   ;;  %v968_v30 = vpack.c.bf16 %v299_v22, %v298_v19  ;;  %v845_v33 = vunpack.c.h.bf16 %v1099_v16 }
  0x16   :  { %v236_v31 = vadd.f32 %v1192_v7, %v165_v23  ;;  %v167_v32 = vmul.f32 %v840_v24, %v1178_v1  ;;  %1126 = vst [vmem:[%s1505_s3 + $0x30] sm:$0xff] %v963_v26   ;;  %v168_v35 = vmul.f32 %v841_v28, %v1178_v1  ;;  %v848_v37 = vunpack.c.l.bf16 %v1100_v25 }
  0x17   :  { %v237_v34 = vadd.f32 %v1192_v7, %v166_v27  ;;  %v169_v36 = vmul.f32 %v844_v29, %v1178_v1  ;;  %1127 = vst [vmem:[%s1505_s3 + $0x38] sm:$0xff] %v968_v30   ;;  %v170_v41 = vmul.f32 %v845_v33, %v1178_v1  ;;  %v849_v42 = vunpack.c.h.bf16 %v1100_v25  ;;  %v1106_v29 = vld [vmem:[%s1502_s0 + $0x88] sm:$0xff]  }
  0x18   :  { %v300_v39 = vmax.f32 %v236_v31, 0.0  ;;  %v238_v40 = vadd.f32 %v1192_v7, %v167_v32  ;;  %v239_v44 = vadd.f32 %v1192_v7, %v168_v35  ;;  %v171_v46 = vmul.f32 %v848_v37, %v1178_v1 }
  0x19   :  { %v301_v43 = vmax.f32 %v237_v34, 0.0  ;;  %v240_v45 = vadd.f32 %v1192_v7, %v169_v36  ;;  %v241_v48 = vadd.f32 %v1192_v7, %v170_v41  ;;  %v172_v49 = vmul.f32 %v849_v42, %v1178_v1  ;;  %v1107_v34 = vld [vmem:[%s1502_s0 + $0x90] sm:$0xff]  }
  0x1a   :  { %v302_v47 = vmax.f32 %v238_v40, 0.0  ;;  %v852_v50 = vunpack.c.l.bf16 %v1101_v38  ;;  %v303_v53 = vmax.f32 %v239_v44, 0.0  ;;  %v242_v55 = vadd.f32 %v1192_v7, %v171_v46 }
  0x1b   :  { %v973_v52 = vpack.c.bf16 %v301_v43, %v300_v39  ;;  %v304_v54 = vmax.f32 %v240_v45, 0.0  ;;  %v305_v56 = vmax.f32 %v241_v48, 0.0  ;;  %v243_v57 = vadd.f32 %v1192_v7, %v172_v49  ;;  %v1108_v43 = vld [vmem:[%s1502_s0 + $0x98] sm:$0xff]  }
  0x1c   :  { %v853_v58 = vunpack.c.h.bf16 %v1101_v38  ;;  %v173_v59 = vmul.f32 %v852_v50, %v1178_v1  ;;  %v978_v61 = vpack.c.bf16 %v303_v53, %v302_v47  ;;  %v306_v62 = vmax.f32 %v242_v55, 0.0 }
  0x1d   :  { %1128 = vst [vmem:[%s1505_s3 + $0x40] sm:$0xff] %v973_v52   ;;  %v856_v63 = vunpack.c.l.bf16 %v1102_v51  ;;  %v857_v0 = vunpack.c.h.bf16 %v1102_v51  ;;  %v983_v3 = vpack.c.bf16 %v305_v56, %v304_v54  ;;  %v307_v4 = vmax.f32 %v243_v57, 0.0  ;;  %v1109_v56 = vld [vmem:[%s1502_s0 + $0xa0] sm:$0xff]  }
  0x1e   :  { %v174_v5 = vmul.f32 %v853_v58, %v1178_v1  ;;  %v244_v6 = vadd.f32 %v1192_v7, %v173_v59  ;;  %1129 = vst [vmem:[%s1505_s3 + $0x48] sm:$0xff] %v978_v61   ;;  %v860_v10 = vunpack.c.l.bf16 %v1103_v60  ;;  %v861_v11 = vunpack.c.h.bf16 %v1103_v60 }
  0x1f   :  { %v175_v8 = vmul.f32 %v856_v63, %v1178_v1  ;;  %v176_v9 = vmul.f32 %v857_v0, %v1178_v1  ;;  %1130 = vst [vmem:[%s1505_s3 + $0x50] sm:$0xff] %v983_v3   ;;  %v988_v13 = vpack.c.bf16 %v307_v4, %v306_v62  ;;  %v864_v16 = vunpack.c.l.bf16 %v1104_v2 }
  0x20   :  { %v245_v14 = vadd.f32 %v1192_v7, %v174_v5  ;;  %v308_v15 = vmax.f32 %v244_v6, 0.0  ;;  %v177_v19 = vmul.f32 %v860_v10, %v1178_v1  ;;  %v178_v20 = vmul.f32 %v861_v11, %v1178_v1 }
  0x21   :  { %v246_v17 = vadd.f32 %v1192_v7, %v175_v8  ;;  %v247_v18 = vadd.f32 %v1192_v7, %v176_v9  ;;  %1131 = vst [vmem:[%s1505_s3 + $0x58] sm:$0xff] %v988_v13   ;;  %v865_v22 = vunpack.c.h.bf16 %v1104_v2  ;;  %v179_v23 = vmul.f32 %v864_v16, %v1178_v1  ;;  %v1110_v2 = vld [vmem:[%s1502_s0 + $0xa8] sm:$0xff]   ;;  %v1111_v16 = vld [vmem:[%s1502_s0 + $0xb0] sm:$0xff]  }
  0x22   :  { %v309_v21 = vmax.f32 %v245_v14, 0.0  ;;  %v868_v24 = vunpack.c.l.bf16 %v1105_v12  ;;  %v248_v27 = vadd.f32 %v1192_v7, %v177_v19  ;;  %v249_v28 = vadd.f32 %v1192_v7, %v178_v20 }
  0x23   :  { %v310_v25 = vmax.f32 %v246_v17, 0.0  ;;  %v311_v26 = vmax.f32 %v247_v18, 0.0  ;;  %v180_v31 = vmul.f32 %v865_v22, %v1178_v1  ;;  %v250_v32 = vadd.f32 %v1192_v7, %v179_v23 }
  0x24   :  { %v993_v30 = vpack.c.bf16 %v309_v21, %v308_v15  ;;  %v869_v33 = vunpack.c.h.bf16 %v1105_v12  ;;  %v312_v36 = vmax.f32 %v248_v27, 0.0  ;;  %v313_v37 = vmax.f32 %v249_v28, 0.0  ;;  %v1112_v21 = vld [vmem:[%s1502_s0 + $0xb8] sm:$0xff]  }
  0x25   :  { %v998_v35 = vpack.c.bf16 %v311_v26, %v310_v25  ;;  %v181_v38 = vmul.f32 %v868_v24, %v1178_v1  ;;  %v251_v39 = vadd.f32 %v1192_v7, %v180_v31  ;;  %v314_v40 = vmax.f32 %v250_v32, 0.0 }
  0x26   :  { %1132 = vst [vmem:[%s1505_s3 + $0x60] sm:$0xff] %v993_v30   ;;  %v182_v41 = vmul.f32 %v869_v33, %v1178_v1  ;;  %v872_v42 = vunpack.c.l.bf16 %v1106_v29  ;;  %v1003_v44 = vpack.c.bf16 %v313_v37, %v312_v36  ;;  %v873_v46 = vunpack.c.h.bf16 %v1106_v29 }
  0x27   :  { %1133 = vst [vmem:[%s1505_s3 + $0x68] sm:$0xff] %v998_v35   ;;  %v252_v45 = vadd.f32 %v1192_v7, %v181_v38  ;;  %v876_v47 = vunpack.c.l.bf16 %v1107_v34  ;;  %v315_v48 = vmax.f32 %v251_v39, 0.0  ;;  %v877_v51 = vunpack.c.h.bf16 %v1107_v34  ;;  %v1113_v34 = vld [vmem:[%s1502_s0 + $0xc0] sm:$0xff]  }
  0x28   :  { %v253_v49 = vadd.f32 %v1192_v7, %v182_v41  ;;  %v183_v50 = vmul.f32 %v872_v42, %v1178_v1  ;;  %1134 = vst [vmem:[%s1505_s3 + $0x70] sm:$0xff] %v1003_v44   ;;  %v184_v53 = vmul.f32 %v873_v46, %v1178_v1  ;;  %v880_v55 = vunpack.c.l.bf16 %v1108_v43 }
  0x29   :  { %v316_v52 = vmax.f32 %v252_v45, 0.0  ;;  %v185_v54 = vmul.f32 %v876_v47, %v1178_v1  ;;  %v1008_v57 = vpack.c.bf16 %v315_v48, %v314_v40  ;;  %v186_v60 = vmul.f32 %v877_v51, %v1178_v1  ;;  %v1114_v47 = vld [vmem:[%s1502_s0 + $0xc8] sm:$0xff]  }
  0x2a   :  { %v317_v58 = vmax.f32 %v253_v49, 0.0  ;;  %v254_v59 = vadd.f32 %v1192_v7, %v183_v50  ;;  %v255_v61 = vadd.f32 %v1192_v7, %v184_v53  ;;  %v881_v63 = vunpack.c.h.bf16 %v1108_v43 }
  0x2b   :  { %v256_v62 = vadd.f32 %v1192_v7, %v185_v54  ;;  %v187_v0 = vmul.f32 %v880_v55, %v1178_v1  ;;  %1135 = vst [vmem:[%s1505_s3 + $0x78] sm:$0xff] %v1008_v57   ;;  %v257_v5 = vadd.f32 %v1192_v7, %v186_v60  ;;  %v884_v6 = vunpack.c.l.bf16 %v1109_v56 }
  0x2c   :  { %v1013_v3 = vpack.c.bf16 %v317_v58, %v316_v52  ;;  %v318_v4 = vmax.f32 %v254_v59, 0.0  ;;  %v319_v8 = vmax.f32 %v255_v61, 0.0  ;;  %v188_v10 = vmul.f32 %v881_v63, %v1178_v1  ;;  %v1115_v52 = vld [vmem:[%s1502_s0 + $0xd0] sm:$0xff]   ;;  %v1116_v61 = vld [vmem:[%s1502_s0 + $0xd8] sm:$0xff]  }
  0x2d   :  { %v320_v9 = vmax.f32 %v256_v62, 0.0  ;;  %v258_v11 = vadd.f32 %v1192_v7, %v187_v0  ;;  %v321_v12 = vmax.f32 %v257_v5, 0.0  ;;  %v885_v13 = vunpack.c.h.bf16 %v1109_v56 }
  0x2e   :  { %1136 = vst [vmem:[%s1505_s3 + $0x80] sm:$0xff] %v1013_v3   ;;  %v189_v14 = vmul.f32 %v884_v6, %v1178_v1  ;;  %v888_v15 = vunpack.c.l.bf16 %v1110_v2  ;;  %v1018_v17 = vpack.c.bf16 %v319_v8, %v318_v4  ;;  %v259_v18 = vadd.f32 %v1192_v7, %v188_v10 }
  0x2f   :  { %v322_v19 = vmax.f32 %v258_v11, 0.0  ;;  %v889_v20 = vunpack.c.h.bf16 %v1110_v2  ;;  %v1023_v22 = vpack.c.bf16 %v321_v12, %v320_v9  ;;  %v190_v23 = vmul.f32 %v885_v13, %v1178_v1  ;;  %v1117_v12 = vld [vmem:[%s1502_s0 + $0xe0] sm:$0xff]  }
  0x30   :  { %v260_v24 = vadd.f32 %v1192_v7, %v189_v14  ;;  %v191_v25 = vmul.f32 %v888_v15, %v1178_v1  ;;  %1137 = vst [vmem:[%s1505_s3 + $0x88] sm:$0xff] %v1018_v17   ;;  %v323_v26 = vmax.f32 %v259_v18, 0.0  ;;  %v892_v28 = vunpack.c.l.bf16 %v1111_v16 }
  0x31   :  { %v192_v27 = vmul.f32 %v889_v20, %v1178_v1  ;;  %v893_v29 = vunpack.c.h.bf16 %v1111_v16  ;;  %1138 = vst [vmem:[%s1505_s3 + $0x90] sm:$0xff] %v1023_v22   ;;  %v261_v30 = vadd.f32 %v1192_v7, %v190_v23  ;;  %v896_v33 = vunpack.c.l.bf16 %v1112_v21 }
  0x32   :  { %v324_v31 = vmax.f32 %v260_v24, 0.0  ;;  %v262_v32 = vadd.f32 %v1192_v7, %v191_v25  ;;  %v1028_v35 = vpack.c.bf16 %v323_v26, %v322_v19  ;;  %v193_v37 = vmul.f32 %v892_v28, %v1178_v1 }
  0x33   :  { %v263_v36 = vadd.f32 %v1192_v7, %v192_v27  ;;  %v194_v38 = vmul.f32 %v893_v29, %v1178_v1  ;;  %v325_v39 = vmax.f32 %v261_v30, 0.0  ;;  %v897_v41 = vunpack.c.h.bf16 %v1112_v21  ;;  %v1118_v21 = vld [vmem:[%s1502_s0 + $0xe8] sm:$0xff]  }
  0x34   :  { %v326_v40 = vmax.f32 %v262_v32, 0.0  ;;  %v195_v42 = vmul.f32 %v896_v33, %v1178_v1  ;;  %1139 = vst [vmem:[%s1505_s3 + $0x98] sm:$0xff] %v1028_v35   ;;  %v264_v44 = vadd.f32 %v1192_v7, %v193_v37  ;;  %v900_v46 = vunpack.c.l.bf16 %v1113_v34 }
  0x35   :  { %v327_v43 = vmax.f32 %v263_v36, 0.0  ;;  %v265_v45 = vadd.f32 %v1192_v7, %v194_v38  ;;  %v1033_v48 = vpack.c.bf16 %v325_v39, %v324_v31  ;;  %v196_v49 = vmul.f32 %v897_v41, %v1178_v1  ;;  %v1120_v39 = vld [vmem:[%s1502_s0 + $0xf8] sm:$0xff]  }
  0x36   :  { %v266_v50 = vadd.f32 %v1192_v7, %v195_v42  ;;  %v901_v51 = vunpack.c.h.bf16 %v1113_v34  ;;  %v328_v54 = vmax.f32 %v264_v44, 0.0  ;;  %v197_v56 = vmul.f32 %v900_v46, %v1178_v1  ;;  %v1119_v34 = vld [vmem:[%s1502_s0 + $0xf0] sm:$0xff]  }
  0x37   :  { %v1038_v53 = vpack.c.bf16 %v327_v43, %v326_v40  ;;  %v329_v55 = vmax.f32 %v265_v45, 0.0  ;;  %1140 = vst [vmem:[%s1505_s3 + $0xa0] sm:$0xff] %v1033_v48   ;;  %v267_v57 = vadd.f32 %v1192_v7, %v196_v49  ;;  %v904_v60 = vunpack.c.l.bf16 %v1114_v47 }
  0x38   :  { %v330_v58 = vmax.f32 %v266_v50, 0.0  ;;  %v198_v59 = vmul.f32 %v901_v51, %v1178_v1  ;;  %v268_v63 = vadd.f32 %v1192_v7, %v197_v56  ;;  %v905_v0 = vunpack.c.h.bf16 %v1114_v47 }
  0x39   :  { %1141 = vst [vmem:[%s1505_s3 + $0xa8] sm:$0xff] %v1038_v53   ;;  %v1043_v62 = vpack.c.bf16 %v329_v55, %v328_v54  ;;  %v908_v2 = vunpack.c.l.bf16 %v1115_v52  ;;  %v331_v3 = vmax.f32 %v267_v57, 0.0  ;;  %v199_v5 = vmul.f32 %v904_v60, %v1178_v1 }
  0x3a   :  { %v269_v4 = vadd.f32 %v1192_v7, %v198_v59  ;;  %v909_v6 = vunpack.c.h.bf16 %v1115_v52  ;;  %v332_v8 = vmax.f32 %v268_v63, 0.0  ;;  %v200_v9 = vmul.f32 %v905_v0, %v1178_v1 }
  0x3b   :  { %1142 = vst [vmem:[%s1505_s3 + $0xb0] sm:$0xff] %v1043_v62   ;;  %v201_v10 = vmul.f32 %v908_v2, %v1178_v1  ;;  %v912_v11 = vunpack.c.l.bf16 %v1116_v61  ;;  %v1048_v13 = vpack.c.bf16 %v331_v3, %v330_v58  ;;  %v270_v15 = vadd.f32 %v1192_v7, %v199_v5 }
  0x3c   :  { %v333_v14 = vmax.f32 %v269_v4, 0.0  ;;  %v202_v16 = vmul.f32 %v909_v6, %v1178_v1  ;;  %v271_v17 = vadd.f32 %v1192_v7, %v200_v9  ;;  %v913_v19 = vunpack.c.h.bf16 %v1116_v61 }
  0x3d   :  { %v272_v18 = vadd.f32 %v1192_v7, %v201_v10  ;;  %v203_v20 = vmul.f32 %v912_v11, %v1178_v1  ;;  %1143 = vst [vmem:[%s1505_s3 + $0xb8] sm:$0xff] %v1048_v13   ;;  %v334_v23 = vmax.f32 %v270_v15, 0.0  ;;  %v916_v25 = vunpack.c.l.bf16 %v1117_v12 }
  0x3e   :  { %v1053_v22 = vpack.c.bf16 %v333_v14, %v332_v8  ;;  %v273_v24 = vadd.f32 %v1192_v7, %v202_v16  ;;  %v335_v26 = vmax.f32 %v271_v17, 0.0  ;;  %v204_v28 = vmul.f32 %v913_v19, %v1178_v1 }
  0x3f   :  { %v336_v27 = vmax.f32 %v272_v18, 0.0  ;;  %v274_v29 = vadd.f32 %v1192_v7, %v203_v20  ;;  %v917_v31 = vunpack.c.h.bf16 %v1117_v12  ;;  %v205_v32 = vmul.f32 %v916_v25, %v1178_v1 }
  0x40   :  { %1144 = vst [vmem:[%s1505_s3 + $0xc0] sm:$0xff] %v1053_v22   ;;  %v337_v30 = vmax.f32 %v273_v24, 0.0  ;;  %v920_v33 = vunpack.c.l.bf16 %v1118_v21  ;;  %v1058_v35 = vpack.c.bf16 %v335_v26, %v334_v23  ;;  %v275_v36 = vadd.f32 %v1192_v7, %v204_v28 }
  0x41   :  { %v338_v37 = vmax.f32 %v274_v29, 0.0  ;;  %v921_v38 = vunpack.c.h.bf16 %v1118_v21  ;;  %v206_v41 = vmul.f32 %v917_v31, %v1178_v1  ;;  %v276_v42 = vadd.f32 %v1192_v7, %v205_v32 }
  0x42   :  { %v1063_v40 = vpack.c.bf16 %v337_v30, %v336_v27  ;;  %v207_v43 = vmul.f32 %v920_v33, %v1178_v1  ;;  %1145 = vst [vmem:[%s1505_s3 + $0xc8] sm:$0xff] %v1058_v35   ;;  %v339_v44 = vmax.f32 %v275_v36, 0.0  ;;  %v924_v46 = vunpack.c.l.bf16 %v1119_v34 }
  0x43   :  { %v208_v45 = vmul.f32 %v921_v38, %v1178_v1  ;;  %v925_v47 = vunpack.c.h.bf16 %v1119_v34  ;;  %v277_v48 = vadd.f32 %v1192_v7, %v206_v41  ;;  %v340_v49 = vmax.f32 %v276_v42, 0.0 }
  0x44   :  { %1146 = vst [vmem:[%s1505_s3 + $0xd0] sm:$0xff] %v1063_v40   ;;  %v278_v50 = vadd.f32 %v1192_v7, %v207_v43  ;;  %v928_v51 = vunpack.c.l.bf16 %v1120_v39  ;;  %v1068_v52 = vpack.c.bf16 %v339_v44, %v338_v37  ;;  %v209_v54 = vmul.f32 %v924_v46, %v1178_v1 }
  0x45   :  { %v279_v53 = vadd.f32 %v1192_v7, %v208_v45  ;;  %v210_v55 = vmul.f32 %v925_v47, %v1178_v1  ;;  %v341_v56 = vmax.f32 %v277_v48, 0.0  ;;  %v929_v58 = vunpack.c.h.bf16 %v1120_v39 }
  0x46   :  { %v342_v57 = vmax.f32 %v278_v50, 0.0  ;;  %v211_v59 = vmul.f32 %v928_v51, %v1178_v1  ;;  %1147 = vst [vmem:[%s1505_s3 + $0xd8] sm:$0xff] %v1068_v52   ;;  %v280_v61 = vadd.f32 %v1192_v7, %v209_v54 }
  0x47   :  { %v343_v60 = vmax.f32 %v279_v53, 0.0  ;;  %v281_v62 = vadd.f32 %v1192_v7, %v210_v55  ;;  %v1073_v63 = vpack.c.bf16 %v341_v56, %v340_v49  ;;  %v212_v0 = vmul.f32 %v929_v58, %v1178_v1 }
  0x48   :  { %v282_v2 = vadd.f32 %v1192_v7, %v211_v59  ;;  %v344_v4 = vmax.f32 %v280_v61, 0.0 }
  0x49   :  { %v1078_v3 = vpack.c.bf16 %v343_v60, %v342_v57  ;;  %v345_v5 = vmax.f32 %v281_v62, 0.0  ;;  %1148 = vst [vmem:[%s1505_s3 + $0xe0] sm:$0xff] %v1073_v63   ;;  %v283_v6 = vadd.f32 %v1192_v7, %v212_v0 }
  0x4a   :  { %v346_v8 = vmax.f32 %v282_v2, 0.0 }
  0x4b   :  { %1149 = vst [vmem:[%s1505_s3 + $0xe8] sm:$0xff] %v1078_v3   ;;  %v1083_v9 = vpack.c.bf16 %v345_v5, %v344_v4  ;;  %v347_v10 = vmax.f32 %v283_v6, 0.0 }
  0x4d   :  { %1150 = vst [vmem:[%s1505_s3 + $0xf0] sm:$0xff] %v1083_v9   ;;  %v1088_v1 = vpack.c.bf16 %v347_v10, %v346_v8 }
  0x4f   :  { %1151 = vst [vmem:[%s1505_s3 + $0xf8] sm:$0xff] %v1088_v1  }

// kernel: _stem_forward.4
= control target key start
LH: loop header
LB: loop body
LE: loop exit
PB: predicated region body
PF: predicated region fallthrough
CT: control target
= control target key end

     0   :  { %s1610_s15 = smov 0   ;;  %s1612_s16 = smov 0   ;;  %s1779_s0 = inlined_call_operand.vmem [shape: bf16[512,27], index: 0, kind: input, shape index: {}]   ;;  %s1780_s1 = inlined_call_operand.vmem [shape: bf16[27,128], index: 1, kind: input, shape index: {}]   ;;  %s1781_s2 = inlined_call_operand.vmem [shape: bf16[512,128], index: 2, kind: output, shape index: {0}]   ;;  %s1782_s3 = inlined_call_operand.vmem [shape: f32[2,1,128], index: 3, kind: output, shape index: {1}]   ;;  %s1783_s4 = inlined_call_operand.vmem [shape: f32[2,1,128], index: 4, kind: output, shape index: {2}]  }
   0x1   :  { %s1614_s17 = smov 0  }
   0x2 LB: > { %s34_s18 = sadd.s32 1, %s1578_s16  ;;  %p1259_p0 = scmp.ge.s32.totalorder %s1582_s17, 1  ;;  %s1582_s17 = sphi %s1614_s17, %s15_s17   ;;  %s1578_s16 = sphi %s1612_s16, %s1785_s16   ;;  %s1574_s15 = sphi %s1610_s15, %s1784_s15  }
   0x3   : > { %p36_p1 = scmp.ge.s32.totalorder %s34_s18, 2  ;;  %p214_p2 = scmp.lt.s32.totalorder %s1582_s17, 3 }
   0x5   : > { %s1787_s18 = smov (%p36_p1, %s34_s18), 0  ;;  %p215_p3 = pnand %p1259_p0, %p214_p2 }
   0x6   : > { %v1542_v0 = vld [vmem:[%s1780_s1] sm:$0xff] (!%p215_p3)   ;;  %vm550_vm0 = vcmask (!%p215_p3), 1044480   ;;  %v1543_v1 = vld [vmem:[%s1780_s1 + $0x8] sm:$0x3f] (!%p215_p3)   ;;  %vm551_vm1 = vcmask (!%p215_p3), 1045504   ;;  %s1260_s23 = sshll.u32 (!%p215_p3), %s1574_s15, 5 }
   0x7   : > { %218 = sbr.rel (%p215_p3) target bundleno = 311 (0x137), region = 28  ;;  %1477 = vmatprep.subr.bf16.mxu0 (!%p215_p3), %v1542_v0  ;;  %1513 = vmatprep.subr.bf16.mxu1 (!%p215_p3), %v1542_v0  ;;  %v1584_v2 = vmov (!%p215_p3), 65535   ;;  %p267_p4 = scmp.lt.s32.totalorder (!%p215_p3), %s1260_s23, 63  ;;  %vm501_vm2 = vcmask (!%p215_p3), 220160  }
   0x8   : > { %1478 = vmatpush3.bf16.msra.mxu0 (!%p215_p3), %v1542_v0  ;;  %v552_v3 = vsel (!%p215_p3), %vm550_vm0, 4294967295, %v1584_v2  ;;  %1515 = vmatpush3.bf16.msra.mxu1 (!%p215_p3), %v1542_v0  ;;  %p293_p5 = scmp.lt.s32.totalorder (!%p215_p3), %s1574_s15, 1 }
   0x9   : > { %v553_v4 = vsel (!%p215_p3), %vm551_vm1, %v552_v3, 0 }
   0xa   : > { %v555_v5 = vand.u32 (!%p215_p3), %v1543_v1, %v553_v4 }
   0xc   : > { %1479 = vmatprep.subr.bf16.mxu0 (!%p215_p3), %v555_v5  ;;  %1514 = vmatprep.subr.bf16.mxu1 (!%p215_p3), %v555_v5 }
   0xd   : > { %1480 = vmatpush3.bf16.msra.mxu0 (!%p215_p3), %v555_v5  ;;  %1516 = vmatpush3.bf16.msra.mxu1 (!%p215_p3), %v555_v5 }
   0xe   : > { %s1789_s23 = smov (!%p267_p4, %s1260_s23), 63  ;;  %s1791_s15 = smov (!%p293_p5, %s1574_s15), 1 }
   0xf   : > { %s1261_s24 = sshll.u32 %s1789_s23, 2  ;;  %s298_s7 = scalar_lea.vmem %s1782_s3, %s1791_s15 }
  0x10   : > { %s1645_s27 = scalar_lea.vmem %s1779_s0, %s1261_s24  ;;  %s1684_s30 = scalar_lea.vmem %s1781_s2, %s1261_s24 }
  0x11   : > { %v1544_v6 = vld [vmem:[%s1645_s27] sm:$0xff]   ;;  %v1545_v7 = vld [vmem:[%s1645_s27 + $0x8] sm:$0xff]   ;;  %v1546_v8 = vld [vmem:[%s1645_s27 + $0x10] sm:$0xff]   ;;  %s304_s10 = scalar_lea.vmem %s1783_s4, %s1791_s15 }
  0x12   : > { %1481 = vmatprep.mubr.msk.bf16.mxu0 %vm501_vm2, %v1544_v6  ;;  %v1547_v9 = vld [vmem:[%s1645_s27 + $0x18] sm:$0xff]   ;;  %v1548_v10 = vld [vmem:[%s1645_s27 + $0x20] sm:$0xff]   ;;  %v1553_v12 = vld [vmem:[%s1645_s27 + $0x48] sm:$0xff]  }
  0x13   : > { %1482 = vmatmul.mubr.msk.bf16.vlgmr.msra.gmra.mrb[0].mxu0 %vm501_vm2, %v1545_v7  ;;  %v1552_v11 = vld [vmem:[%s1645_s27 + $0x40] sm:$0xff]   ;;  %v1554_v13 = vld [vmem:[%s1645_s27 + $0x50] sm:$0xff]   ;;  %v1549_v14 = vld [vmem:[%s1645_s27 + $0x28] sm:$0xff]  }
  0x14   : > { %1485 = vmatprep.mubr.msk.bf16.mxu0 %vm501_vm2, %v1546_v8  ;;  %1497 = vmatprep.mubr.msk.bf16.mxu1 %vm501_vm2, %v1552_v11  ;;  %v1555_v15 = vld [vmem:[%s1645_s27 + $0x58] sm:$0xff]   ;;  %v1550_v16 = vld [vmem:[%s1645_s27 + $0x30] sm:$0xff]   ;;  %v1556_v17 = vld [vmem:[%s1645_s27 + $0x60] sm:$0xff]  }
  0x15   : > { %1498 = vmatmul.mubr.msk.bf16.vlgmr.msra.gmra.mrb[0].mxu1 %vm501_vm2, %v1553_v12  ;;  %v1551_v18 = vld [vmem:[%s1645_s27 + $0x38] sm:$0xff]   ;;  %v1557_v19 = vld [vmem:[%s1645_s27 + $0x68] sm:$0xff]   ;;  %v1558_v20 = vld [vmem:[%s1645_s27 + $0x70] sm:$0xff]  }
  0x16   : > { %1501 = vmatprep.mubr.msk.bf16.mxu1 %vm501_vm2, %v1554_v13  ;;  %v1559_v21 = vld [vmem:[%s1645_s27 + $0x78] sm:$0xff]  }
  0x1b   : > { %1486 = vmatmul.mubr.msk.bf16.gmra.mrb[4].mxu0 %vm501_vm2, %v1547_v9 }
  0x1c   : > { %1489 = vmatprep.mubr.msk.bf16.mxu0 %vm501_vm2, %v1548_v10 }
  0x1d   : > { %1502 = vmatmul.mubr.msk.bf16.gmra.mrb[4].mxu1 %vm501_vm2, %v1555_v15 }
  0x1e   : > { %1505 = vmatprep.mubr.msk.bf16.mxu1 %vm501_vm2, %v1556_v17 }
  0x23   : > { %1490 = vmatmul.mubr.msk.bf16.gmra.mrb[8].mxu0 %vm501_vm2, %v1549_v14 }
  0x24   : > { %1493 = vmatprep.mubr.msk.bf16.mxu0 %vm501_vm2, %v1550_v16 }
  0x25   : > { %1506 = vmatmul.mubr.msk.bf16.gmra.mrb[8].mxu1 %vm501_vm2, %v1557_v19 }
  0x26   : > { %1509 = vmatprep.mubr.msk.bf16.mxu1 %vm501_vm2, %v1558_v20 }
  0x2b   : > { %1494 = vmatmul.mubr.msk.bf16.gmra.mrb[12].mxu0 %vm501_vm2, %v1551_v18 }
  0x2d   : > { %1510 = vmatmul.mubr.msk.bf16.gmra.mrb[12].mxu1 %vm501_vm2, %v1559_v21 }
  0xe6   : > { %v1483_v22 = vpop.f32.mrb[0].mxu0 }
  0xe7   : > { %v591_v23 = vpop.f32.mrb[1].mxu0  ;;  %v1017_v31 = vmul.f32 %v1483_v22, %v1483_v22 }
  0xe8   : > { %v1484_v24 = vpop.f32.mrb[2].mxu0  ;;  %v1015_v27 = vmul.f32 %v591_v23, %v591_v23  ;;  %v1688_v38 = vpop.f32.mrb[0].mxu1 }
  0xe9   : > { %v1372_v25 = vpack.c.bf16 %v1484_v24, %v1483_v22  ;;  %v594_v26 = vpop.f32.mrb[3].mxu0  ;;  %v1018_v34 = vmul.f32 %v1484_v24, %v1484_v24  ;;  %v1690_v40 = vpop.f32.mrb[1].mxu1 }
  0xea   : > { %v1367_v28 = vpack.c.bf16 %v594_v26, %v591_v23  ;;  %v977_v29 = vadd.f32 %v594_v26, %v591_v23  ;;  %v1016_v30 = vmul.f32 %v594_v26, %v594_v26  ;;  %v1692_v45 = vpop.f32.mrb[2].mxu1 }
  0xeb   : > { %1444 = vst [vmem:[%s1684_s30 + $0x8] sm:$0xff] %v1372_v25   ;;  %v1412_v48 = vpack.c.bf16 %v1692_v45, %v1688_v38  ;;  %v1696_v49 = vpop.f32.mrb[3].mxu1 }
  0xec   : > { %1368 = vst [vmem:[%s1684_s30] sm:$0xff] %v1367_v28   ;;  %v978_v32 = vadd.f32 %v1483_v22, %v977_v29  ;;  %v1047_v33 = vadd.f32 %v1016_v30, %v1015_v27  ;;  %v1407_v54 = vpack.c.bf16 %v1696_v49, %v1690_v40 }
  0xed   : > { %1452 = vst [vmem:[%s1684_s30 + $0x48] sm:$0xff] %v1412_v48   ;;  %v1031_v48 = vmul.f32 %v1690_v40, %v1690_v40 }
  0xee   : > { %v1048_v35 = vadd.f32 %v1047_v33, %v1017_v31  ;;  %v1487_v36 = vpop.f32.mrb[4].mxu0  ;;  %v979_v37 = vadd.f32 %v1484_v24, %v978_v32  ;;  %1451 = vst [vmem:[%s1684_s30 + $0x40] sm:$0xff] %v1407_v54  }
  0xef   : > { %v607_v39 = vpop.f32.mrb[5].mxu0  ;;  %v1021_v55 = vmul.f32 %v1487_v36, %v1487_v36 }
  0xf0   : > { %v980_v41 = vadd.f32 %v979_v37, %v607_v39  ;;  %v1019_v42 = vmul.f32 %v607_v39, %v607_v39  ;;  %v1049_v43 = vadd.f32 %v1048_v35, %v1018_v34  ;;  %v1488_v44 = vpop.f32.mrb[6].mxu0  ;;  %v1704_v62 = vpop.f32.mrb[4].mxu1 }
  0xf1   : > { %v1382_v46 = vpack.c.bf16 %v1488_v44, %v1487_v36  ;;  %v610_v47 = vpop.f32.mrb[7].mxu0  ;;  %v1022_v58 = vmul.f32 %v1488_v44, %v1488_v44  ;;  %v1706_v0 = vpop.f32.mrb[5].mxu1 }
  0xf2   : > { %v1050_v50 = vadd.f32 %v1049_v43, %v1019_v42  ;;  %v1377_v51 = vpack.c.bf16 %v610_v47, %v607_v39  ;;  %v981_v52 = vadd.f32 %v980_v41, %v610_v47  ;;  %v1020_v53 = vmul.f32 %v610_v47, %v610_v47  ;;  %v1708_v5 = vpop.f32.mrb[6].mxu1 }
  0xf3   : > { %1446 = vst [vmem:[%s1684_s30 + $0x18] sm:$0xff] %v1382_v46   ;;  %v1422_v8 = vpack.c.bf16 %v1708_v5, %v1704_v62  ;;  %v1712_v9 = vpop.f32.mrb[7].mxu1 }
  0xf4   : > { %1445 = vst [vmem:[%s1684_s30 + $0x10] sm:$0xff] %v1377_v51   ;;  %v982_v56 = vadd.f32 %v1487_v36, %v981_v52  ;;  %v1051_v57 = vadd.f32 %v1050_v50, %v1020_v53  ;;  %v1417_v14 = vpack.c.bf16 %v1712_v9, %v1706_v0 }
  0xf5   : > { %1454 = vst [vmem:[%s1684_s30 + $0x58] sm:$0xff] %v1422_v8  }
  0xf6   : > { %v1052_v59 = vadd.f32 %v1051_v57, %v1021_v55  ;;  %v1491_v60 = vpop.f32.mrb[8].mxu0  ;;  %v983_v61 = vadd.f32 %v1488_v44, %v982_v56  ;;  %1453 = vst [vmem:[%s1684_s30 + $0x50] sm:$0xff] %v1417_v14  }
  0xf7   : > { %v623_v63 = vpop.f32.mrb[9].mxu0  ;;  %v1025_v15 = vmul.f32 %v1491_v60, %v1491_v60 }
  0xf8   : > { %v984_v1 = vadd.f32 %v983_v61, %v623_v63  ;;  %v1023_v2 = vmul.f32 %v623_v63, %v623_v63  ;;  %v1053_v3 = vadd.f32 %v1052_v59, %v1022_v58  ;;  %v1492_v4 = vpop.f32.mrb[10].mxu0  ;;  %v1720_v22 = vpop.f32.mrb[8].mxu1  ;;  %v1032_v59 = vmul.f32 %v1696_v49, %v1696_v49 }
  0xf9   : > { %v1392_v6 = vpack.c.bf16 %v1492_v4, %v1491_v60  ;;  %v626_v7 = vpop.f32.mrb[11].mxu0  ;;  %v1026_v18 = vmul.f32 %v1492_v4, %v1492_v4  ;;  %v687_v24 = vpop.f32.mrb[9].mxu1  ;;  %v1033_v61 = vmul.f32 %v1688_v38, %v1688_v38 }
  0xfa   : > { %v1054_v10 = vadd.f32 %v1053_v3, %v1023_v2  ;;  %v1387_v11 = vpack.c.bf16 %v626_v7, %v623_v63  ;;  %v985_v12 = vadd.f32 %v984_v1, %v626_v7  ;;  %v1024_v13 = vmul.f32 %v626_v7, %v626_v7  ;;  %v1722_v29 = vpop.f32.mrb[10].mxu1 }
  0xfb   : > { %1448 = vst [vmem:[%s1684_s30 + $0x28] sm:$0xff] %v1392_v6   ;;  %v1432_v32 = vpack.c.bf16 %v1722_v29, %v1720_v22  ;;  %v690_v33 = vpop.f32.mrb[11].mxu1 }
  0xfc   : > { %1447 = vst [vmem:[%s1684_s30 + $0x20] sm:$0xff] %v1387_v11   ;;  %v986_v16 = vadd.f32 %v1491_v60, %v985_v12  ;;  %v1055_v17 = vadd.f32 %v1054_v10, %v1024_v13  ;;  %v1427_v39 = vpack.c.bf16 %v690_v33, %v687_v24  ;;  %v1037_v10 = vmul.f32 %v1704_v62, %v1704_v62 }
  0xfd   : > { %1456 = vst [vmem:[%s1684_s30 + $0x68] sm:$0xff] %v1432_v32  }
  0xfe   : > { %v1056_v19 = vadd.f32 %v1055_v17, %v1025_v15  ;;  %v1495_v20 = vpop.f32.mrb[12].mxu0  ;;  %v987_v21 = vadd.f32 %v1492_v4, %v986_v16  ;;  %1455 = vst [vmem:[%s1684_s30 + $0x60] sm:$0xff] %v1427_v39   ;;  %v1035_v4 = vmul.f32 %v1706_v0, %v1706_v0 }
  0xff   : > { %v639_v23 = vpop.f32.mrb[13].mxu0  ;;  %v1029_v41 = vmul.f32 %v1495_v20, %v1495_v20 }
 0x100   : > { %v988_v25 = vadd.f32 %v987_v21, %v639_v23  ;;  %v1027_v26 = vmul.f32 %v639_v23, %v639_v23  ;;  %v1057_v27 = vadd.f32 %v1056_v19, %v1026_v18  ;;  %v1496_v28 = vpop.f32.mrb[14].mxu0  ;;  %v1511_v50 = vpop.f32.mrb[12].mxu1  ;;  %v1040_v19 = vmul.f32 %v690_v33, %v690_v33 }
 0x101   : > { %v1402_v30 = vpack.c.bf16 %v1496_v28, %v1495_v20  ;;  %v642_v31 = vpop.f32.mrb[15].mxu0  ;;  %v1030_v44 = vmul.f32 %v1496_v28, %v1496_v28  ;;  %v703_v51 = vpop.f32.mrb[13].mxu1 }
 0x102   : > { %v1058_v34 = vadd.f32 %v1057_v27, %v1027_v26  ;;  %v1397_v35 = vpack.c.bf16 %v642_v31, %v639_v23  ;;  %v989_v36 = vadd.f32 %v988_v25, %v642_v31  ;;  %v1028_v37 = vmul.f32 %v642_v31, %v642_v31  ;;  %v1512_v54 = vpop.f32.mrb[14].mxu1 }
 0x103   : > { %1450 = vst [vmem:[%s1684_s30 + $0x38] sm:$0xff] %v1402_v30   ;;  %v1442_v55 = vpack.c.bf16 %v1512_v54, %v1511_v50  ;;  %v706_v56 = vpop.f32.mrb[15].mxu1  ;;  %v1045_v31 = vmul.f32 %v1511_v50, %v1511_v50 }
 0x104   : > { %1449 = vst [vmem:[%s1684_s30 + $0x30] sm:$0xff] %v1397_v35   ;;  %v990_v42 = vadd.f32 %v1495_v20, %v989_v36  ;;  %v1059_v43 = vadd.f32 %v1058_v34, %v1028_v37  ;;  %v1437_v60 = vpack.c.bf16 %v706_v56, %v703_v51  ;;  %v1044_v30 = vmul.f32 %v706_v56, %v706_v56 }
 0x105   : > { %1458 = vst [vmem:[%s1684_s30 + $0x78] sm:$0xff] %v1442_v55   ;;  %v1046_v34 = vmul.f32 %v1512_v54, %v1512_v54 }
 0x106   : > { %v1060_v46 = vadd.f32 %v1059_v43, %v1029_v41  ;;  %v991_v47 = vadd.f32 %v1496_v28, %v990_v42  ;;  %1457 = vst [vmem:[%s1684_s30 + $0x70] sm:$0xff] %v1437_v60  }
 0x108   : > { %v992_v52 = vadd.f32 %v991_v47, %v1690_v40  ;;  %v1061_v53 = vadd.f32 %v1060_v46, %v1030_v44  ;;  %v1034_v40 = vmul.f32 %v1692_v45, %v1692_v45 }
 0x10a   : > { %v1062_v57 = vadd.f32 %v1061_v53, %v1031_v48  ;;  %v993_v58 = vadd.f32 %v992_v52, %v1696_v49 }
 0x10c   : > { %v994_v63 = vadd.f32 %v1688_v38, %v993_v58  ;;  %v1063_v1 = vadd.f32 %v1062_v57, %v1032_v59  ;;  %v1036_v38 = vmul.f32 %v1712_v9, %v1712_v9 }
 0x10e   : > { %v1064_v2 = vadd.f32 %v1063_v1, %v1033_v61  ;;  %v995_v3 = vadd.f32 %v1692_v45, %v994_v63  ;;  %v1038_v45 = vmul.f32 %v1708_v5, %v1708_v5 }
 0x110   : > { %v996_v49 = vadd.f32 %v995_v3, %v1706_v0  ;;  %v1065_v6 = vadd.f32 %v1064_v2, %v1034_v40  ;;  %v1039_v0 = vmul.f32 %v687_v24, %v687_v24 }
 0x112   : > { %v1066_v7 = vadd.f32 %v1065_v6, %v1035_v4  ;;  %v997_v8 = vadd.f32 %v996_v49, %v1712_v9  ;;  %v1041_v9 = vmul.f32 %v1720_v22, %v1720_v22 }
 0x114   : > { %v998_v11 = vadd.f32 %v1704_v62, %v997_v8  ;;  %v1067_v12 = vadd.f32 %v1066_v7, %v1036_v38  ;;  %v1042_v62 = vmul.f32 %v1722_v29, %v1722_v29 }
 0x116   : > { %v1068_v13 = vadd.f32 %v1067_v12, %v1037_v10  ;;  %v999_v14 = vadd.f32 %v1708_v5, %v998_v11  ;;  %v1043_v5 = vmul.f32 %v703_v51, %v703_v51 }
 0x118   : > { %v1000_v15 = vadd.f32 %v999_v14, %v687_v24  ;;  %v1069_v16 = vadd.f32 %v1068_v13, %v1038_v45 }
 0x11a   : > { %v1070_v17 = vadd.f32 %v1069_v16, %v1039_v0  ;;  %v1001_v18 = vadd.f32 %v1000_v15, %v690_v33 }
 0x11c   : > { %v1002_v20 = vadd.f32 %v1720_v22, %v1001_v18  ;;  %v1071_v21 = vadd.f32 %v1070_v17, %v1040_v19 }
 0x11e   : > { %v1072_v23 = vadd.f32 %v1071_v21, %v1041_v9  ;;  %v1003_v25 = vadd.f32 %v1722_v29, %v1002_v20 }
 0x120   : > { %v1004_v26 = vadd.f32 %v1003_v25, %v703_v51  ;;  %v1073_v24 = vadd.f32 %v1072_v23, %v1042_v62 }
 0x122   : > { %v1074_v27 = vadd.f32 %v1073_v24, %v1043_v5  ;;  %v1005_v28 = vadd.f32 %v1004_v26, %v706_v56 }
 0x124   : > { %v1006_v32 = vadd.f32 %v1511_v50, %v1005_v28  ;;  %v1075_v33 = vadd.f32 %v1074_v27, %v1044_v30 }
 0x126   : > { %v1007_v22 = vadd.f32 %v1512_v54, %v1006_v32  ;;  %v1076_v35 = vadd.f32 %v1075_v33, %v1045_v31 }
 0x128   : > { %v1008_v36 = vrot.slane %v1007_v22, 4  ;;  %v1077_v37 = vadd.f32 %v1076_v35, %v1046_v34 }
 0x12a   : > { %v1009_v39 = vadd.f32 %v1008_v36, %v1007_v22  ;;  %v1078_v41 = vrot.slane %v1077_v37, 4 }
 0x12c   : > { %v1010_v42 = vrot.slane %v1009_v39, 2  ;;  %v1079_v29 = vadd.f32 %v1078_v41, %v1077_v37 }
 0x12e   : > { %v1011_v43 = vadd.f32 %v1010_v42, %v1009_v39  ;;  %v1080_v44 = vrot.slane %v1079_v29, 2 }
 0x130   : > { %v1012_v46 = vrot.slane %v1011_v43, 1  ;;  %v1081_v47 = vadd.f32 %v1080_v44, %v1079_v29 }
 0x132   : > { %v1013_v48 = vadd.f32 %v1012_v46, %v1011_v43  ;;  %v1082_v50 = vrot.slane %v1081_v47, 1 }
 0x134   : > { %1014 = vst [vmem:[%s298_s7] sm:$0x1] %v1013_v48  ;;  %v1083_v51 = vadd.f32 %v1082_v50, %v1081_v47 }
 0x136   : > { %1084 = vst [vmem:[%s304_s10] sm:$0x1] %v1083_v51 }
 0x137 PF: > { %s15_s17 = sadd.s32 1, %s1582_s17   ;;  %s1784_s15 = smov %s1578_s16 }
 0x138   : > { %p12_p6 = scmp.ge.s32.totalorder %s15_s17, 4   ;;  %s1785_s16 = smov %s1787_s18 }
 0x13a   :  { %14 = sbr.rel (!%p12_p6) target bundleno = 2 (0x2), region = 93 }

// kernel: _stem_forward.7
= control target key start
LH: loop header
LB: loop body
LE: loop exit
PB: predicated region body
PF: predicated region fallthrough
CT: control target
= control target key end

     0   :  { %s1461_s0 = inlined_call_operand.vmem [shape: bf16[512,128], index: 0, kind: input, shape index: {}]   ;;  %s1462_s1 = inlined_call_operand.vmem [shape: f32[1,128], index: 1, kind: input, shape index: {}]   ;;  %s1463_s2 = inlined_call_operand.vmem [shape: f32[1,128], index: 2, kind: input, shape index: {}]   ;;  %s1464_s3 = inlined_call_operand.hbm [shape: bf16[512,128], index: 3, kind: output, shape index: {}]  }
   0x1   :  { %v816_v0 = vld [vmem:[%s1461_s0] sm:$0xff]   ;;  %v1103_v4 = vld [vmem:[%s1461_s0 + $0x8] sm:$0xff]   ;;  %v1104_v5 = vld [vmem:[%s1461_s0 + $0x10] sm:$0xff]  }
   0x2   :  { %v1221_v1 = vld [vmem:[%s1462_s1] ss:$0 sm:$0xff]  ;;  %v817_v2 = vunpack.c.l.bf16 %v816_v0  ;;  %v818_v3 = vunpack.c.h.bf16 %v816_v0  ;;  %v1105_v6 = vld [vmem:[%s1461_s0 + $0x18] sm:$0xff]   ;;  %v821_v8 = vunpack.c.l.bf16 %v1103_v4  ;;  %v822_v9 = vunpack.c.h.bf16 %v1103_v4  ;;  %v1107_v33 = vld [vmem:[%s1461_s0 + $0x28] sm:$0xff]  }
   0x3   :  { %v1235_v7 = vld [vmem:[%s1463_s2] ss:$0 sm:$0xff]  ;;  %v825_v10 = vunpack.c.l.bf16 %v1104_v5  ;;  %v826_v11 = vunpack.c.h.bf16 %v1104_v5  ;;  %v829_v14 = vunpack.c.l.bf16 %v1105_v6  ;;  %v830_v15 = vunpack.c.h.bf16 %v1105_v6  ;;  %v1108_v38 = vld [vmem:[%s1461_s0 + $0x30] sm:$0xff]   ;;  %v1109_v43 = vld [vmem:[%s1461_s0 + $0x38] sm:$0xff]  }
   0x4   :  { %v150_v12 = vmul.f32 %v817_v2, %v1221_v1  ;;  %v151_v13 = vmul.f32 %v818_v3, %v1221_v1  ;;  %v152_v16 = vmul.f32 %v821_v8, %v1221_v1  ;;  %v153_v17 = vmul.f32 %v822_v9, %v1221_v1  ;;  %v1106_v28 = vld [vmem:[%s1461_s0 + $0x20] sm:$0xff]  }
   0x5   :  { %v154_v18 = vmul.f32 %v825_v10, %v1221_v1  ;;  %v155_v19 = vmul.f32 %v826_v11, %v1221_v1  ;;  %v156_v22 = vmul.f32 %v829_v14, %v1221_v1  ;;  %v157_v23 = vmul.f32 %v830_v15, %v1221_v1 }
   0x6   :  { %v221_v20 = vadd.f32 %v1235_v7, %v150_v12  ;;  %v222_v21 = vadd.f32 %v1235_v7, %v151_v13  ;;  %v223_v24 = vadd.f32 %v1235_v7, %v152_v16  ;;  %v224_v25 = vadd.f32 %v1235_v7, %v153_v17 }
   0x7   :  { %v225_v26 = vadd.f32 %v1235_v7, %v154_v18  ;;  %v226_v27 = vadd.f32 %v1235_v7, %v155_v19  ;;  %v227_v31 = vadd.f32 %v1235_v7, %v156_v22  ;;  %v228_v32 = vadd.f32 %v1235_v7, %v157_v23 }
   0x8   :  { %v285_v29 = vmax.f32 %v221_v20, 0.0  ;;  %v286_v30 = vmax.f32 %v222_v21, 0.0  ;;  %v287_v34 = vmax.f32 %v223_v24, 0.0  ;;  %v288_v35 = vmax.f32 %v224_v25, 0.0 }
   0x9   :  { %v289_v36 = vmax.f32 %v225_v26, 0.0  ;;  %v290_v37 = vmax.f32 %v226_v27, 0.0  ;;  %v291_v40 = vmax.f32 %v227_v31, 0.0  ;;  %v292_v41 = vmax.f32 %v228_v32, 0.0 }
   0xa   :  { %v946_v39 = vpack.c.bf16 %v286_v30, %v285_v29  ;;  %v833_v42 = vunpack.c.l.bf16 %v1106_v28  ;;  %v951_v44 = vpack.c.bf16 %v288_v35, %v287_v34  ;;  %v834_v46 = vunpack.c.h.bf16 %v1106_v28 }
   0xb   :  { %v956_v45 = vpack.c.bf16 %v290_v37, %v289_v36  ;;  %v837_v47 = vunpack.c.l.bf16 %v1107_v33  ;;  %v961_v48 = vpack.c.bf16 %v292_v41, %v291_v40  ;;  %v838_v50 = vunpack.c.h.bf16 %v1107_v33 }
   0xc   :  { %947 = vst [vmem:[#allocation2] sm:$0xff] %v946_v39   ;;  %v158_v49 = vmul.f32 %v833_v42, %v1221_v1  ;;  %v841_v51 = vunpack.c.l.bf16 %v1108_v38 }
   0xd   :  { %8 = vsyncpa [#allocation3], 0  ;;  %1134 = vst [vmem:[#allocation2 + $0x8] sm:$0xff] %v951_v44   ;;  %v159_v52 = vmul.f32 %v834_v46, %v1221_v1  ;;  %v160_v53 = vmul.f32 %v837_v47, %v1221_v1  ;;  %v842_v54 = vunpack.c.h.bf16 %v1108_v38  ;;  %v845_v55 = vunpack.c.l.bf16 %v1109_v43  ;;  %v1110_v0 = vld [vmem:[%s1461_s0 + $0x40] sm:$0xff]   ;;  %v1111_v11 = vld [vmem:[%s1461_s0 + $0x48] sm:$0xff]  }
   0xe   :  { %1135 = vst [vmem:[#allocation2 + $0x10] sm:$0xff] %v956_v45   ;;  %1136 = vst [vmem:[#allocation2 + $0x18] sm:$0xff] %v961_v48   ;;  %v229_v56 = vadd.f32 %v1235_v7, %v158_v49  ;;  %v161_v57 = vmul.f32 %v838_v50, %v1221_v1  ;;  %v162_v58 = vmul.f32 %v841_v51, %v1221_v1  ;;  %v846_v59 = vunpack.c.h.bf16 %v1109_v43  ;;  %v1112_v16 = vld [vmem:[%s1461_s0 + $0x50] sm:$0xff]   ;;  %v1113_v25 = vld [vmem:[%s1461_s0 + $0x58] sm:$0xff]  }
   0xf   :  { %v230_v60 = vadd.f32 %v1235_v7, %v159_v52  ;;  %v231_v61 = vadd.f32 %v1235_v7, %v160_v53  ;;  %v163_v62 = vmul.f32 %v842_v54, %v1221_v1  ;;  %v164_v63 = vmul.f32 %v845_v55, %v1221_v1  ;;  %v1114_v38 = vld [vmem:[%s1461_s0 + $0x60] sm:$0xff]   ;;  %v1115_v51 = vld [vmem:[%s1461_s0 + $0x68] sm:$0xff]  }
  0x10   :  { %v293_v2 = vmax.f32 %v229_v56, 0.0  ;;  %v232_v3 = vadd.f32 %v1235_v7, %v161_v57  ;;  %v233_v4 = vadd.f32 %v1235_v7, %v162_v58  ;;  %v165_v5 = vmul.f32 %v846_v59, %v1221_v1 }
  0x11   :  { %v294_v6 = vmax.f32 %v230_v60, 0.0  ;;  %v295_v8 = vmax.f32 %v231_v61, 0.0  ;;  %v234_v9 = vadd.f32 %v1235_v7, %v163_v62  ;;  %v235_v10 = vadd.f32 %v1235_v7, %v164_v63  ;;  %v1116_v60 = vld [vmem:[%s1461_s0 + $0x70] sm:$0xff]  }
  0x12   :  { %v296_v12 = vmax.f32 %v232_v3, 0.0  ;;  %v297_v13 = vmax.f32 %v233_v4, 0.0  ;;  %v236_v14 = vadd.f32 %v1235_v7, %v165_v5  ;;  %v849_v15 = vunpack.c.l.bf16 %v1110_v0 }
  0x13   :  { %v966_v17 = vpack.c.bf16 %v294_v6, %v293_v2  ;;  %v298_v18 = vmax.f32 %v234_v9, 0.0  ;;  %v299_v19 = vmax.f32 %v235_v10, 0.0  ;;  %v850_v20 = vunpack.c.h.bf16 %v1110_v0  ;;  %v1117_v2 = vld [vmem:[%s1461_s0 + $0x78] sm:$0xff]  }
  0x14   :  { %v971_v21 = vpack.c.bf16 %v296_v12, %v295_v8  ;;  %v300_v22 = vmax.f32 %v236_v14, 0.0  ;;  %v166_v23 = vmul.f32 %v849_v15, %v1221_v1  ;;  %v853_v24 = vunpack.c.l.bf16 %v1111_v11  ;;  %v1118_v12 = vld [vmem:[%s1461_s0 + $0x80] sm:$0xff]  }
  0x15   :  { %1137 = vst [vmem:[#allocation2 + $0x20] sm:$0xff] %v966_v17   ;;  %v976_v26 = vpack.c.bf16 %v298_v18, %v297_v13  ;;  %v167_v27 = vmul.f32 %v850_v20, %v1221_v1  ;;  %v854_v28 = vunpack.c.h.bf16 %v1111_v11  ;;  %v857_v29 = vunpack.c.l.bf16 %v1112_v16 }
  0x16   :  { %1138 = vst [vmem:[#allocation2 + $0x28] sm:$0xff] %v971_v21   ;;  %v981_v30 = vpack.c.bf16 %v300_v22, %v299_v19  ;;  %v237_v31 = vadd.f32 %v1235_v7, %v166_v23  ;;  %v168_v32 = vmul.f32 %v853_v24, %v1221_v1  ;;  %v858_v33 = vunpack.c.h.bf16 %v1112_v16 }
  0x17   :  { %1139 = vst [vmem:[#allocation2 + $0x30] sm:$0xff] %v976_v26   ;;  %v238_v34 = vadd.f32 %v1235_v7, %v167_v27  ;;  %v169_v35 = vmul.f32 %v854_v28, %v1221_v1  ;;  %v170_v36 = vmul.f32 %v857_v29, %v1221_v1  ;;  %v861_v37 = vunpack.c.l.bf16 %v1113_v25  ;;  %v1119_v29 = vld [vmem:[%s1461_s0 + $0x88] sm:$0xff]  }
  0x18   :  { %1140 = vst [vmem:[#allocation2 + $0x38] sm:$0xff] %v981_v30   ;;  %v301_v39 = vmax.f32 %v237_v31, 0.0  ;;  %v239_v40 = vadd.f32 %v1235_v7, %v168_v32  ;;  %v171_v41 = vmul.f32 %v858_v33, %v1221_v1  ;;  %v862_v42 = vunpack.c.h.bf16 %v1113_v25 }
  0x19   :  { %v302_v43 = vmax.f32 %v238_v34, 0.0  ;;  %v240_v44 = vadd.f32 %v1235_v7, %v169_v35  ;;  %v241_v45 = vadd.f32 %v1235_v7, %v170_v36  ;;  %v172_v46 = vmul.f32 %v861_v37, %v1221_v1  ;;  %v1120_v34 = vld [vmem:[%s1461_s0 + $0x90] sm:$0xff]  }
  0x1a   :  { %v303_v47 = vmax.f32 %v239_v40, 0.0  ;;  %v242_v48 = vadd.f32 %v1235_v7, %v171_v41  ;;  %v173_v49 = vmul.f32 %v862_v42, %v1221_v1  ;;  %v865_v50 = vunpack.c.l.bf16 %v1114_v38 }
  0x1b   :  { %v986_v52 = vpack.c.bf16 %v302_v43, %v301_v39  ;;  %v304_v53 = vmax.f32 %v240_v44, 0.0  ;;  %v305_v54 = vmax.f32 %v241_v45, 0.0  ;;  %v243_v55 = vadd.f32 %v1235_v7, %v172_v46  ;;  %v1121_v43 = vld [vmem:[%s1461_s0 + $0x98] sm:$0xff]  }
  0x1c   :  { %v306_v56 = vmax.f32 %v242_v48, 0.0  ;;  %v244_v57 = vadd.f32 %v1235_v7, %v173_v49  ;;  %v866_v58 = vunpack.c.h.bf16 %v1114_v38  ;;  %v174_v59 = vmul.f32 %v865_v50, %v1221_v1 }
  0x1d   :  { %1141 = vst [vmem:[#allocation2 + $0x40] sm:$0xff] %v986_v52   ;;  %v991_v61 = vpack.c.bf16 %v304_v53, %v303_v47  ;;  %v307_v62 = vmax.f32 %v243_v55, 0.0  ;;  %v869_v63 = vunpack.c.l.bf16 %v1115_v51  ;;  %v870_v0 = vunpack.c.h.bf16 %v1115_v51 }
  0x1e   :  { %v996_v3 = vpack.c.bf16 %v306_v56, %v305_v54  ;;  %v308_v4 = vmax.f32 %v244_v57, 0.0  ;;  %v175_v5 = vmul.f32 %v866_v58, %v1221_v1  ;;  %v245_v6 = vadd.f32 %v1235_v7, %v174_v59  ;;  %v1122_v56 = vld [vmem:[%s1461_s0 + $0xa0] sm:$0xff]  }
  0x1f   :  { %1142 = vst [vmem:[#allocation2 + $0x48] sm:$0xff] %v991_v61   ;;  %v176_v8 = vmul.f32 %v869_v63, %v1221_v1  ;;  %v177_v9 = vmul.f32 %v870_v0, %v1221_v1  ;;  %v873_v10 = vunpack.c.l.bf16 %v1116_v60  ;;  %v874_v11 = vunpack.c.h.bf16 %v1116_v60 }
  0x20   :  { %1143 = vst [vmem:[#allocation2 + $0x50] sm:$0xff] %v996_v3   ;;  %v1001_v13 = vpack.c.bf16 %v308_v4, %v307_v62  ;;  %v246_v14 = vadd.f32 %v1235_v7, %v175_v5  ;;  %v309_v15 = vmax.f32 %v245_v6, 0.0  ;;  %v877_v16 = vunpack.c.l.bf16 %v1117_v2 }
  0x21   :  { %v247_v17 = vadd.f32 %v1235_v7, %v176_v8  ;;  %v248_v18 = vadd.f32 %v1235_v7, %v177_v9  ;;  %v178_v19 = vmul.f32 %v873_v10, %v1221_v1  ;;  %v179_v20 = vmul.f32 %v874_v11, %v1221_v1 }
  0x22   :  { %1144 = vst [vmem:[#allocation2 + $0x58] sm:$0xff] %v1001_v13   ;;  %v310_v21 = vmax.f32 %v246_v14, 0.0  ;;  %v878_v22 = vunpack.c.h.bf16 %v1117_v2  ;;  %v180_v23 = vmul.f32 %v877_v16, %v1221_v1  ;;  %v881_v24 = vunpack.c.l.bf16 %v1118_v12  ;;  %v1123_v2 = vld [vmem:[%s1461_s0 + $0xa8] sm:$0xff]   ;;  %v1124_v16 = vld [vmem:[%s1461_s0 + $0xb0] sm:$0xff]  }
  0x23   :  { %v311_v25 = vmax.f32 %v247_v17, 0.0  ;;  %v312_v26 = vmax.f32 %v248_v18, 0.0  ;;  %v249_v27 = vadd.f32 %v1235_v7, %v178_v19  ;;  %v250_v28 = vadd.f32 %v1235_v7, %v179_v20 }
  0x24   :  { %v1006_v30 = vpack.c.bf16 %v310_v21, %v309_v15  ;;  %v181_v31 = vmul.f32 %v878_v22, %v1221_v1  ;;  %v251_v32 = vadd.f32 %v1235_v7, %v180_v23  ;;  %v882_v33 = vunpack.c.h.bf16 %v1118_v12  ;;  %v1125_v21 = vld [vmem:[%s1461_s0 + $0xb8] sm:$0xff]  }
  0x25   :  { %v1011_v35 = vpack.c.bf16 %v312_v26, %v311_v25  ;;  %v313_v36 = vmax.f32 %v249_v27, 0.0  ;;  %v314_v37 = vmax.f32 %v250_v28, 0.0  ;;  %v182_v38 = vmul.f32 %v881_v24, %v1221_v1 }
  0x26   :  { %1145 = vst [vmem:[#allocation2 + $0x60] sm:$0xff] %v1006_v30   ;;  %v252_v39 = vadd.f32 %v1235_v7, %v181_v31  ;;  %v315_v40 = vmax.f32 %v251_v32, 0.0  ;;  %v183_v41 = vmul.f32 %v882_v33, %v1221_v1  ;;  %v885_v42 = vunpack.c.l.bf16 %v1119_v29 }
  0x27   :  { %1146 = vst [vmem:[#allocation2 + $0x68] sm:$0xff] %v1011_v35   ;;  %v1016_v44 = vpack.c.bf16 %v314_v37, %v313_v36  ;;  %v253_v45 = vadd.f32 %v1235_v7, %v182_v38  ;;  %v886_v46 = vunpack.c.h.bf16 %v1119_v29  ;;  %v889_v47 = vunpack.c.l.bf16 %v1120_v34 }
  0x28   :  { %v316_v48 = vmax.f32 %v252_v39, 0.0  ;;  %v254_v49 = vadd.f32 %v1235_v7, %v183_v41  ;;  %v184_v50 = vmul.f32 %v885_v42, %v1221_v1  ;;  %v890_v51 = vunpack.c.h.bf16 %v1120_v34  ;;  %v1126_v34 = vld [vmem:[%s1461_s0 + $0xc0] sm:$0xff]  }
  0x29   :  { %1147 = vst [vmem:[#allocation2 + $0x70] sm:$0xff] %v1016_v44   ;;  %v317_v52 = vmax.f32 %v253_v45, 0.0  ;;  %v185_v53 = vmul.f32 %v886_v46, %v1221_v1  ;;  %v186_v54 = vmul.f32 %v889_v47, %v1221_v1  ;;  %v893_v55 = vunpack.c.l.bf16 %v1121_v43  ;;  %v1127_v47 = vld [vmem:[%s1461_s0 + $0xc8] sm:$0xff]  }
  0x2a   :  { %v1021_v57 = vpack.c.bf16 %v316_v48, %v315_v40  ;;  %v318_v58 = vmax.f32 %v254_v49, 0.0  ;;  %v255_v59 = vadd.f32 %v1235_v7, %v184_v50  ;;  %v187_v60 = vmul.f32 %v890_v51, %v1221_v1 }
  0x2b   :  { %v256_v61 = vadd.f32 %v1235_v7, %v185_v53  ;;  %v257_v62 = vadd.f32 %v1235_v7, %v186_v54  ;;  %v894_v63 = vunpack.c.h.bf16 %v1121_v43  ;;  %v188_v0 = vmul.f32 %v893_v55, %v1221_v1 }
  0x2c   :  { %1148 = vst [vmem:[#allocation2 + $0x78] sm:$0xff] %v1021_v57   ;;  %v1026_v3 = vpack.c.bf16 %v318_v58, %v317_v52  ;;  %v319_v4 = vmax.f32 %v255_v59, 0.0  ;;  %v258_v5 = vadd.f32 %v1235_v7, %v187_v60  ;;  %v897_v6 = vunpack.c.l.bf16 %v1122_v56  ;;  %v1128_v52 = vld [vmem:[%s1461_s0 + $0xd0] sm:$0xff]  }
  0x2d   :  { %v320_v8 = vmax.f32 %v256_v61, 0.0  ;;  %v321_v9 = vmax.f32 %v257_v62, 0.0  ;;  %v189_v10 = vmul.f32 %v894_v63, %v1221_v1  ;;  %v259_v11 = vadd.f32 %v1235_v7, %v188_v0  ;;  %v1129_v61 = vld [vmem:[%s1461_s0 + $0xd8] sm:$0xff]  }
  0x2e   :  { %1149 = vst [vmem:[#allocation2 + $0x80] sm:$0xff] %v1026_v3   ;;  %v322_v12 = vmax.f32 %v258_v5, 0.0  ;;  %v898_v13 = vunpack.c.h.bf16 %v1122_v56  ;;  %v190_v14 = vmul.f32 %v897_v6, %v1221_v1  ;;  %v901_v15 = vunpack.c.l.bf16 %v1123_v2 }
  0x2f   :  { %v1031_v17 = vpack.c.bf16 %v320_v8, %v319_v4  ;;  %v260_v18 = vadd.f32 %v1235_v7, %v189_v10  ;;  %v323_v19 = vmax.f32 %v259_v11, 0.0  ;;  %v902_v20 = vunpack.c.h.bf16 %v1123_v2 }
  0x30   :  { %v1036_v22 = vpack.c.bf16 %v322_v12, %v321_v9  ;;  %v191_v23 = vmul.f32 %v898_v13, %v1221_v1  ;;  %v261_v24 = vadd.f32 %v1235_v7, %v190_v14  ;;  %v192_v25 = vmul.f32 %v901_v15, %v1221_v1  ;;  %v1130_v12 = vld [vmem:[%s1461_s0 + $0xe0] sm:$0xff]  }
  0x31   :  { %1150 = vst [vmem:[#allocation2 + $0x88] sm:$0xff] %v1031_v17   ;;  %v324_v26 = vmax.f32 %v260_v18, 0.0  ;;  %v193_v27 = vmul.f32 %v902_v20, %v1221_v1  ;;  %v905_v28 = vunpack.c.l.bf16 %v1124_v16  ;;  %v906_v29 = vunpack.c.h.bf16 %v1124_v16 }
  0x32   :  { %1151 = vst [vmem:[#allocation2 + $0x90] sm:$0xff] %v1036_v22   ;;  %v262_v30 = vadd.f32 %v1235_v7, %v191_v23  ;;  %v325_v31 = vmax.f32 %v261_v24, 0.0  ;;  %v263_v32 = vadd.f32 %v1235_v7, %v192_v25  ;;  %v909_v33 = vunpack.c.l.bf16 %v1125_v21 }
  0x33   :  { %v1041_v35 = vpack.c.bf16 %v324_v26, %v323_v19  ;;  %v264_v36 = vadd.f32 %v1235_v7, %v193_v27  ;;  %v194_v37 = vmul.f32 %v905_v28, %v1221_v1  ;;  %v195_v38 = vmul.f32 %v906_v29, %v1221_v1 }
  0x34   :  { %v326_v39 = vmax.f32 %v262_v30, 0.0  ;;  %v327_v40 = vmax.f32 %v263_v32, 0.0  ;;  %v910_v41 = vunpack.c.h.bf16 %v1125_v21  ;;  %v196_v42 = vmul.f32 %v909_v33, %v1221_v1  ;;  %v1131_v21 = vld [vmem:[%s1461_s0 + $0xe8] sm:$0xff]  }
  0x35   :  { %1152 = vst [vmem:[#allocation2 + $0x98] sm:$0xff] %v1041_v35   ;;  %v328_v43 = vmax.f32 %v264_v36, 0.0  ;;  %v265_v44 = vadd.f32 %v1235_v7, %v194_v37  ;;  %v266_v45 = vadd.f32 %v1235_v7, %v195_v38  ;;  %v913_v46 = vunpack.c.l.bf16 %v1126_v34 }
  0x36   :  { %v1046_v48 = vpack.c.bf16 %v326_v39, %v325_v31  ;;  %v197_v49 = vmul.f32 %v910_v41, %v1221_v1  ;;  %v267_v50 = vadd.f32 %v1235_v7, %v196_v42  ;;  %v914_v51 = vunpack.c.h.bf16 %v1126_v34  ;;  %v1132_v34 = vld [vmem:[%s1461_s0 + $0xf0] sm:$0xff]   ;;  %v1133_v39 = vld [vmem:[%s1461_s0 + $0xf8] sm:$0xff]   ;;  %s1192_s0 = smov [#allocation2]  }
  0x37   :  { %v1051_v53 = vpack.c.bf16 %v328_v43, %v327_v40  ;;  %v329_v54 = vmax.f32 %v265_v44, 0.0  ;;  %v330_v55 = vmax.f32 %v266_v45, 0.0  ;;  %v198_v56 = vmul.f32 %v913_v46, %v1221_v1  ;;  %s674_s22 = sshll.u32 %s1192_s0, 4  ;;  %s675_s22 = int_to_ptr.vmem [resolvable:$true] %s674_s22 }
  0x38   :  { %1153 = vst [vmem:[#allocation2 + $0xa0] sm:$0xff] %v1046_v48   ;;  %v268_v57 = vadd.f32 %v1235_v7, %v197_v49  ;;  %v331_v58 = vmax.f32 %v267_v50, 0.0  ;;  %v199_v59 = vmul.f32 %v914_v51, %v1221_v1  ;;  %v917_v60 = vunpack.c.l.bf16 %v1127_v47  ;;  %s1168_s23 = scalar_lea.vmem %s675_s22, 4096  ;;  %p1173_p1 = scmp.lt.s32.totalorder %s675_s22, %s675_s22 }
  0x39   :  { %1154 = vst [vmem:[#allocation2 + $0xa8] sm:$0xff] %v1051_v53   ;;  %v1056_v62 = vpack.c.bf16 %v330_v55, %v329_v54  ;;  %v269_v63 = vadd.f32 %v1235_v7, %v198_v56  ;;  %v918_v0 = vunpack.c.h.bf16 %v1127_v47  ;;  %v921_v2 = vunpack.c.l.bf16 %v1128_v52  ;;  %p1169_p0 = scmp.ne.s32.totalorder %s675_s22, %s1168_s23  ;;  %p1174_p2 = scmp.lt.s32.totalorder %s1168_s23, %s1168_s23 }
  0x3a   :  { %v332_v3 = vmax.f32 %v268_v57, 0.0  ;;  %v270_v4 = vadd.f32 %v1235_v7, %v199_v59  ;;  %v200_v5 = vmul.f32 %v917_v60, %v1221_v1  ;;  %v922_v6 = vunpack.c.h.bf16 %v1128_v52 }
  0x3b   :  { %1155 = vst [vmem:[#allocation2 + $0xb0] sm:$0xff] %v1056_v62   ;;  %v333_v8 = vmax.f32 %v269_v63, 0.0  ;;  %v201_v9 = vmul.f32 %v918_v0, %v1221_v1  ;;  %v202_v10 = vmul.f32 %v921_v2, %v1221_v1  ;;  %v925_v11 = vunpack.c.l.bf16 %v1129_v61  ;;  %p1175_p3 = por %p1174_p2, %p1173_p1 }
  0x3c   :  { %v1061_v13 = vpack.c.bf16 %v332_v3, %v331_v58  ;;  %v334_v14 = vmax.f32 %v270_v4, 0.0  ;;  %v271_v15 = vadd.f32 %v1235_v7, %v200_v5  ;;  %v203_v16 = vmul.f32 %v922_v6, %v1221_v1 }
  0x3d   :  { %v272_v17 = vadd.f32 %v1235_v7, %v201_v9  ;;  %v273_v18 = vadd.f32 %v1235_v7, %v202_v10  ;;  %v926_v19 = vunpack.c.h.bf16 %v1129_v61  ;;  %v204_v20 = vmul.f32 %v925_v11, %v1221_v1  ;;  %p1176_p4 = pnand %p1175_p3, %p1169_p0 }
  0x3e   :  { %1156 = vst [vmem:[#allocation2 + $0xb8] sm:$0xff] %v1061_v13   ;;  %v1066_v22 = vpack.c.bf16 %v334_v14, %v333_v8  ;;  %v335_v23 = vmax.f32 %v271_v15, 0.0  ;;  %v274_v24 = vadd.f32 %v1235_v7, %v203_v16  ;;  %v929_v25 = vunpack.c.l.bf16 %v1130_v12 }
  0x3f   :  { %v336_v26 = vmax.f32 %v272_v17, 0.0  ;;  %v337_v27 = vmax.f32 %v273_v18, 0.0  ;;  %v205_v28 = vmul.f32 %v926_v19, %v1221_v1  ;;  %v275_v29 = vadd.f32 %v1235_v7, %v204_v20 }
  0x40   :  { %1157 = vst [vmem:[#allocation2 + $0xc0] sm:$0xff] %v1066_v22   ;;  %v338_v30 = vmax.f32 %v274_v24, 0.0  ;;  %v930_v31 = vunpack.c.h.bf16 %v1130_v12  ;;  %v206_v32 = vmul.f32 %v929_v25, %v1221_v1  ;;  %v933_v33 = vunpack.c.l.bf16 %v1131_v21 }
  0x41   :  { %v1071_v35 = vpack.c.bf16 %v336_v26, %v335_v23  ;;  %v276_v36 = vadd.f32 %v1235_v7, %v205_v28  ;;  %v339_v37 = vmax.f32 %v275_v29, 0.0  ;;  %v934_v38 = vunpack.c.h.bf16 %v1131_v21 }
  0x42   :  { %v1076_v40 = vpack.c.bf16 %v338_v30, %v337_v27  ;;  %v207_v41 = vmul.f32 %v930_v31, %v1221_v1  ;;  %v277_v42 = vadd.f32 %v1235_v7, %v206_v32  ;;  %v208_v43 = vmul.f32 %v933_v33, %v1221_v1 }
  0x43   :  { %1158 = vst [vmem:[#allocation2 + $0xc8] sm:$0xff] %v1071_v35   ;;  %v340_v44 = vmax.f32 %v276_v36, 0.0  ;;  %v209_v45 = vmul.f32 %v934_v38, %v1221_v1  ;;  %v937_v46 = vunpack.c.l.bf16 %v1132_v34  ;;  %v938_v47 = vunpack.c.h.bf16 %v1132_v34 }
  0x44   :  { %1159 = vst [vmem:[#allocation2 + $0xd0] sm:$0xff] %v1076_v40   ;;  %v278_v48 = vadd.f32 %v1235_v7, %v207_v41  ;;  %v341_v49 = vmax.f32 %v277_v42, 0.0  ;;  %v279_v50 = vadd.f32 %v1235_v7, %v208_v43  ;;  %v941_v51 = vunpack.c.l.bf16 %v1133_v39 }
  0x45   :  { %v1081_v52 = vpack.c.bf16 %v340_v44, %v339_v37  ;;  %v280_v53 = vadd.f32 %v1235_v7, %v209_v45  ;;  %v210_v54 = vmul.f32 %v937_v46, %v1221_v1  ;;  %v211_v55 = vmul.f32 %v938_v47, %v1221_v1 }
  0x46   :  { %v342_v56 = vmax.f32 %v278_v48, 0.0  ;;  %v343_v57 = vmax.f32 %v279_v50, 0.0  ;;  %v942_v58 = vunpack.c.h.bf16 %v1133_v39  ;;  %v212_v59 = vmul.f32 %v941_v51, %v1221_v1 }
  0x47   :  { %1160 = vst [vmem:[#allocation2 + $0xd8] sm:$0xff] %v1081_v52   ;;  %v344_v60 = vmax.f32 %v280_v53, 0.0  ;;  %v281_v61 = vadd.f32 %v1235_v7, %v210_v54  ;;  %v282_v62 = vadd.f32 %v1235_v7, %v211_v55 }
  0x48   :  { %v1086_v63 = vpack.c.bf16 %v342_v56, %v341_v49  ;;  %v213_v0 = vmul.f32 %v942_v58, %v1221_v1  ;;  %v283_v2 = vadd.f32 %v1235_v7, %v212_v59 }
  0x49   :  { %v1091_v3 = vpack.c.bf16 %v344_v60, %v343_v57  ;;  %v345_v4 = vmax.f32 %v281_v61, 0.0  ;;  %v346_v5 = vmax.f32 %v282_v62, 0.0 }
  0x4a   :  { %1161 = vst [vmem:[#allocation2 + $0xe0] sm:$0xff] %v1086_v63   ;;  %v284_v6 = vadd.f32 %v1235_v7, %v213_v0  ;;  %v347_v8 = vmax.f32 %v283_v2, 0.0 }
  0x4b   :  { %1162 = vst [vmem:[#allocation2 + $0xe8] sm:$0xff] %v1091_v3   ;;  %v1096_v9 = vpack.c.bf16 %v346_v5, %v345_v4 }
  0x4c   :  { %v348_v10 = vmax.f32 %v284_v6, 0.0 }
  0x4d   :  { %1163 = vst [vmem:[#allocation2 + $0xf0] sm:$0xff] %v1096_v9  }
  0x4e   :  { %v1101_v11 = vpack.c.bf16 %v348_v10, %v347_v8 }
  0x50   :  { %1164 = vst [vmem:[#allocation2 + $0xf8] sm:$0xff] %v1101_v11  }
  0x51   :  { %1179 = shalt.err (!%p1176_p4)
}
  0x52   :  { %s1180_s24 = scalar_lea.hbm %s1464_s3, 4096 }
  0x53   :  { %p1181_p5 = scmp.ne.s32.totalorder %s1464_s3, %s1180_s24  ;;  %p1184_p6 = scmp.lt.u32.totalorder %s1180_s24, %s1464_s3 }
  0x55   :  { %p1186_p7 = pnand %p1184_p6, %p1181_p5 }
  0x57   :  { %1189 = shalt.err (!%p1186_p7)
}
  0x58   :  { %s1193_s29 = smov 64   ;;  %s1194_s30 = smov 4  }
  0x59   :  { %680 = dma.vmem_to_hbm [thread:$0]  %s675_s22, 4096, %s1464_s3, [#allocation3], %s1193_s29, %s1193_s29, %s1194_s30  }
  0x5a   :  { %1190 = dma.done.wait [#allocation3], 4096  }
  0x5b   :  { %1191 = vsyncadd [#allocation3], 4294963200 }
  0x5c   :  { %684 = vsyncpa [#allocation3], 1 }

// kernel: _stem_forward.6
= control target key start
LH: loop header
LB: loop body
LE: loop exit
PB: predicated region body
PF: predicated region fallthrough
CT: control target
= control target key end

     0   :  { %s2644_s15 = smov 0   ;;  %s2646_s16 = smov 0   ;;  %s3154_s0 = inlined_call_operand.vmem [shape: bf16[512,1152], index: 0, kind: input, shape index: {}]   ;;  %s3155_s1 = inlined_call_operand.vmem [shape: bf16[1152,128], index: 1, kind: input, shape index: {}]   ;;  %s3156_s2 = inlined_call_operand.vmem [shape: bf16[512,128], index: 2, kind: output, shape index: {0}]   ;;  %s3157_s3 = inlined_call_operand.vmem [shape: f32[2,1,128], index: 3, kind: output, shape index: {1}]   ;;  %s3158_s4 = inlined_call_operand.vmem [shape: f32[2,1,128], index: 4, kind: output, shape index: {2}]  }
   0x1   :  { %s2648_s17 = smov 0   ;;  %s2650_s18 = smov 0  }
   0x2   :  { %s2652_s19 = smov 0   ;;  %s2654_s20 = smov 0  }
   0x3   :  { %s2656_s21 = smov 0  }
   0x4 LB: > { %s27_s22 = sadd.s32 1, %s2608_s19  ;;  %s34_s23 = sadd.s32 1, %s2612_s20  ;;  %s2616_s21 = sphi %s2656_s21, %s15_s21   ;;  %s2612_s20 = sphi %s2654_s20, %s3164_s20   ;;  %s2608_s19 = sphi %s2652_s19, %s3163_s19   ;;  %s2604_s18 = sphi %s2650_s18, %s3162_s18   ;;  %s2600_s17 = sphi %s2648_s17, %s3161_s17   ;;  %s2596_s16 = sphi %s2646_s16, %s3160_s16   ;;  %s2592_s15 = sphi %s2644_s15, %s3159_s15  }
   0x5   : > { %p28_p0 = scmp.ge.s32.totalorder %s27_s22, 3  ;;  %p50_p1 = scmp.ne.s32.totalorder %s2596_s16, %s2592_s15 }
   0x6   : > { %p51_p2 = scmp.eq.s32.totalorder %s2616_s21, 0  ;;  %s43_s27 = sadd.s32 1, %s2596_s16 }
   0x7   : > { %s3166_s22 = smov (%p28_p0, %s27_s22), 0  ;;  %s3168_s23 = smov (!%p28_p0, %s34_s23), %s2612_s20 }
   0x8   : > { %p52_p3 = por %p51_p2, %p50_p1  ;;  %p36_p4 = scmp.ge.s32.totalorder %s3168_s23, 2 }
   0x9   : > { %s39_s24 = ssub.s32 %s2608_s19, %s3166_s22  ;;  %p1907_p6 = scmp.ge.s32.totalorder %s2616_s21, 6 }
   0xa   : > { %s3170_s23 = smov (%p36_p4, %s3168_s23), 0 }
   0xb   : > { %s38_s25 = ssub.s32 %s2612_s20, %s3170_s23  ;;  %188 = sbr.rel (%p1907_p6) target bundleno = 64 (0x40), region = 16 }
   0xc   : > { %s40_s26 = sor.u32 %s39_s24, %s38_s25 }
   0xd   : > { %p41_p5 = scmp.eq.s32.totalorder %s40_s26, 0 }
   0xf   : > { %s2695_s28 = scalar_select %p41_p5, %s2596_s16, %s43_s27  }
  0x12   : > { %191 = sbr.rel (!%p52_p3) target bundleno = 64 (0x40), region = 20  ;;  %s193_s29 = sand.u32 (%p52_p3), 1, %s2596_s16  }
  0x13   : > { %s197_s30 = smul.u32 (%p52_p3), 3, %s2608_s19 }
  0x14   : > { %s2414_s5 = smul.u32 (%p52_p3), 384, %s193_s29 }
  0x15   : > { %s2415_s6 = smul.u32 (%p52_p3), 288, %s2612_s20 }
  0x16   : > { %s2709_s12 = scalar_lea.vmem (%p52_p3), [#allocation3], %s2414_s5 }
  0x17   : > { %s199_s7 = sadd.s32 (%p52_p3), %s2415_s6, %s197_s30 }
  0x18   : > { %s1910_s8 = sshll.u32 (%p52_p3), %s199_s7, 2 }
  0x19   : > { %s2704_s11 = scalar_lea.vmem %s3154_s0, %s1910_s8 }
  0x1a   : > { %v216_v0 = vld [vmem:[%s2704_s11] sm:$0xff]  ;;  %v220_v2 = vld [vmem:[%s2704_s11 + $0x48] sm:$0xff]  ;;  %v224_v4 = vld [vmem:[%s2704_s11 + $0x90] sm:$0xff] }
  0x1b   : > { %v218_v1 = vld [vmem:[%s2704_s11 + $0x24] sm:$0xff]  ;;  %217 = vst [vmem:[%s2709_s12] sm:$0xff] %v216_v0  ;;  %221 = vst [vmem:[%s2709_s12 + $0x18] sm:$0xff] %v220_v2  ;;  %v222_v3 = vld [vmem:[%s2704_s11 + $0x6c] sm:$0xff] }
  0x1c   : > { %219 = vst [vmem:[%s2709_s12 + $0xc] sm:$0xff] %v218_v1  ;;  %v226_v5 = vld [vmem:[%s2704_s11 + $0xb4] sm:$0xff]  ;;  %223 = vst [vmem:[%s2709_s12 + $0x24] sm:$0xff] %v222_v3  ;;  %v230_v7 = vld [vmem:[%s2704_s11 + $0xfc] sm:$0xff] }
  0x1d   : > { %225 = vst [vmem:[%s2709_s12 + $0x30] sm:$0xff] %v224_v4  ;;  %227 = vst [vmem:[%s2709_s12 + $0x3c] sm:$0xff] %v226_v5  ;;  %v228_v6 = vld [vmem:[%s2704_s11 + $0xd8] sm:$0xff]  ;;  %v232_v8 = vld [vmem:[%s2704_s11 + $0x120] sm:$0xff] }
  0x1e   : > { %229 = vst [vmem:[%s2709_s12 + $0x48] sm:$0xff] %v228_v6  ;;  %231 = vst [vmem:[%s2709_s12 + $0x54] sm:$0xff] %v230_v7  ;;  %v234_v9 = vld [vmem:[%s2704_s11 + $0x144] sm:$0xff]  ;;  %v238_v11 = vld [vmem:[%s2704_s11 + $0x18c] sm:$0xff] }
  0x1f   : > { %233 = vst [vmem:[%s2709_s12 + $0x60] sm:$0xff] %v232_v8  ;;  %v236_v10 = vld [vmem:[%s2704_s11 + $0x168] sm:$0xff]  ;;  %235 = vst [vmem:[%s2709_s12 + $0x6c] sm:$0xff] %v234_v9  ;;  %v240_v12 = vld [vmem:[%s2704_s11 + $0x1b0] sm:$0xff] }
  0x20   : > { %237 = vst [vmem:[%s2709_s12 + $0x78] sm:$0xff] %v236_v10  ;;  %239 = vst [vmem:[%s2709_s12 + $0x84] sm:$0xff] %v238_v11  ;;  %v242_v13 = vld [vmem:[%s2704_s11 + $0x1d4] sm:$0xff]  ;;  %v246_v15 = vld [vmem:[%s2704_s11 + $0x21c] sm:$0xff] }
  0x21   : > { %v244_v14 = vld [vmem:[%s2704_s11 + $0x1f8] sm:$0xff]  ;;  %241 = vst [vmem:[%s2709_s12 + $0x90] sm:$0xff] %v240_v12  ;;  %243 = vst [vmem:[%s2709_s12 + $0x9c] sm:$0xff] %v242_v13  ;;  %v248_v16 = vld [vmem:[%s2704_s11 + $0x240] sm:$0xff] }
  0x22   : > { %245 = vst [vmem:[%s2709_s12 + $0xa8] sm:$0xff] %v244_v14  ;;  %v250_v17 = vld [vmem:[%s2704_s11 + $0x264] sm:$0xff]  ;;  %247 = vst [vmem:[%s2709_s12 + $0xb4] sm:$0xff] %v246_v15  ;;  %v254_v19 = vld [vmem:[%s2704_s11 + $0x2ac] sm:$0xff] }
  0x23   : > { %249 = vst [vmem:[%s2709_s12 + $0xc0] sm:$0xff] %v248_v16  ;;  %251 = vst [vmem:[%s2709_s12 + $0xcc] sm:$0xff] %v250_v17  ;;  %v252_v18 = vld [vmem:[%s2704_s11 + $0x288] sm:$0xff]  ;;  %v256_v20 = vld [vmem:[%s2704_s11 + $0x2d0] sm:$0xff] }
  0x24   : > { %253 = vst [vmem:[%s2709_s12 + $0xd8] sm:$0xff] %v252_v18  ;;  %255 = vst [vmem:[%s2709_s12 + $0xe4] sm:$0xff] %v254_v19  ;;  %v258_v21 = vld [vmem:[%s2704_s11 + $0x2f4] sm:$0xff]  ;;  %v262_v23 = vld [vmem:[%s2704_s11 + $0x33c] sm:$0xff] }
  0x25   : > { %257 = vst [vmem:[%s2709_s12 + $0xf0] sm:$0xff] %v256_v20  ;;  %v260_v22 = vld [vmem:[%s2704_s11 + $0x318] sm:$0xff]  ;;  %259 = vst [vmem:[%s2709_s12 + $0xfc] sm:$0xff] %v258_v21  ;;  %v264_v24 = vld [vmem:[%s2704_s11 + $0x360] sm:$0xff] }
  0x26   : > { %261 = vst [vmem:[%s2709_s12 + $0x108] sm:$0xff] %v260_v22  ;;  %263 = vst [vmem:[%s2709_s12 + $0x114] sm:$0xff] %v262_v23  ;;  %v266_v25 = vld [vmem:[%s2704_s11 + $0x384] sm:$0xff]  ;;  %v270_v27 = vld [vmem:[%s2704_s11 + $0x3cc] sm:$0xff] }
  0x27   : > { %v268_v26 = vld [vmem:[%s2704_s11 + $0x3a8] sm:$0xff]  ;;  %265 = vst [vmem:[%s2709_s12 + $0x120] sm:$0xff] %v264_v24  ;;  %267 = vst [vmem:[%s2709_s12 + $0x12c] sm:$0xff] %v266_v25  ;;  %v272_v28 = vld [vmem:[%s2704_s11 + $0x3f0] sm:$0xff] }
  0x28   : > { %269 = vst [vmem:[%s2709_s12 + $0x138] sm:$0xff] %v268_v26  ;;  %v274_v29 = vld [vmem:[%s2704_s11 + $0x414] sm:$0xff]  ;;  %271 = vst [vmem:[%s2709_s12 + $0x144] sm:$0xff] %v270_v27  ;;  %v278_v31 = vld [vmem:[%s2704_s11 + $0x45c] sm:$0xff] }
  0x29   : > { %273 = vst [vmem:[%s2709_s12 + $0x150] sm:$0xff] %v272_v28  ;;  %275 = vst [vmem:[%s2709_s12 + $0x15c] sm:$0xff] %v274_v29  ;;  %v276_v30 = vld [vmem:[%s2704_s11 + $0x438] sm:$0xff]  ;;  %v1911_v32 = vld [vmem:[%s2704_s11 + $0x8] sm:$0xf] }
  0x2a   : > { %277 = vst [vmem:[%s2709_s12 + $0x168] sm:$0xff] %v276_v30  ;;  %279 = vst [vmem:[%s2709_s12 + $0x174] sm:$0xff] %v278_v31  ;;  %v1913_v33 = vld [vmem:[%s2704_s11 + $0x2c] sm:$0xf]  ;;  %v1915_v34 = vld [vmem:[%s2704_s11 + $0x50] sm:$0xf] }
  0x2b   : > { %1912 = vst [vmem:[%s2709_s12 + $0x8] sm:$0xf] %v1911_v32  ;;  %v1917_v35 = vld [vmem:[%s2704_s11 + $0x74] sm:$0xf]  ;;  %1914 = vst [vmem:[%s2709_s12 + $0x14] sm:$0xf] %v1913_v33 }
  0x2c   : > { %1916 = vst [vmem:[%s2709_s12 + $0x20] sm:$0xf] %v1915_v34  ;;  %1918 = vst [vmem:[%s2709_s12 + $0x2c] sm:$0xf] %v1917_v35  ;;  %v1919_v36 = vld [vmem:[%s2704_s11 + $0x98] sm:$0xf] }
  0x2d   : > { %v1921_v37 = vld [vmem:[%s2704_s11 + $0xbc] sm:$0xf]  ;;  %v1923_v38 = vld [vmem:[%s2704_s11 + $0xe0] sm:$0xf]  ;;  %1920 = vst [vmem:[%s2709_s12 + $0x38] sm:$0xf] %v1919_v36 }
  0x2e   : > { %1922 = vst [vmem:[%s2709_s12 + $0x44] sm:$0xf] %v1921_v37  ;;  %1924 = vst [vmem:[%s2709_s12 + $0x50] sm:$0xf] %v1923_v38  ;;  %v1925_v39 = vld [vmem:[%s2704_s11 + $0x104] sm:$0xf] }
  0x2f   : > { %v1927_v40 = vld [vmem:[%s2704_s11 + $0x128] sm:$0xf]  ;;  %v1929_v41 = vld [vmem:[%s2704_s11 + $0x14c] sm:$0xf]  ;;  %1926 = vst [vmem:[%s2709_s12 + $0x5c] sm:$0xf] %v1925_v39 }
  0x30   : > { %1928 = vst [vmem:[%s2709_s12 + $0x68] sm:$0xf] %v1927_v40  ;;  %1930 = vst [vmem:[%s2709_s12 + $0x74] sm:$0xf] %v1929_v41  ;;  %v1931_v42 = vld [vmem:[%s2704_s11 + $0x170] sm:$0xf] }
  0x31   : > { %v1933_v43 = vld [vmem:[%s2704_s11 + $0x194] sm:$0xf]  ;;  %v1935_v44 = vld [vmem:[%s2704_s11 + $0x1b8] sm:$0xf]  ;;  %1932 = vst [vmem:[%s2709_s12 + $0x80] sm:$0xf] %v1931_v42 }
  0x32   : > { %1934 = vst [vmem:[%s2709_s12 + $0x8c] sm:$0xf] %v1933_v43  ;;  %1936 = vst [vmem:[%s2709_s12 + $0x98] sm:$0xf] %v1935_v44  ;;  %v1937_v45 = vld [vmem:[%s2704_s11 + $0x1dc] sm:$0xf] }
  0x33   : > { %v1939_v46 = vld [vmem:[%s2704_s11 + $0x200] sm:$0xf]  ;;  %v1941_v47 = vld [vmem:[%s2704_s11 + $0x224] sm:$0xf]  ;;  %1938 = vst [vmem:[%s2709_s12 + $0xa4] sm:$0xf] %v1937_v45 }
  0x34   : > { %1940 = vst [vmem:[%s2709_s12 + $0xb0] sm:$0xf] %v1939_v46  ;;  %1942 = vst [vmem:[%s2709_s12 + $0xbc] sm:$0xf] %v1941_v47  ;;  %v1943_v48 = vld [vmem:[%s2704_s11 + $0x248] sm:$0xf] }
  0x35   : > { %v1945_v49 = vld [vmem:[%s2704_s11 + $0x26c] sm:$0xf]  ;;  %v1947_v50 = vld [vmem:[%s2704_s11 + $0x290] sm:$0xf]  ;;  %1944 = vst [vmem:[%s2709_s12 + $0xc8] sm:$0xf] %v1943_v48 }
  0x36   : > { %1946 = vst [vmem:[%s2709_s12 + $0xd4] sm:$0xf] %v1945_v49  ;;  %1948 = vst [vmem:[%s2709_s12 + $0xe0] sm:$0xf] %v1947_v50  ;;  %v1949_v51 = vld [vmem:[%s2704_s11 + $0x2b4] sm:$0xf] }
  0x37   : > { %v1951_v52 = vld [vmem:[%s2704_s11 + $0x2d8] sm:$0xf]  ;;  %v1953_v53 = vld [vmem:[%s2704_s11 + $0x2fc] sm:$0xf]  ;;  %1950 = vst [vmem:[%s2709_s12 + $0xec] sm:$0xf] %v1949_v51 }
  0x38   : > { %1952 = vst [vmem:[%s2709_s12 + $0xf8] sm:$0xf] %v1951_v52  ;;  %1954 = vst [vmem:[%s2709_s12 + $0x104] sm:$0xf] %v1953_v53  ;;  %v1955_v54 = vld [vmem:[%s2704_s11 + $0x320] sm:$0xf] }
  0x39   : > { %v1957_v55 = vld [vmem:[%s2704_s11 + $0x344] sm:$0xf]  ;;  %v1959_v56 = vld [vmem:[%s2704_s11 + $0x368] sm:$0xf]  ;;  %1956 = vst [vmem:[%s2709_s12 + $0x110] sm:$0xf] %v1955_v54 }
  0x3a   : > { %1958 = vst [vmem:[%s2709_s12 + $0x11c] sm:$0xf] %v1957_v55  ;;  %1960 = vst [vmem:[%s2709_s12 + $0x128] sm:$0xf] %v1959_v56  ;;  %v1961_v57 = vld [vmem:[%s2704_s11 + $0x38c] sm:$0xf] }
  0x3b   : > { %v1963_v58 = vld [vmem:[%s2704_s11 + $0x3b0] sm:$0xf]  ;;  %v1965_v59 = vld [vmem:[%s2704_s11 + $0x3d4] sm:$0xf]  ;;  %1962 = vst [vmem:[%s2709_s12 + $0x134] sm:$0xf] %v1961_v57 }
  0x3c   : > { %1964 = vst [vmem:[%s2709_s12 + $0x140] sm:$0xf] %v1963_v58  ;;  %1966 = vst [vmem:[%s2709_s12 + $0x14c] sm:$0xf] %v1965_v59  ;;  %v1967_v60 = vld [vmem:[%s2704_s11 + $0x3f8] sm:$0xf] }
  0x3d   : > { %v1969_v61 = vld [vmem:[%s2704_s11 + $0x41c] sm:$0xf]  ;;  %v1971_v62 = vld [vmem:[%s2704_s11 + $0x440] sm:$0xf]  ;;  %1968 = vst [vmem:[%s2709_s12 + $0x158] sm:$0xf] %v1967_v60 }
  0x3e   : > { %1970 = vst [vmem:[%s2709_s12 + $0x164] sm:$0xf] %v1969_v61  ;;  %1972 = vst [vmem:[%s2709_s12 + $0x170] sm:$0xf] %v1971_v62  ;;  %v1973_v63 = vld [vmem:[%s2704_s11 + $0x464] sm:$0xf] }
  0x3f   : > { %1974 = vst [vmem:[%s2709_s12 + $0x17c] sm:$0xf] %v1973_v63 }
  0x40 PF: > { %p1975_p7 = scmp.ge.s32.totalorder %s2616_s21, 1  ;;  %p367_p8 = scmp.lt.s32.totalorder %s2616_s21, 7 }
  0x42   : > { %p368_p9 = pnand %p1975_p7, %p367_p8 }
  0x43   : > { %s374_s13 = sand.u32 (!%p368_p9), 1, %s2592_s15   ;;  %s424_s14 = smul.u32 (!%p368_p9), 48, %s2600_s17 }
  0x44   : > { %371 = sbr.rel (%p368_p9) target bundleno = 507 (0x1fb), region = 50  ;;  %s1977_s25 = sshll.u32 (!%p368_p9), %s2604_s18, 5 }
  0x45   : > { %s2416_s24 = smul.u32 (!%p368_p9), 384, %s374_s13  ;;  %p425_p10 = scmp.lt.s32.totalorder (!%p368_p9), %s424_s14, 143 }
  0x46   : > { %p434_p11 = scmp.lt.s32.totalorder (!%p368_p9), %s1977_s25, 63  ;;  %p442_p12 = scmp.lt.s32.totalorder (!%p368_p9), %s2604_s18, 1 }
  0x47   : > { %p1979_p13 = scmp.ne.s32.totalorder (!%p368_p9), %s2600_s17, 0 }
  0x4b   : > { %s3172_s14 = smov (!%p425_p10, %s424_s14), 143  ;;  %s3174_s25 = smov (!%p434_p11, %s1977_s25), 63 }
  0x4c   : > { %s1976_s26 = sshll.u32 %s3172_s14, 2  ;;  %s1978_s5 = sshll.u32 %s3174_s25, 2  ;;  %v2618_v0 = vmov (!%p1979_p13), 0.0  }
  0x4d   : > { %s2845_s30 = scalar_lea.vmem %s3155_s1, %s1976_s26  ;;  %s2850_s8 = scalar_lea.vmem %s3156_s2, %s1978_s5  ;;  %459 = vst [vmem:[#allocation2] sm:$0xff] (!%p1979_p13), %v2618_v0  ;;  %460 = vst [vmem:[#allocation2 + $0x8] sm:$0xff] (!%p1979_p13), %v2618_v0 }
  0x4e   : > { %s3176_s18 = smov (!%p442_p12, %s2604_s18), 1  ;;  %s2863_s14 = scalar_lea.vmem [#allocation3], %s2416_s24  ;;  %461 = vst [vmem:[#allocation2 + $0x10] sm:$0xff] (!%p1979_p13), %v2618_v0  ;;  %462 = vst [vmem:[#allocation2 + $0x18] sm:$0xff] (!%p1979_p13), %v2618_v0 }
  0x4f   : > { %s447_s10 = scalar_lea.vmem %s3157_s3, %s3176_s18  ;;  %s453_s13 = scalar_lea.vmem %s3158_s4, %s3176_s18  ;;  %463 = vst [vmem:[#allocation2 + $0x20] sm:$0xff] (!%p1979_p13), %v2618_v0  ;;  %464 = vst [vmem:[#allocation2 + $0x28] sm:$0xff] (!%p1979_p13), %v2618_v0 }
  0x50   : > { %458 = sbr.rel (%p1979_p13) target bundleno = 93 (0x5d), region = 58  ;;  %465 = vst [vmem:[#allocation2 + $0x30] sm:$0xff] (!%p1979_p13), %v2618_v0  ;;  %466 = vst [vmem:[#allocation2 + $0x38] sm:$0xff] (!%p1979_p13), %v2618_v0 }
  0x51   : > { %467 = vst [vmem:[#allocation2 + $0x40] sm:$0xff] (!%p1979_p13), %v2618_v0  ;;  %468 = vst [vmem:[#allocation2 + $0x48] sm:$0xff] (!%p1979_p13), %v2618_v0 }
  0x52   : > { %469 = vst [vmem:[#allocation2 + $0x50] sm:$0xff] (!%p1979_p13), %v2618_v0  ;;  %470 = vst [vmem:[#allocation2 + $0x58] sm:$0xff] (!%p1979_p13), %v2618_v0 }
  0x53   : > { %471 = vst [vmem:[#allocation2 + $0x60] sm:$0xff] (!%p1979_p13), %v2618_v0  ;;  %472 = vst [vmem:[#allocation2 + $0x68] sm:$0xff] (!%p1979_p13), %v2618_v0 }
  0x54   : > { %473 = vst [vmem:[#allocation2 + $0x70] sm:$0xff] (!%p1979_p13), %v2618_v0  ;;  %474 = vst [vmem:[#allocation2 + $0x78] sm:$0xff] (!%p1979_p13), %v2618_v0 }
  0x55   : > { %475 = vst [vmem:[#allocation2 + $0x80] sm:$0xff] (!%p1979_p13), %v2618_v0  ;;  %476 = vst [vmem:[#allocation2 + $0x88] sm:$0xff] (!%p1979_p13), %v2618_v0 }
  0x56   : > { %477 = vst [vmem:[#allocation2 + $0x90] sm:$0xff] (!%p1979_p13), %v2618_v0  ;;  %478 = vst [vmem:[#allocation2 + $0x98] sm:$0xff] (!%p1979_p13), %v2618_v0 }
  0x57   : > { %479 = vst [vmem:[#allocation2 + $0xa0] sm:$0xff] %v2618_v0  ;;  %480 = vst [vmem:[#allocation2 + $0xa8] sm:$0xff] %v2618_v0 }
  0x58   : > { %481 = vst [vmem:[#allocation2 + $0xb0] sm:$0xff] %v2618_v0  ;;  %482 = vst [vmem:[#allocation2 + $0xb8] sm:$0xff] %v2618_v0 }
  0x59   : > { %483 = vst [vmem:[#allocation2 + $0xc0] sm:$0xff] %v2618_v0  ;;  %484 = vst [vmem:[#allocation2 + $0xc8] sm:$0xff] %v2618_v0 }
  0x5a   : > { %485 = vst [vmem:[#allocation2 + $0xd0] sm:$0xff] %v2618_v0  ;;  %486 = vst [vmem:[#allocation2 + $0xd8] sm:$0xff] %v2618_v0 }
  0x5b   : > { %487 = vst [vmem:[#allocation2 + $0xe0] sm:$0xff] %v2618_v0  ;;  %488 = vst [vmem:[#allocation2 + $0xe8] sm:$0xff] %v2618_v0 }
  0x5c   : > { %489 = vst [vmem:[#allocation2 + $0xf0] sm:$0xff] %v2618_v0  ;;  %490 = vst [vmem:[#allocation2 + $0xf8] sm:$0xff] %v2618_v0 }
  0x5d PF: > { %v2474_v1 = vld [vmem:[%s2845_s30 + $0x40] sm:$0xff]   ;;  %v2476_v3 = vld [vmem:[%s2845_s30 + $0x48] sm:$0xff]   ;;  %v2478_v5 = vld [vmem:[%s2845_s30 + $0x50] sm:$0xff]   ;;  %p2052_p0 = scmp.ne.s32.totalorder %s2600_s17, 2 }
  0x5e   : > { %v2475_v2 = vld [vmem:[%s2845_s30] sm:$0xff]   ;;  %2214 = vmatprep.subr.bf16.mxu0 %v2474_v1  ;;  %2398 = vmatprep.subr.bf16.mxu1 %v2474_v1  ;;  %v2477_v4 = vld [vmem:[%s2845_s30 + $0x8] sm:$0xff]   ;;  %v2479_v6 = vld [vmem:[%s2845_s30 + $0x10] sm:$0xff]  }
  0x5f   : > { %2215 = vmatpush3.bf16.msra.mxu0 %v2475_v2  ;;  %2406 = vmatpush3.bf16.msra.mxu1 %v2475_v2  ;;  %v2480_v7 = vld [vmem:[%s2845_s30 + $0x58] sm:$0xff]   ;;  %v2482_v9 = vld [vmem:[%s2845_s30 + $0x60] sm:$0xff]   ;;  %v2484_v11 = vld [vmem:[%s2845_s30 + $0x68] sm:$0xff]  }
  0x60   : > { %2216 = vmatprep.subr.bf16.mxu0 %v2476_v3  ;;  %2399 = vmatprep.subr.bf16.mxu1 %v2476_v3  ;;  %v2481_v8 = vld [vmem:[%s2845_s30 + $0x18] sm:$0xff]   ;;  %v2483_v10 = vld [vmem:[%s2845_s30 + $0x20] sm:$0xff]   ;;  %v2485_v14 = vld [vmem:[%s2845_s30 + $0x28] sm:$0xff]  }
  0x61   : > { %v2492_v12 = vld [vmem:[%s2863_s14 + $0x4] ss:$12 sps:$4 sm:$0xff]   ;;  %v2488_v17 = vld [vmem:[%s2845_s30 + $0x78] sm:$0xff]   ;;  %v2490_v20 = vld [vmem:[%s2863_s14] ss:$12 sps:$4 sm:$0xff]  }
  0x62   : > { %v2495_v13 = vld [vmem:[%s2863_s14 + $0x124] ss:$12 sps:$4 sm:$0xff]   ;;  %1067 = vmatprep.mubr.bf16.mxu0 %v2492_v12  ;;  %v2489_v18 = vld [vmem:[%s2845_s30 + $0x38] sm:$0xff]   ;;  %v2493_v21 = vld [vmem:[%s2863_s14 + $0x120] ss:$12 sps:$4 sm:$0xff]  }
  0x63   : > { %2217 = vmatpush3.bf16.msra.mxu0 %v2477_v4  ;;  %2407 = vmatpush3.bf16.msra.mxu1 %v2477_v4  ;;  %v2486_v15 = vld [vmem:[%s2845_s30 + $0x70] sm:$0xff]   ;;  %v2496_v19 = vld [vmem:[%s2845_s30 + $0x80] sm:$0xff]   ;;  %v2498_v22 = vld [vmem:[%s2863_s14 + $0x1c] ss:$12 sps:$4 sm:$0xff]  }
  0x64   : > { %2218 = vmatprep.subr.bf16.mxu0 %v2478_v5  ;;  %2400 = vmatprep.subr.bf16.mxu1 %v2478_v5  ;;  %v2487_v16 = vld [vmem:[%s2845_s30 + $0x30] sm:$0xff]   ;;  %v2497_v23 = vld [vmem:[%s2845_s30 + $0x88] sm:$0xff]   ;;  %v2502_v25 = vld [vmem:[%s2863_s14 + $0x18] ss:$12 sps:$4 sm:$0xff]  }
  0x65   : > { %1163 = vmatprep.mubr.bf16.mxu1 %v2495_v13  ;;  %v2500_v24 = vld [vmem:[%s2863_s14 + $0x13c] ss:$12 sps:$4 sm:$0xff]   ;;  %v2504_v26 = vld [vmem:[%s2845_s30 + $0x90] sm:$0xff]   ;;  %v2503_v27 = vld [vmem:[%s2863_s14 + $0x138] ss:$12 sps:$4 sm:$0xff]  }
  0x66   : > { %v2505_v28 = vld [vmem:[%s2845_s30 + $0x98] sm:$0xff]   ;;  %v2506_v29 = vld [vmem:[%s2863_s14 + $0x34] ss:$12 sps:$4 sm:$0xff]   ;;  %v2513_v34 = vld [vmem:[%s2845_s30 + $0xa8] sm:$0xff]  }
  0x67   : > { %2219 = vmatpush3.bf16.msra.mxu0 %v2479_v6  ;;  %2408 = vmatpush3.bf16.msra.mxu1 %v2479_v6  ;;  %v2508_v30 = vld [vmem:[%s2863_s14 + $0x154] ss:$12 sps:$4 sm:$0xff]   ;;  %v2510_v32 = vld [vmem:[%s2863_s14 + $0x30] ss:$12 sps:$4 sm:$0xff]   ;;  %v2514_v35 = vld [vmem:[%s2863_s14 + $0x4c] ss:$12 sps:$4 sm:$0xff]  }
  0x68   : > { %2220 = vmatprep.subr.bf16.mxu0 %v2480_v7  ;;  %2401 = vmatprep.subr.bf16.mxu1 %v2480_v7  ;;  %v2512_v31 = vld [vmem:[%s2845_s30 + $0xa0] sm:$0xff]   ;;  %v2511_v33 = vld [vmem:[%s2863_s14 + $0x150] ss:$12 sps:$4 sm:$0xff]   ;;  %v2516_v36 = vld [vmem:[%s2863_s14 + $0x16c] ss:$12 sps:$4 sm:$0xff]  }
  0x69   : > { %v2520_v37 = vld [vmem:[%s2845_s30 + $0xb0] sm:$0xff]   ;;  %v2521_v41 = vld [vmem:[%s2845_s30 + $0xb8] sm:$0xff]   ;;  %v2525_v43 = vld [vmem:[%s2863_s14 + $0x60] ss:$12 sps:$4 sm:$0xff]  }
  0x6a   : > { %v2518_v38 = vld [vmem:[%s2863_s14 + $0x48] ss:$12 sps:$4 sm:$0xff]   ;;  %v2522_v40 = vld [vmem:[%s2863_s14 + $0x64] ss:$12 sps:$4 sm:$0xff]   ;;  %v2526_v44 = vld [vmem:[%s2863_s14 + $0x20] ss:$12 sps:$4 sm:$0xff]  }
  0x6b   : > { %2221 = vmatpush3.bf16.msra.mxu0 %v2481_v8  ;;  %2409 = vmatpush3.bf16.msra.mxu1 %v2481_v8  ;;  %v2519_v39 = vld [vmem:[%s2863_s14 + $0x168] ss:$12 sps:$4 sm:$0xff]   ;;  %v2529_v46 = vld [vmem:[%s2863_s14 + $0x38] ss:$12 sps:$4 sm:$0xff]   ;;  %v2531_v48 = vld [vmem:[%s2863_s14 + $0x50] ss:$12 sps:$4 sm:$0xff]  }
  0x6c   : > { %2222 = vmatprep.subr.bf16.mxu0 %v2482_v9  ;;  %2402 = vmatprep.subr.bf16.mxu1 %v2482_v9  ;;  %v2524_v42 = vld [vmem:[%s2863_s14 + $0x8] ss:$12 sps:$4 sm:$0xff]   ;;  %v2530_v47 = vld [vmem:[%s2863_s14 + $0x78] ss:$12 sps:$4 sm:$0xff]   ;;  %v2535_v51 = vld [vmem:[%s2863_s14 + $0x90] ss:$12 sps:$4 sm:$0xff]  }
  0x6d   : > { %v2527_v45 = vld [vmem:[%s2863_s14 + $0x7c] ss:$12 sps:$4 sm:$0xff]   ;;  %v2532_v49 = vld [vmem:[%s2863_s14 + $0x94] ss:$12 sps:$4 sm:$0xff]   ;;  %v2537_v53 = vld [vmem:[%s2863_s14 + $0xac] ss:$12 sps:$4 sm:$0xff]  }
  0x6e   : > { %v2534_v50 = vld [vmem:[%s2863_s14 + $0x68] ss:$12 sps:$4 sm:$0xff]   ;;  %v2536_v52 = vld [vmem:[%s2863_s14 + $0x80] ss:$12 sps:$4 sm:$0xff]   ;;  %v2539_v54 = vld [vmem:[%s2863_s14 + $0x98] ss:$12 sps:$4 sm:$0xff]  }
  0x6f   : > { %2223 = vmatpush3.bf16.msra.mxu0 %v2483_v10  ;;  %2410 = vmatpush3.bf16.msra.mxu1 %v2483_v10  ;;  %v2540_v55 = vld [vmem:[%s2863_s14 + $0xa8] ss:$12 sps:$4 sm:$0xff]   ;;  %v2541_v56 = vld [vmem:[%s2863_s14 + $0xb0] ss:$12 sps:$4 sm:$0xff]   ;;  %v2545_v59 = vld [vmem:[%s2863_s14 + $0xc0] ss:$12 sps:$4 sm:$0xff]  }
  0x70   : > { %2224 = vmatprep.subr.bf16.mxu0 %v2484_v11  ;;  %2403 = vmatprep.subr.bf16.mxu1 %v2484_v11  ;;  %v2542_v57 = vld [vmem:[%s2863_s14 + $0xc4] ss:$12 sps:$4 sm:$0xff]   ;;  %v2544_v58 = vld [vmem:[%s2863_s14 + $0xc8] ss:$12 sps:$4 sm:$0xff]   ;;  %v2546_v60 = vld [vmem:[%s2863_s14 + $0xe0] ss:$12 sps:$4 sm:$0xff]  }
  0x71   : > { %v2547_v61 = vld [vmem:[%s2863_s14 + $0xdc] ss:$12 sps:$4 sm:$0xff]   ;;  %v2549_v62 = vld [vmem:[%s2863_s14 + $0xf8] ss:$12 sps:$4 sm:$0xff]   ;;  %v2552_v1 = vld [vmem:[%s2863_s14 + $0xf4] ss:$12 sps:$4 sm:$0xff]  }
  0x72   : > { %v2550_v63 = vld [vmem:[%s2863_s14 + $0xd8] ss:$12 sps:$4 sm:$0xff]   ;;  %v2551_v0 = vld [vmem:[%s2863_s14 + $0x110] ss:$12 sps:$4 sm:$0xff]   ;;  %v2554_v2 = vld [vmem:[%s2863_s14 + $0x128] ss:$12 sps:$4 sm:$0xff]  }
  0x73   : > { %2225 = vmatpush3.bf16.msra.mxu0 %v2485_v14  ;;  %2411 = vmatpush3.bf16.msra.mxu1 %v2485_v14  ;;  %v2555_v3 = vld [vmem:[%s2863_s14 + $0xf0] ss:$12 sps:$4 sm:$0xff]   ;;  %v2556_v4 = vld [vmem:[%s2863_s14 + $0x140] ss:$12 sps:$4 sm:$0xff]   ;;  %v2559_v6 = vld [vmem:[%s2863_s14 + $0x158] ss:$12 sps:$4 sm:$0xff]  }
  0x74   : > { %2226 = vmatprep.subr.bf16.mxu0 %v2486_v15  ;;  %2404 = vmatprep.subr.bf16.mxu1 %v2486_v15  ;;  %v2557_v5 = vld [vmem:[%s2863_s14 + $0x10c] ss:$12 sps:$4 sm:$0xff]   ;;  %v2560_v7 = vld [vmem:[%s2863_s14 + $0x108] ss:$12 sps:$4 sm:$0xff]   ;;  %v2561_v8 = vld [vmem:[%s2863_s14 + $0x170] ss:$12 sps:$4 sm:$0xff]  }
  0x77   : > { %2227 = vmatpush3.bf16.msra.mxu0 %v2487_v16  ;;  %2412 = vmatpush3.bf16.msra.mxu1 %v2487_v16 }
  0x78   : > { %2228 = vmatprep.subr.bf16.mxu0 %v2488_v17  ;;  %2405 = vmatprep.subr.bf16.mxu1 %v2488_v17 }
  0x7b   : > { %2229 = vmatpush3.bf16.msra.mxu0 %v2489_v18  ;;  %2413 = vmatpush3.bf16.msra.mxu1 %v2489_v18 }
  0x7c   : > { %2350 = vmatprep.subr.bf16.mxu1 %v2496_v19 }
  0x7e   : > { %1068 = vmatmul.mubr.bf16.vlgmr.msra.gmra.mrb[0].mxu0 %v2490_v20  ;;  %1164 = vmatmul.mubr.bf16.vlgmr.msra.gmra.mrb[0].mxu1 %v2493_v21 }
  0x7f   : > { %2351 = vmatpush3.bf16.msra.mxu1 %v2496_v19  ;;  %1075 = vmatprep.mubr.bf16.mxu0 %v2498_v22 }
  0x80   : > { %2352 = vmatprep.subr.bf16.mxu1 %v2497_v23  ;;  %1171 = vmatprep.mubr.bf16.mxu1 %v2500_v24 }
  0x83   : > { %2353 = vmatpush3.bf16.msra.mxu1 %v2497_v23 }
  0x84   : > { %2354 = vmatprep.subr.bf16.mxu1 %v2504_v26 }
  0x86   : > { %1076 = vmatmul.mubr.bf16.gmra.mrb[4].mxu0 %v2502_v25  ;;  %1172 = vmatmul.mubr.bf16.gmra.mrb[4].mxu1 %v2503_v27 }
  0x87   : > { %2355 = vmatpush3.bf16.msra.mxu1 %v2504_v26  ;;  %1083 = vmatprep.mubr.bf16.mxu0 %v2506_v29 }
  0x88   : > { %2356 = vmatprep.subr.bf16.mxu1 %v2505_v28  ;;  %1179 = vmatprep.mubr.bf16.mxu1 %v2508_v30 }
  0x8b   : > { %2357 = vmatpush3.bf16.msra.mxu1 %v2505_v28 }
  0x8c   : > { %2358 = vmatprep.subr.bf16.mxu1 %v2512_v31 }
  0x8e   : > { %1084 = vmatmul.mubr.bf16.gmra.mrb[8].mxu0 %v2510_v32  ;;  %1180 = vmatmul.mubr.bf16.gmra.mrb[8].mxu1 %v2511_v33 }
  0x8f   : > { %2359 = vmatpush3.bf16.msra.mxu1 %v2512_v31  ;;  %1091 = vmatprep.mubr.bf16.mxu0 %v2514_v35 }
  0x90   : > { %2360 = vmatprep.subr.bf16.mxu1 %v2513_v34  ;;  %1187 = vmatprep.mubr.bf16.mxu1 %v2516_v36 }
  0x93   : > { %2361 = vmatpush3.bf16.msra.mxu1 %v2513_v34 }
  0x94   : > { %2362 = vmatprep.subr.bf16.mxu1 %v2520_v37 }
  0x96   : > { %1092 = vmatmul.mubr.bf16.gmra.mrb[12].mxu0 %v2518_v38  ;;  %1188 = vmatmul.mubr.bf16.gmra.mrb[12].mxu1 %v2519_v39 }
  0x97   : > { %2363 = vmatpush3.bf16.msra.mxu1 %v2520_v37  ;;  %1099 = vmatprep.mubr.bf16.mxu0 %v2522_v40 }
  0x98   : > { %2364 = vmatprep.subr.bf16.mxu1 %v2521_v41  ;;  %2366 = vmatprep.mubr.bf16.mxu1 %v2524_v42 }
  0x9b   : > { %2365 = vmatpush3.bf16.msra.mxu1 %v2521_v41 }
  0x9e   : > { %1100 = vmatmul.mubr.bf16.gmra.mrb[16].mxu0 %v2525_v43  ;;  %2367 = vmatmul.mubr.bf16.vlgmr.msra.gmra.mrb[16].mxu1 %v2526_v44 }
  0x9f   : > { %1107 = vmatprep.mubr.bf16.mxu0 %v2527_v45  ;;  %2370 = vmatprep.mubr.bf16.mxu1 %v2529_v46 }
  0xa6   : > { %1108 = vmatmul.mubr.bf16.gmra.mrb[20].mxu0 %v2530_v47  ;;  %2371 = vmatmul.mubr.bf16.gmra.mrb[20].mxu1 %v2531_v48 }
  0xa7   : > { %1115 = vmatprep.mubr.bf16.mxu0 %v2532_v49  ;;  %2374 = vmatprep.mubr.bf16.mxu1 %v2534_v50 }
  0xae   : > { %1116 = vmatmul.mubr.bf16.gmra.mrb[24].mxu0 %v2535_v51  ;;  %2375 = vmatmul.mubr.bf16.gmra.mrb[24].mxu1 %v2536_v52 }
  0xaf   : > { %1123 = vmatprep.mubr.bf16.mxu0 %v2537_v53  ;;  %2378 = vmatprep.mubr.bf16.mxu1 %v2539_v54 }
  0xb6   : > { %1124 = vmatmul.mubr.bf16.gmra.mrb[28].mxu0 %v2540_v55  ;;  %2379 = vmatmul.mubr.bf16.gmra.mrb[28].mxu1 %v2541_v56 }
  0xb7   : > { %1131 = vmatprep.mubr.bf16.mxu0 %v2542_v57  ;;  %2382 = vmatprep.mubr.bf16.mxu1 %v2544_v58  ;;  %v493_v58 = vld [vmem:[#allocation2 + $0x10] sm:$0xff] }
  0xbe   : > { %1132 = vmatmul.mubr.bf16.gmra.mrb[32].mxu0 %v2545_v59  ;;  %2383 = vmatmul.mubr.bf16.gmra.mrb[32].mxu1 %v2546_v60 }
  0xbf   : > { %1139 = vmatprep.mubr.bf16.mxu0 %v2547_v61  ;;  %2386 = vmatprep.mubr.bf16.mxu1 %v2549_v62  ;;  %v491_v62 = vld [vmem:[#allocation2] sm:$0xff] }
  0xc6   : > { %1140 = vmatmul.mubr.bf16.gmra.mrb[36].mxu0 %v2550_v63  ;;  %2387 = vmatmul.mubr.bf16.gmra.mrb[36].mxu1 %v2551_v0 }
  0xc7   : > { %1147 = vmatprep.mubr.bf16.mxu0 %v2552_v1  ;;  %2390 = vmatprep.mubr.bf16.mxu1 %v2554_v2 }
  0xce   : > { %1148 = vmatmul.mubr.bf16.gmra.mrb[40].mxu0 %v2555_v3  ;;  %2391 = vmatmul.mubr.bf16.gmra.mrb[40].mxu1 %v2556_v4  ;;  %v494_v3 = vld [vmem:[#allocation2 + $0x18] sm:$0xff] }
  0xcf   : > { %1155 = vmatprep.mubr.bf16.mxu0 %v2557_v5  ;;  %2394 = vmatprep.mubr.bf16.mxu1 %v2559_v6 }
  0xd6   : > { %1156 = vmatmul.mubr.bf16.gmra.mrb[44].mxu0 %v2560_v7  ;;  %2395 = vmatmul.mubr.bf16.gmra.mrb[44].mxu1 %v2561_v8  ;;  %v492_v8 = vld [vmem:[#allocation2 + $0x8] sm:$0xff] }
 0x151   : > { %v2230_v9 = vpop.f32.mrb[0].mxu0  ;;  %v2302_v10 = vpop.f32.mrb[0].mxu1 }
 0x152   : > { %v2231_v11 = vpop.f32.mrb[1].mxu0  ;;  %v2303_v12 = vpop.f32.mrb[1].mxu1 }
 0x153   : > { %v2232_v13 = vadd.f32 %v2231_v11, %v2230_v9  ;;  %v2938_v14 = vadd.f32 %v2303_v12, %v2302_v10  ;;  %v2233_v15 = vpop.f32.mrb[2].mxu0  ;;  %v2305_v16 = vpop.f32.mrb[2].mxu1 }
 0x154   : > { %v2234_v17 = vpop.f32.mrb[3].mxu0  ;;  %v2306_v18 = vpop.f32.mrb[3].mxu1 }
 0x155   : > { %v2235_v19 = vadd.f32 %v2234_v17, %v2233_v15  ;;  %v2940_v20 = vadd.f32 %v2306_v18, %v2305_v16  ;;  %v497_v18 = vld [vmem:[#allocation2 + $0x30] sm:$0xff] }
 0x159   : > { %v2236_v21 = vpop.f32.mrb[4].mxu0  ;;  %v2308_v22 = vpop.f32.mrb[4].mxu1 }
 0x15a   : > { %v2237_v23 = vpop.f32.mrb[5].mxu0  ;;  %v2309_v24 = vpop.f32.mrb[5].mxu1 }
 0x15b   : > { %v2238_v25 = vadd.f32 %v2237_v23, %v2236_v21  ;;  %v2942_v26 = vadd.f32 %v2309_v24, %v2308_v22  ;;  %v2239_v27 = vpop.f32.mrb[6].mxu0  ;;  %v2311_v28 = vpop.f32.mrb[6].mxu1  ;;  %v495_v23 = vld [vmem:[#allocation2 + $0x20] sm:$0xff] }
 0x15c   : > { %v2240_v29 = vpop.f32.mrb[7].mxu0  ;;  %v2312_v30 = vpop.f32.mrb[7].mxu1 }
 0x15d   : > { %v2241_v31 = vadd.f32 %v2240_v29, %v2239_v27  ;;  %v2944_v32 = vadd.f32 %v2312_v30, %v2311_v28  ;;  %v498_v29 = vld [vmem:[#allocation2 + $0x38] sm:$0xff] }
 0x161   : > { %v2242_v33 = vpop.f32.mrb[8].mxu0  ;;  %v2314_v34 = vpop.f32.mrb[8].mxu1 }
 0x162   : > { %v2243_v35 = vpop.f32.mrb[9].mxu0  ;;  %v2315_v36 = vpop.f32.mrb[9].mxu1 }
 0x163   : > { %v2244_v37 = vadd.f32 %v2243_v35, %v2242_v33  ;;  %v2946_v38 = vadd.f32 %v2315_v36, %v2314_v34  ;;  %v2245_v39 = vpop.f32.mrb[10].mxu0  ;;  %v2317_v40 = vpop.f32.mrb[10].mxu1  ;;  %v496_v34 = vld [vmem:[#allocation2 + $0x28] sm:$0xff] }
 0x164   : > { %v2246_v41 = vpop.f32.mrb[11].mxu0  ;;  %v2318_v42 = vpop.f32.mrb[11].mxu1 }
 0x165   : > { %v2247_v43 = vadd.f32 %v2246_v41, %v2245_v39  ;;  %v2948_v44 = vadd.f32 %v2318_v42, %v2317_v40 }
 0x169   : > { %v2248_v45 = vpop.f32.mrb[12].mxu0  ;;  %v2320_v46 = vpop.f32.mrb[12].mxu1 }
 0x16a   : > { %v2249_v47 = vpop.f32.mrb[13].mxu0  ;;  %v2321_v48 = vpop.f32.mrb[13].mxu1 }
 0x16b   : > { %v2250_v49 = vadd.f32 %v2249_v47, %v2248_v45  ;;  %v2950_v50 = vadd.f32 %v2321_v48, %v2320_v46  ;;  %v2251_v51 = vpop.f32.mrb[14].mxu0  ;;  %v2323_v52 = vpop.f32.mrb[14].mxu1  ;;  %v501_v46 = vld [vmem:[#allocation2 + $0x50] sm:$0xff] }
 0x16c   : > { %v2252_v53 = vpop.f32.mrb[15].mxu0  ;;  %v2324_v54 = vpop.f32.mrb[15].mxu1 }
 0x16d   : > { %v2253_v55 = vadd.f32 %v2252_v53, %v2251_v51  ;;  %v2952_v56 = vadd.f32 %v2324_v54, %v2323_v52 }
 0x171   : > { %v2254_v57 = vpop.f32.mrb[16].mxu0  ;;  %v2368_v59 = vpop.f32.mrb[16].mxu1 }
 0x172   : > { %v1239_v60 = vadd.f32 %v2368_v59, %v2238_v25  ;;  %v2255_v61 = vpop.f32.mrb[17].mxu0  ;;  %v1230_v63 = vpop.f32.mrb[17].mxu1 }
 0x173   : > { %v2256_v0 = vadd.f32 %v2255_v61, %v2254_v57  ;;  %v1231_v1 = vadd.f32 %v2232_v13, %v1230_v63  ;;  %v2257_v2 = vpop.f32.mrb[18].mxu0  ;;  %v2369_v4 = vpop.f32.mrb[18].mxu1 }
 0x174   : > { %v1359_v5 = vadd.f32 %v1239_v60, %v493_v58  ;;  %v1242_v6 = vadd.f32 %v2369_v4, %v2241_v31  ;;  %v2258_v7 = vpop.f32.mrb[19].mxu0  ;;  %v1233_v9 = vpop.f32.mrb[19].mxu1  ;;  %v500_v60 = vld [vmem:[#allocation2 + $0x48] sm:$0xff] }
 0x175   : > { %v1357_v10 = vadd.f32 %v1231_v1, %v491_v62  ;;  %v2259_v11 = vadd.f32 %v2258_v7, %v2257_v2  ;;  %v1234_v12 = vadd.f32 %v2235_v19, %v1233_v9 }
 0x176   : > { %1391 = vst [vmem:[#allocation2 + $0x10] sm:$0xff] %v1359_v5  ;;  %v1360_v15 = vadd.f32 %v1242_v6, %v494_v3  ;;  %v503_v6 = vld [vmem:[#allocation2 + $0x60] sm:$0xff] }
 0x177   : > { %1389 = vst [vmem:[#allocation2] sm:$0xff] %v1357_v10  ;;  %v1358_v16 = vadd.f32 %v1234_v12, %v492_v8 }
 0x178   : > { %1392 = vst [vmem:[#allocation2 + $0x18] sm:$0xff] %v1360_v15  ;;  %v505_v15 = vld [vmem:[#allocation2 + $0x70] sm:$0xff] }
 0x179   : > { %1390 = vst [vmem:[#allocation2 + $0x8] sm:$0xff] %v1358_v16  ;;  %v2260_v17 = vpop.f32.mrb[20].mxu0  ;;  %v2372_v13 = vpop.f32.mrb[20].mxu1 }
 0x17a   : > { %v1255_v21 = vadd.f32 %v2372_v13, %v2250_v49  ;;  %v2261_v22 = vpop.f32.mrb[21].mxu0  ;;  %v1246_v24 = vpop.f32.mrb[21].mxu1  ;;  %v499_v49 = vld [vmem:[#allocation2 + $0x40] sm:$0xff] }
 0x17b   : > { %v2262_v25 = vadd.f32 %v2261_v22, %v2260_v17  ;;  %v1247_v27 = vadd.f32 %v2244_v37, %v1246_v24  ;;  %v2263_v28 = vpop.f32.mrb[22].mxu0  ;;  %v2373_v30 = vpop.f32.mrb[22].mxu1  ;;  %v504_v17 = vld [vmem:[#allocation2 + $0x68] sm:$0xff] }
 0x17c   : > { %v1363_v31 = vadd.f32 %v1255_v21, %v497_v18  ;;  %v1258_v19 = vadd.f32 %v2373_v30, %v2253_v55  ;;  %v2264_v33 = vpop.f32.mrb[23].mxu0  ;;  %v1249_v35 = vpop.f32.mrb[23].mxu1  ;;  %v502_v55 = vld [vmem:[#allocation2 + $0x58] sm:$0xff] }
 0x17d   : > { %v1361_v36 = vadd.f32 %v1247_v27, %v495_v23  ;;  %v2265_v39 = vadd.f32 %v2264_v33, %v2263_v28  ;;  %v1250_v40 = vadd.f32 %v2247_v43, %v1249_v35  ;;  %v506_v23 = vld [vmem:[#allocation2 + $0x78] sm:$0xff] }
 0x17e   : > { %1395 = vst [vmem:[#allocation2 + $0x30] sm:$0xff] %v1363_v31  ;;  %v1364_v41 = vadd.f32 %v1258_v19, %v498_v29 }
 0x17f   : > { %1393 = vst [vmem:[#allocation2 + $0x20] sm:$0xff] %v1361_v36  ;;  %v1362_v42 = vadd.f32 %v1250_v40, %v496_v34  ;;  %v507_v36 = vld [vmem:[#allocation2 + $0x80] sm:$0xff] }
 0x180   : > { %1396 = vst [vmem:[#allocation2 + $0x38] sm:$0xff] %v1364_v41 }
 0x181   : > { %1394 = vst [vmem:[#allocation2 + $0x28] sm:$0xff] %v1362_v42  ;;  %v2266_v45 = vpop.f32.mrb[24].mxu0  ;;  %v2376_v37 = vpop.f32.mrb[24].mxu1 }
 0x182   : > { %v1271_v47 = vadd.f32 %v2376_v37, %v2262_v25  ;;  %v2267_v48 = vpop.f32.mrb[25].mxu0  ;;  %v1262_v51 = vpop.f32.mrb[25].mxu1 }
 0x183   : > { %v2268_v52 = vadd.f32 %v2267_v48, %v2266_v45  ;;  %v1263_v53 = vadd.f32 %v2256_v0, %v1262_v51  ;;  %v2269_v54 = vpop.f32.mrb[26].mxu0  ;;  %v2377_v57 = vpop.f32.mrb[26].mxu1  ;;  %v508_v45 = vld [vmem:[#allocation2 + $0x88] sm:$0xff] }
 0x184   : > { %v1367_v58 = vadd.f32 %v1271_v47, %v501_v46  ;;  %v1274_v43 = vadd.f32 %v2377_v57, %v2265_v39  ;;  %v2270_v59 = vpop.f32.mrb[27].mxu0  ;;  %v1265_v61 = vpop.f32.mrb[27].mxu1  ;;  %v509_v57 = vld [vmem:[#allocation2 + $0x90] sm:$0xff] }
 0x185   : > { %v1365_v62 = vadd.f32 %v1263_v53, %v499_v49  ;;  %v2271_v63 = vadd.f32 %v2270_v59, %v2269_v54  ;;  %v1266_v1 = vadd.f32 %v2259_v11, %v1265_v61  ;;  %v510_v61 = vld [vmem:[#allocation2 + $0x98] sm:$0xff] }
 0x186   : > { %1399 = vst [vmem:[#allocation2 + $0x50] sm:$0xff] %v1367_v58  ;;  %v1368_v2 = vadd.f32 %v1274_v43, %v502_v55 }
 0x187   : > { %1397 = vst [vmem:[#allocation2 + $0x40] sm:$0xff] %v1365_v62  ;;  %v1366_v3 = vadd.f32 %v1266_v1, %v500_v60 }
 0x188   : > { %1400 = vst [vmem:[#allocation2 + $0x58] sm:$0xff] %v1368_v2 }
 0x189   : > { %1398 = vst [vmem:[#allocation2 + $0x48] sm:$0xff] %v1366_v3  ;;  %v2272_v4 = vpop.f32.mrb[28].mxu0  ;;  %v2380_v5 = vpop.f32.mrb[28].mxu1  ;;  %v517_v3 = vld [vmem:[#allocation2 + $0xd0] sm:$0xff] }
 0x18a   : > { %v2273_v0 = vpop.f32.mrb[29].mxu0  ;;  %v1278_v7 = vpop.f32.mrb[29].mxu1 }
 0x18b   : > { %v2274_v8 = vadd.f32 %v2273_v0, %v2272_v4  ;;  %v1279_v9 = vadd.f32 %v2268_v52, %v1278_v7  ;;  %v2275_v10 = vpop.f32.mrb[30].mxu0  ;;  %v2381_v12 = vpop.f32.mrb[30].mxu1 }
 0x18c   : > { %v2276_v16 = vpop.f32.mrb[31].mxu0  ;;  %v1281_v18 = vpop.f32.mrb[31].mxu1 }
 0x18d   : > { %v1287_v11 = vadd.f32 %v2380_v5, %v2274_v8  ;;  %v1369_v13 = vadd.f32 %v1279_v9, %v503_v6  ;;  %v2277_v21 = vadd.f32 %v2276_v16, %v2275_v10  ;;  %v1282_v22 = vadd.f32 %v2271_v63, %v1281_v18  ;;  %v515_v6 = vld [vmem:[#allocation2 + $0xc0] sm:$0xff] }
 0x18f   : > { %v1371_v24 = vadd.f32 %v1287_v11, %v505_v15  ;;  %1401 = vst [vmem:[#allocation2 + $0x60] sm:$0xff] %v1369_v13  ;;  %v1290_v25 = vadd.f32 %v2381_v12, %v2277_v21  ;;  %v1370_v27 = vadd.f32 %v1282_v22, %v504_v17  ;;  %v518_v12 = vld [vmem:[#allocation2 + $0xd8] sm:$0xff]  ;;  %v511_v17 = vld [vmem:[#allocation2 + $0xa0] sm:$0xff]  ;;  %v516_v13 = vld [vmem:[#allocation2 + $0xc8] sm:$0xff] }
 0x191   : > { %1403 = vst [vmem:[#allocation2 + $0x70] sm:$0xff] %v1371_v24  ;;  %v1372_v28 = vadd.f32 %v1290_v25, %v506_v23  ;;  %1402 = vst [vmem:[#allocation2 + $0x68] sm:$0xff] %v1370_v27  ;;  %v2278_v29 = vpop.f32.mrb[32].mxu0  ;;  %v2384_v30 = vpop.f32.mrb[32].mxu1  ;;  %v512_v27 = vld [vmem:[#allocation2 + $0xa8] sm:$0xff] }
 0x192   : > { %v2279_v31 = vpop.f32.mrb[33].mxu0  ;;  %v1294_v19 = vpop.f32.mrb[33].mxu1 }
 0x193   : > { %1404 = vst [vmem:[#allocation2 + $0x78] sm:$0xff] %v1372_v28  ;;  %v2280_v33 = vadd.f32 %v2279_v31, %v2278_v29  ;;  %v2281_v34 = vpop.f32.mrb[34].mxu0  ;;  %v2385_v35 = vpop.f32.mrb[34].mxu1  ;;  %v521_v31 = vld [vmem:[#allocation2 + $0xf0] sm:$0xff] }
 0x194   : > { %v2282_v39 = vpop.f32.mrb[35].mxu0  ;;  %v1297_v40 = vpop.f32.mrb[35].mxu1 }
 0x195   : > { %v1295_v41 = vadd.f32 %v2280_v33, %v1294_v19  ;;  %v2283_v42 = vadd.f32 %v2282_v39, %v2281_v34 }
 0x197   : > { %v1373_v46 = vadd.f32 %v1295_v41, %v507_v36  ;;  %v1298_v37 = vadd.f32 %v2283_v42, %v1297_v40  ;;  %v522_v41 = vld [vmem:[#allocation2 + $0xf8] sm:$0xff] }
 0x199   : > { %1405 = vst [vmem:[#allocation2 + $0x80] sm:$0xff] %v1373_v46  ;;  %v1374_v47 = vadd.f32 %v1298_v37, %v508_v45  ;;  %v2284_v48 = vpop.f32.mrb[36].mxu0  ;;  %v2954_v49 = vpop.f32.mrb[36].mxu1  ;;  %v513_v46 = vld [vmem:[#allocation2 + $0xb0] sm:$0xff] }
 0x19a   : > { %v2285_v51 = vpop.f32.mrb[37].mxu0  ;;  %v1310_v52 = vpop.f32.mrb[37].mxu1 }
 0x19b   : > { %1406 = vst [vmem:[#allocation2 + $0x88] sm:$0xff] %v1374_v47  ;;  %v2286_v53 = vadd.f32 %v2285_v51, %v2284_v48  ;;  %v2287_v54 = vpop.f32.mrb[38].mxu0  ;;  %v2956_v55 = vpop.f32.mrb[38].mxu1  ;;  %v520_v48 = vld [vmem:[#allocation2 + $0xe8] sm:$0xff] }
 0x19c   : > { %v2288_v58 = vpop.f32.mrb[39].mxu0  ;;  %v1313_v43 = vpop.f32.mrb[39].mxu1 }
 0x19d   : > { %v1303_v59 = vadd.f32 %v2384_v30, %v2286_v53  ;;  %v2289_v60 = vadd.f32 %v2288_v58, %v2287_v54  ;;  %v514_v58 = vld [vmem:[#allocation2 + $0xb8] sm:$0xff] }
 0x19f   : > { %v1375_v62 = vadd.f32 %v1303_v59, %v509_v57  ;;  %v1306_v63 = vadd.f32 %v2385_v35, %v2289_v60  ;;  %v519_v35 = vld [vmem:[#allocation2 + $0xe0] sm:$0xff]  ;;  %v1426_v60 = vld [vmem:[#allocation2 + $0x8] sm:$0xff] (!%p2052_p0) }
 0x1a1   : > { %1407 = vst [vmem:[#allocation2 + $0x90] sm:$0xff] %v1375_v62  ;;  %v1376_v1 = vadd.f32 %v1306_v63, %v510_v61  ;;  %v2290_v2 = vpop.f32.mrb[40].mxu0  ;;  %v2392_v4 = vpop.f32.mrb[40].mxu1 }
 0x1a2   : > { %v1335_v5 = vadd.f32 %v2392_v4, %v2942_v26  ;;  %v2291_v0 = vpop.f32.mrb[41].mxu0  ;;  %v1326_v7 = vpop.f32.mrb[41].mxu1 }
 0x1a3   : > { %1408 = vst [vmem:[#allocation2 + $0x98] sm:$0xff] %v1376_v1  ;;  %v2292_v8 = vadd.f32 %v2291_v0, %v2290_v2  ;;  %v1327_v9 = vadd.f32 %v2938_v14, %v1326_v7  ;;  %v2293_v10 = vpop.f32.mrb[42].mxu0  ;;  %v2393_v15 = vpop.f32.mrb[42].mxu1  ;;  %v1656_v1 = vmul.f32 (!%p2052_p0), %v1426_v60, %v1426_v60  ;;  %v1429_v2 = vld [vmem:[#allocation2 + $0x20] sm:$0xff] (!%p2052_p0) }
 0x1a4   : > { %v1383_v16 = vadd.f32 %v1335_v5, %v517_v3  ;;  %v1338_v18 = vadd.f32 %v2393_v15, %v2944_v32  ;;  %v2294_v11 = vpop.f32.mrb[43].mxu0  ;;  %v1329_v21 = vpop.f32.mrb[43].mxu1  ;;  %v1430_v3 = vld [vmem:[#allocation2 + $0x28] sm:$0xff] (!%p2052_p0) }
 0x1a5   : > { %v1311_v22 = vadd.f32 %v2292_v8, %v1310_v52  ;;  %v1381_v23 = vadd.f32 %v1327_v9, %v515_v6  ;;  %v2295_v26 = vadd.f32 %v2294_v11, %v2293_v10  ;;  %v1330_v24 = vadd.f32 %v2940_v20, %v1329_v21  ;;  %v1431_v6 = vld [vmem:[#allocation2 + $0x30] sm:$0xff] (!%p2052_p0)  ;;  %v1432_v10 = vld [vmem:[#allocation2 + $0x38] sm:$0xff] (!%p2052_p0)  ;;  %v2970_v15 = vld [vmem:[#allocation2 + $0x48] sm:$0xff] (!%p2052_p0) }
 0x1a6   : > { %1415 = vst [vmem:[#allocation2 + $0xd0] sm:$0xff] %v1383_v16  ;;  %v1384_v25 = vadd.f32 %v1338_v18, %v518_v12  ;;  %v2132_v0 = vpack.c.bf16 (!%p2052_p0), %v1430_v3, %v1429_v2  ;;  %v1433_v12 = vld [vmem:[#allocation2 + $0x40] sm:$0xff] (!%p2052_p0)  ;;  %v2137_v16 = vpack.c.bf16 (!%p2052_p0), %v1432_v10, %v1431_v6  ;;  %v2975_v18 = vld [vmem:[#allocation2 + $0x50] sm:$0xff] (!%p2052_p0)  ;;  %v1659_v21 = vmul.f32 (!%p2052_p0), %v1429_v2, %v1429_v2 }
 0x1a7   : > { %v1377_v28 = vadd.f32 %v1311_v22, %v511_v17  ;;  %1413 = vst [vmem:[#allocation2 + $0xc0] sm:$0xff] %v1381_v23  ;;  %v1314_v14 = vadd.f32 %v2295_v26, %v1313_v43  ;;  %v1382_v29 = vadd.f32 %v1330_v24, %v516_v13  ;;  %v2142_v17 = vpack.c.bf16 (!%p2052_p0), %v2970_v15, %v1433_v12  ;;  %v2977_v22 = vld [vmem:[#allocation2 + $0x58] sm:$0xff] (!%p2052_p0)  ;;  %v2979_v23 = vld [vmem:[#allocation2 + $0x60] sm:$0xff] (!%p2052_p0)  ;;  %v2981_v26 = vld [vmem:[#allocation2 + $0x68] sm:$0xff] (!%p2052_p0) }
 0x1a8   : > { %1416 = vst [vmem:[#allocation2 + $0xd8] sm:$0xff] %v1384_v25  ;;  %2200 = vst [vmem:[%s2850_s8 + $0x10] sm:$0xff] (!%p2052_p0), %v2132_v0   ;;  %v2147_v24 = vpack.c.bf16 (!%p2052_p0), %v2977_v22, %v2975_v18  ;;  %v2152_v25 = vpack.c.bf16 (!%p2052_p0), %v2981_v26, %v2979_v23 }
 0x1a9   : > { %1409 = vst [vmem:[#allocation2 + $0xa0] sm:$0xff] %v1377_v28  ;;  %v1378_v30 = vadd.f32 %v1314_v14, %v512_v27  ;;  %1414 = vst [vmem:[#allocation2 + $0xc8] sm:$0xff] %v1382_v29  ;;  %v2296_v32 = vpop.f32.mrb[44].mxu0  ;;  %v2396_v19 = vpop.f32.mrb[44].mxu1  ;;  %v2989_v27 = vld [vmem:[#allocation2 + $0x70] sm:$0xff] (!%p2052_p0)  ;;  %v1660_v29 = vmul.f32 (!%p2052_p0), %v1430_v3, %v1430_v3 }
 0x1aa   : > { %v1351_v33 = vadd.f32 %v2396_v19, %v2950_v50  ;;  %v2297_v34 = vpop.f32.mrb[45].mxu0  ;;  %v1342_v36 = vpop.f32.mrb[45].mxu1  ;;  %2201 = vst [vmem:[%s2850_s8 + $0x18] sm:$0xff] (!%p2052_p0), %v2137_v16   ;;  %2202 = vst [vmem:[%s2850_s8 + $0x20] sm:$0xff] (!%p2052_p0), %v2142_v17   ;;  %v1668_v16 = vmul.f32 (!%p2052_p0), %v2981_v26, %v2981_v26 }
 0x1ab   : > { %1410 = vst [vmem:[#allocation2 + $0xa8] sm:$0xff] %v1378_v30  ;;  %v2298_v20 = vadd.f32 %v2297_v34, %v2296_v32  ;;  %v1343_v39 = vadd.f32 %v2946_v38, %v1342_v36  ;;  %v2299_v40 = vpop.f32.mrb[46].mxu0  ;;  %v2397_v42 = vpop.f32.mrb[46].mxu1  ;;  %v2991_v30 = vld [vmem:[#allocation2 + $0x78] sm:$0xff] (!%p2052_p0)  ;;  %v2993_v32 = vld [vmem:[#allocation2 + $0x80] sm:$0xff] (!%p2052_p0)  ;;  %2203 = vst [vmem:[%s2850_s8 + $0x28] sm:$0xff] (!%p2052_p0), %v2147_v24  }
 0x1ac   : > { %v1387_v45 = vadd.f32 %v1351_v33, %v521_v31  ;;  %v1354_v37 = vadd.f32 %v2397_v42, %v2952_v56  ;;  %v2300_v47 = vpop.f32.mrb[47].mxu0  ;;  %v1345_v51 = vpop.f32.mrb[47].mxu1  ;;  %v2995_v31 = vld [vmem:[#allocation2 + $0x88] sm:$0xff] (!%p2052_p0)  ;;  %2204 = vst [vmem:[%s2850_s8 + $0x30] sm:$0xff] (!%p2052_p0), %v2152_v25   ;;  %v2157_v19 = vpack.c.bf16 (!%p2052_p0), %v2991_v30, %v2989_v27  ;;  %v3003_v34 = vld [vmem:[#allocation2 + $0x90] sm:$0xff] (!%p2052_p0) }
 0x1ad   : > { %v1319_v52 = vadd.f32 %v2954_v49, %v2298_v20  ;;  %v1385_v50 = vadd.f32 %v1343_v39, %v519_v35  ;;  %v2301_v53 = vadd.f32 %v2300_v47, %v2299_v40  ;;  %v1346_v54 = vadd.f32 %v2948_v44, %v1345_v51  ;;  %1424 = sbr.rel (%p2052_p0) target bundleno = 507 (0x1fb), region = 62  ;;  %v1425_v49 = vld [vmem:[#allocation2] sm:$0xff] (!%p2052_p0)  ;;  %v1427_v44 = vld [vmem:[#allocation2 + $0x10] sm:$0xff] (!%p2052_p0)  ;;  %v3005_v39 = vld [vmem:[#allocation2 + $0x98] sm:$0xff] (!%p2052_p0) }
 0x1ae   : > { %1419 = vst [vmem:[#allocation2 + $0xf0] sm:$0xff] %v1387_v45  ;;  %v1388_v57 = vadd.f32 %v1354_v37, %v522_v41  ;;  %v2122_v61 = vpack.c.bf16 (!%p2052_p0), %v1426_v60, %v1425_v49  ;;  %v1617_v62 = vadd.f32 (!%p2052_p0), %v1426_v60, %v1425_v49  ;;  %v1655_v63 = vmul.f32 (!%p2052_p0), %v1425_v49, %v1425_v49 }
 0x1af   : > { %v1379_v38 = vadd.f32 %v1319_v52, %v513_v46  ;;  %1417 = vst [vmem:[#allocation2 + $0xe0] sm:$0xff] %v1385_v50  ;;  %v1322_v43 = vadd.f32 %v2956_v55, %v2301_v53  ;;  %v1386_v59 = vadd.f32 %v1346_v54, %v520_v48  ;;  %v1428_v55 = vld [vmem:[#allocation2 + $0x18] sm:$0xff] (!%p2052_p0)  ;;  %v1657_v5 = vmul.f32 (!%p2052_p0), %v1427_v44, %v1427_v44  ;;  %v3021_v52 = vld [vmem:[#allocation2 + $0xc0] sm:$0xff] (!%p2052_p0) }
 0x1b0   : > { %1420 = vst [vmem:[#allocation2 + $0xf8] sm:$0xff] %v1388_v57  ;;  %v2127_v4 = vpack.c.bf16 (!%p2052_p0), %v1428_v55, %v1427_v44  ;;  %2123 = vst [vmem:[%s2850_s8] sm:$0xff] (!%p2052_p0), %v2122_v61   ;;  %v1687_v7 = vadd.f32 (!%p2052_p0), %v1656_v1, %v1655_v63  ;;  %v1618_v8 = vadd.f32 (!%p2052_p0), %v1617_v62, %v1427_v44  ;;  %v3007_v40 = vld [vmem:[#allocation2 + $0xa0] sm:$0xff] (!%p2052_p0)  ;;  %v3023_v50 = vld [vmem:[#allocation2 + $0xc8] sm:$0xff] (!%p2052_p0) }
 0x1b1   : > { %1411 = vst [vmem:[#allocation2 + $0xb0] sm:$0xff] %v1379_v38  ;;  %v1380_v56 = vadd.f32 %v1322_v43, %v514_v58  ;;  %1418 = vst [vmem:[#allocation2 + $0xe8] sm:$0xff] %v1386_v59  ;;  %v1658_v9 = vmul.f32 (!%p2052_p0), %v1428_v55, %v1428_v55  ;;  %v2162_v33 = vpack.c.bf16 (!%p2052_p0), %v2995_v31, %v2993_v32  ;;  %v3031_v57 = vld [vmem:[#allocation2 + $0xd0] sm:$0xff] (!%p2052_p0)  ;;  %v3033_v59 = vld [vmem:[#allocation2 + $0xd8] sm:$0xff] (!%p2052_p0) }
 0x1b2   : > { %2199 = vst [vmem:[%s2850_s8 + $0x8] sm:$0xff] (!%p2052_p0), %v2127_v4   ;;  %v1619_v11 = vadd.f32 (!%p2052_p0), %v1618_v8, %v1428_v55  ;;  %v1688_v13 = vadd.f32 (!%p2052_p0), %v1687_v7, %v1657_v5  ;;  %v1661_v20 = vmul.f32 (!%p2052_p0), %v1431_v6, %v1431_v6  ;;  %v3009_v41 = vld [vmem:[#allocation2 + $0xa8] sm:$0xff] (!%p2052_p0)  ;;  %2205 = vst [vmem:[%s2850_s8 + $0x38] sm:$0xff] (!%p2052_p0), %v2157_v19  }
 0x1b3   : > { %1412 = vst [vmem:[#allocation2 + $0xb8] sm:$0xff] %v1380_v56  ;;  %2206 = vst [vmem:[%s2850_s8 + $0x40] sm:$0xff] (!%p2052_p0), %v2162_v33   ;;  %v2167_v42 = vpack.c.bf16 (!%p2052_p0), %v3005_v39, %v3003_v34  ;;  %v2172_v45 = vpack.c.bf16 (!%p2052_p0), %v3009_v41, %v3007_v40  ;;  %v1662_v48 = vmul.f32 (!%p2052_p0), %v1432_v10, %v1432_v10 }
 0x1b4   : > { %v1689_v28 = vadd.f32 %v1688_v13, %v1658_v9  ;;  %v1620_v14 = vadd.f32 %v1619_v11, %v1429_v2  ;;  %v2182_v54 = vpack.c.bf16 %v3023_v50, %v3021_v52  ;;  %v1663_v43 = vmul.f32 %v1433_v12, %v1433_v12 }
 0x1b5   : > { %2207 = vst [vmem:[%s2850_s8 + $0x48] sm:$0xff] %v2167_v42   ;;  %2208 = vst [vmem:[%s2850_s8 + $0x50] sm:$0xff] %v2172_v45   ;;  %v2187_v60 = vpack.c.bf16 %v3033_v59, %v3031_v57  ;;  %v1664_v63 = vmul.f32 %v2970_v15, %v2970_v15  ;;  %v3047_v1 = vld [vmem:[#allocation2 + $0xf0] sm:$0xff]  ;;  %v1665_v5 = vmul.f32 %v2975_v18, %v2975_v18 }
 0x1b6   : > { %v1621_v35 = vadd.f32 %v1620_v14, %v1430_v3  ;;  %v1690_v36 = vadd.f32 %v1689_v28, %v1659_v21  ;;  %v3035_v56 = vld [vmem:[#allocation2 + $0xe0] sm:$0xff]  ;;  %2210 = vst [vmem:[%s2850_s8 + $0x60] sm:$0xff] %v2182_v54   ;;  %v1666_v7 = vmul.f32 %v2977_v22, %v2977_v22 }
 0x1b7   : > { %v3049_v55 = vld [vmem:[#allocation2 + $0xf8] sm:$0xff]  ;;  %2211 = vst [vmem:[%s2850_s8 + $0x68] sm:$0xff] %v2187_v60  }
 0x1b8   : > { %v3017_v46 = vld [vmem:[#allocation2 + $0xb0] sm:$0xff]  ;;  %v1691_v37 = vadd.f32 %v1690_v36, %v1660_v29  ;;  %v1622_v47 = vadd.f32 %v1621_v35, %v1431_v6  ;;  %v3037_v49 = vld [vmem:[#allocation2 + $0xe8] sm:$0xff]  ;;  %v2197_v2 = vpack.c.bf16 %v3049_v55, %v3047_v1 }
 0x1b9   : > { %v2192_v44 = vpack.c.bf16 %v3037_v49, %v3035_v56 }
 0x1ba   : > { %v3019_v51 = vld [vmem:[#allocation2 + $0xb8] sm:$0xff]  ;;  %v1623_v58 = vadd.f32 %v1622_v47, %v1432_v10  ;;  %v1692_v38 = vadd.f32 %v1691_v37, %v1661_v20  ;;  %2213 = vst [vmem:[%s2850_s8 + $0x78] sm:$0xff] %v2197_v2   ;;  %v1667_v10 = vmul.f32 %v2979_v23, %v2979_v23 }
 0x1bb   : > { %v2177_v53 = vpack.c.bf16 %v3019_v51, %v3017_v46  ;;  %2212 = vst [vmem:[%s2850_s8 + $0x70] sm:$0xff] %v2192_v44  }
 0x1bc   : > { %v1693_v61 = vadd.f32 %v1692_v38, %v1662_v48  ;;  %v1624_v62 = vadd.f32 %v1623_v58, %v1433_v12 }
 0x1bd   : > { %2209 = vst [vmem:[%s2850_s8 + $0x58] sm:$0xff] %v2177_v53  }
 0x1be   : > { %v1625_v3 = vadd.f32 %v1624_v62, %v2970_v15  ;;  %v1694_v4 = vadd.f32 %v1693_v61, %v1663_v43 }
 0x1c0   : > { %v1695_v0 = vadd.f32 %v1694_v4, %v1664_v63  ;;  %v1626_v6 = vadd.f32 %v1625_v3, %v2975_v18  ;;  %v1669_v18 = vmul.f32 %v2989_v27, %v2989_v27 }
 0x1c2   : > { %v1627_v8 = vadd.f32 %v1626_v6, %v2977_v22  ;;  %v1696_v9 = vadd.f32 %v1695_v0, %v1665_v5  ;;  %v1670_v22 = vmul.f32 %v2991_v30, %v2991_v30 }
 0x1c4   : > { %v1697_v12 = vadd.f32 %v1696_v9, %v1666_v7  ;;  %v1628_v15 = vadd.f32 %v1627_v8, %v2979_v23  ;;  %v1671_v23 = vmul.f32 %v2993_v32, %v2993_v32 }
 0x1c6   : > { %v1629_v17 = vadd.f32 %v1628_v15, %v2981_v26  ;;  %v1698_v11 = vadd.f32 %v1697_v12, %v1667_v10  ;;  %v1672_v26 = vmul.f32 %v2995_v31, %v2995_v31 }
 0x1c8   : > { %v1699_v13 = vadd.f32 %v1698_v11, %v1668_v16  ;;  %v1630_v21 = vadd.f32 %v1629_v17, %v2989_v27  ;;  %v1673_v27 = vmul.f32 %v3003_v34, %v3003_v34 }
 0x1ca   : > { %v1631_v24 = vadd.f32 %v1630_v21, %v2991_v30  ;;  %v1700_v25 = vadd.f32 %v1699_v13, %v1669_v18  ;;  %v1674_v30 = vmul.f32 %v3005_v39, %v3005_v39 }
 0x1cc   : > { %v1701_v28 = vadd.f32 %v1700_v25, %v1670_v22  ;;  %v1632_v14 = vadd.f32 %v1631_v24, %v2993_v32  ;;  %v1675_v32 = vmul.f32 %v3007_v40, %v3007_v40 }
 0x1ce   : > { %v1633_v29 = vadd.f32 %v1632_v14, %v2995_v31  ;;  %v1702_v19 = vadd.f32 %v1701_v28, %v1671_v23  ;;  %v1676_v31 = vmul.f32 %v3009_v41, %v3009_v41 }
 0x1d0   : > { %v1703_v33 = vadd.f32 %v1702_v19, %v1672_v26  ;;  %v1634_v35 = vadd.f32 %v1633_v29, %v3003_v34  ;;  %v1677_v34 = vmul.f32 %v3017_v46, %v3017_v46 }
 0x1d2   : > { %v1635_v36 = vadd.f32 %v1634_v35, %v3005_v39  ;;  %v1704_v20 = vadd.f32 %v1703_v33, %v1673_v27  ;;  %v1678_v39 = vmul.f32 %v3019_v51, %v3019_v51 }
 0x1d4   : > { %v1705_v42 = vadd.f32 %v1704_v20, %v1674_v30  ;;  %v1636_v45 = vadd.f32 %v1635_v36, %v3007_v40  ;;  %v1679_v40 = vmul.f32 %v3021_v52, %v3021_v52 }
 0x1d6   : > { %v1637_v37 = vadd.f32 %v1636_v45, %v3009_v41  ;;  %v1706_v47 = vadd.f32 %v1705_v42, %v1675_v32  ;;  %v1680_v41 = vmul.f32 %v3023_v50, %v3023_v50 }
 0x1d8   : > { %v1707_v48 = vadd.f32 %v1706_v47, %v1676_v31  ;;  %v1638_v53 = vadd.f32 %v1637_v37, %v3017_v46  ;;  %v1681_v46 = vmul.f32 %v3031_v57, %v3031_v57 }
 0x1da   : > { %v1639_v54 = vadd.f32 %v1638_v53, %v3019_v51  ;;  %v1708_v58 = vadd.f32 %v1707_v48, %v1677_v34  ;;  %v1682_v51 = vmul.f32 %v3033_v59, %v3033_v59 }
 0x1dc   : > { %v1709_v38 = vadd.f32 %v1708_v58, %v1678_v39  ;;  %v1640_v43 = vadd.f32 %v1639_v54, %v3021_v52  ;;  %v1683_v52 = vmul.f32 %v3035_v56, %v3035_v56 }
 0x1de   : > { %v1641_v60 = vadd.f32 %v1640_v43, %v3023_v50  ;;  %v1710_v44 = vadd.f32 %v1709_v38, %v1679_v40  ;;  %v1684_v50 = vmul.f32 %v3037_v49, %v3037_v49 }
 0x1e0   : > { %v1711_v61 = vadd.f32 %v1710_v44, %v1680_v41  ;;  %v1642_v62 = vadd.f32 %v1641_v60, %v3031_v57  ;;  %v1685_v57 = vmul.f32 %v3047_v1, %v3047_v1 }
 0x1e2   : > { %v1643_v63 = vadd.f32 %v1642_v62, %v3033_v59  ;;  %v1712_v2 = vadd.f32 %v1711_v61, %v1681_v46  ;;  %v1686_v59 = vmul.f32 %v3049_v55, %v3049_v55 }
 0x1e4   : > { %v1713_v3 = vadd.f32 %v1712_v2, %v1682_v51  ;;  %v1644_v4 = vadd.f32 %v1643_v63, %v3035_v56 }
 0x1e6   : > { %v1645_v5 = vadd.f32 %v1644_v4, %v3037_v49  ;;  %v1714_v0 = vadd.f32 %v1713_v3, %v1683_v52 }
 0x1e8   : > { %v1715_v6 = vadd.f32 %v1714_v0, %v1684_v50  ;;  %v1646_v7 = vadd.f32 %v1645_v5, %v3047_v1 }
 0x1ea   : > { %v1647_v8 = vadd.f32 %v1646_v7, %v3049_v55  ;;  %v1716_v56 = vadd.f32 %v1715_v6, %v1685_v57 }
 0x1ec   : > { %v1648_v9 = vrot.slane %v1647_v8, 4  ;;  %v1717_v10 = vadd.f32 %v1716_v56, %v1686_v59 }
 0x1ee   : > { %v1649_v12 = vadd.f32 %v1648_v9, %v1647_v8  ;;  %v1718_v15 = vrot.slane %v1717_v10, 4 }
 0x1f0   : > { %v1650_v49 = vrot.slane %v1649_v12, 2  ;;  %v1719_v16 = vadd.f32 %v1718_v15, %v1717_v10 }
 0x1f2   : > { %v1651_v17 = vadd.f32 %v1650_v49, %v1649_v12  ;;  %v1720_v11 = vrot.slane %v1719_v16, 2 }
 0x1f4   : > { %v1652_v18 = vrot.slane %v1651_v17, 1  ;;  %v1721_v13 = vadd.f32 %v1720_v11, %v1719_v16 }
 0x1f6   : > { %v1653_v21 = vadd.f32 %v1652_v18, %v1651_v17  ;;  %v1722_v1 = vrot.slane %v1721_v13, 1 }
 0x1f8   : > { %1654 = vst [vmem:[%s447_s10] sm:$0x1] %v1653_v21  ;;  %v1723_v55 = vadd.f32 %v1722_v1, %v1721_v13 }
 0x1fa   : > { %1724 = vst [vmem:[%s453_s13] sm:$0x1] %v1723_v55 }
 0x1fb PF: > { %s15_s21 = sadd.s32 1, %s2616_s21   ;;  %s3159_s15 = smov %s2596_s16 }
 0x1fc   : > { %p12_p1 = scmp.ge.s32.totalorder %s15_s21, 8   ;;  %s3160_s16 = smov %s2695_s28 }
 0x1fd   : > { %s3161_s17 = smov %s2608_s19  ;;  %s3162_s18 = smov %s2612_s20 }
 0x1fe   : > { %s3163_s19 = smov %s3166_s22  ;;  %s3164_s20 = smov %s3170_s23 }
 0x1ff   :  { %14 = sbr.rel (!%p12_p1) target bundleno = 4 (0x4), region = 130 }

</bundles_post_ra>
